<compile_context>
chip_gen: v5e
topology: v5e:2x2
jax: 0.10.0
libtpu: 0.0.40
codegen_flags: <defaults>
</compile_context>

<pallas_src>
import math

import jax
import jax.numpy as jnp
from jax.experimental import pallas as pl
from jax.experimental.pallas import tpu as pltpu

# ----------------------------------------------------------------------------------------
# configuration (derived exactly as MLPAttention.__init__ would)
# ----------------------------------------------------------------------------------------
FIBER = (32, 8)
DIM_HEAD = (8, 4)
HEADS = (2, 2)
RADIAL_HIDDEN_DIM = 16
ATTN_HIDDEN_DIM_MULT = 4
ATTN_LEAKYRELU_SLOPE = 0.1
NUM_DEGREES = len(FIBER)
M_DIMS = tuple(2 * d + 1 for d in range(NUM_DEGREES))                  # (1, 3)

HIDDEN_FIBER = tuple(d * h for d, h in zip(DIM_HEAD, HEADS))           # (16, 8)
VALUE_HIDDEN_FIBER = HIDDEN_FIBER                                      # single_headed_kv=False
TYPE0_DIM = VALUE_HIDDEN_FIBER[0]                                      # 16
HTYPE_DIMS = sum(VALUE_HIDDEN_FIBER[1:])                               # 8
ATTN_HIDDEN_DIMS = tuple(h * ATTN_HIDDEN_DIM_MULT for h in HEADS)      # (8, 8)
INTERMEDIATE_FIBER = (sum(ATTN_HIDDEN_DIMS) + TYPE0_DIM + HTYPE_DIMS,) + VALUE_HIDDEN_FIBER[1:]  # (40, 8)
SCALES = tuple(d ** -0.5 for d in DIM_HEAD)

HT = sum(HEADS)                                                        # 4 heads total
SLAB_WIDTHS = [DIM_HEAD[d] * M_DIMS[d] for d in range(NUM_DEGREES) for _ in range(HEADS[d])]  # [8,8,12,12]
SLAB_OFFSETS = [sum(SLAB_WIDTHS[:c]) for c in range(HT)]
VT = sum(SLAB_WIDTHS)                                                  # 40
AT_TOT = sum(ATTN_HIDDEN_DIMS)                                         # 16
NEG_BIAS = -1e30                                                       # additive mask bias (bf16-safe)

MXU_DTYPE = jnp.bfloat16        # bf16 MXU operands / big intermediates, f32 accumulation
ROW_TILE_CAP = 1024             # rows per grid step for the narrow-lane kernels
EDGE_ROW_TILE_CAP = 256         # fused edge kernel keeps ~(rows x 1024) f32 live in VMEM


def split_num_into_groups(num, groups):
    per = (num + groups - 1) // groups
    rem = num % groups
    if rem == 0:
        return (per,) * groups
    return (per,) * rem + (per - 1,) * (groups - rem)


# (degree_in, degree_out) -> (nc_in, nc_out), matching DTP / Radial construction
_NC = {}
for _dout in range(NUM_DEGREES):
    _split = split_num_into_groups(INTERMEDIATE_FIBER[_dout], NUM_DEGREES)
    for _din in range(NUM_DEGREES):
        _NC[(_din, _dout)] = (FIBER[_din], _split[_din])

RADIAL_ORDER = ((0, 0), (0, 1), (1, 0), (1, 1))                        # din=0 blocks first
NC00_I, NC00_O = _NC[(0, 0)]       # 32, 20
NC01_I, NC01_O = _NC[(0, 1)]       # 32, 4
NC10_I, NC10_O = _NC[(1, 0)]       # 8, 20
NC11_I, NC11_O = _NC[(1, 1)]       # 8, 4
W00 = NC00_O * NC00_I              # 640
W01 = NC01_O * NC01_I              # 128
W10 = NC10_O * NC10_I              # 160
W11 = NC11_O * NC11_I              # 32
W11E = W11 * 3                     # 96  ((1,1) block pre-replicated over m)
R_EFF = W00 + W01 + W10 + W11E     # 1024 lanes (nice multiple of 128)
OFF_A, OFF_B, OFF_C, OFF_D = 0, W00, W00 + W01, W00 + W01 + W10        # 0, 640, 768, 928

XCAT = FIBER[0] + FIBER[1] * 3     # 56 : [x0 (32) | x1_rot m-major (24)]
OUT0_CH = INTERMEDIATE_FIBER[0]    # 40
OUT1_LANES = INTERMEDIATE_FIBER[1] * 3  # 24 (channel-major d*3+m)
CTR_OUT = OUT0_CH + OUT1_LANES     # 64


# ----------------------------------------------------------------------------------------
# small helpers
# ----------------------------------------------------------------------------------------
def _round_up(x, m):
    return -(-x // m) * m


def _choose_tile(n, cap):
    """Row tile: multiple of 16, <= cap, no pathological padding, >= 2 grid steps when possible
    (keeps both v7x TensorCores busy; harmless on single-core v5e/v6e)."""
    n16 = _round_up(max(n, 1), 16)
    min_steps = 2 if n16 >= 32 else 1
    steps = max(min_steps, -(-n16 // cap))
    return _round_up(-(-n16 // steps), 16)


def _pad_rows(x, tm):
    n = x.shape[0]
    npad = _round_up(n, tm)
    if npad != n:
        x = jnp.pad(x, [(0, npad - n)] + [(0, 0)] * (x.ndim - 1))
    return x


def _block_diag(mats):
    rows = sum(m.shape[0] for m in mats)
    cols = sum(m.shape[1] for m in mats)
    out = jnp.zeros((rows, cols), jnp.float32)
    r = c = 0
    for m in mats:
        out = out.at[r:r + m.shape[0], c:c + m.shape[1]].set(m.astype(jnp.float32))
        r += m.shape[0]
        c += m.shape[1]
    return out


def _expand_weight_m(w, m):
    """Expand a (d, e) fiber-linear weight so it acts on the m-flattened '... (d m)' axis and
    produces the m-flattened '... (e m)' axis (no activation transposes needed)."""
    if m == 1:
        return w.astype(jnp.float32)
    d, e = w.shape
    return jnp.einsum('de,ij->diej', w.astype(jnp.float32),
                      jnp.eye(m, dtype=jnp.float32)).reshape(d * m, e * m)


def _ones_at(shape, pairs):
    m = jnp.zeros(shape, jnp.float32)
    rs = jnp.array([r for r, _ in pairs], jnp.int32)
    cs = jnp.array([c for _, c in pairs], jnp.int32)
    return m.at[rs, cs].set(1.0)


# ----------------------------------------------------------------------------------------
# constant 0/1 matrices for the lane-dense DTP contraction / rotations (built once at import)
# ----------------------------------------------------------------------------------------
def _build_edge_constants():
    # expand the (1,1) radial block by m so the radial GEMM emits it pre-replicated over m
    pairs = [(o * NC11_I + i, o * NC11_I * 3 + i * 3 + m)
             for o in range(NC11_O) for i in range(NC11_I) for m in range(3)]
    e_r11 = _ones_at((W11, W11E), pairs)

    # xcat (56) -> 1024 lanes matching the effective radial-output layout
    pairs = []
    for o in range(NC00_O):
        for i in range(NC00_I):
            pairs.append((i, OFF_A + o * NC00_I + i))
    for o in range(NC01_O):
        for i in range(NC01_I):
            pairs.append((i, OFF_B + o * NC01_I + i))
    for o in range(NC10_O):
        for i in range(NC10_I):                                 # center (q=1) of x1_rot
            pairs.append((FIBER[0] + 1 * FIBER[1] + i, OFF_C + o * NC10_I + i))
    for o in range(NC11_O):
        for i in range(NC11_I):
            for m in range(3):
                pairs.append((FIBER[0] + m * FIBER[1] + i, OFF_D + o * NC11_I * 3 + i * 3 + m))
    x_exp = _ones_at((XCAT, R_EFF), pairs)

    # 1024-lane product -> [out0 (40 ch) | out1_pre (24 lanes, l*3+m, centre-padded)]
    pairs = []
    for o in range(NC00_O):
        for i in range(NC00_I):
            pairs.append((OFF_A + o * NC00_I + i, o))
    for o in range(NC01_O):
        for i in range(NC01_I):
            pairs.append((OFF_B + o * NC01_I + i, OUT0_CH + o * 3 + 1))
    for o in range(NC10_O):
        for i in range(NC10_I):
            pairs.append((OFF_C + o * NC10_I + i, NC00_O + o))
    for o in range(NC11_O):
        for i in range(NC11_I):
            for m in range(3):
                pairs.append((OFF_D + o * NC11_I * 3 + i * 3 + m, OUT0_CH + (NC01_O + o) * 3 + m))
    s_big = _ones_at((R_EFF, CTR_OUT), pairs)

    nch = FIBER[1]   # 8 degree-1 channels
    # rotation helpers: joint lane index t = ch*9 + p*3 + q
    erot = _ones_at((nch * 3, nch * 9),                         # row ch*3+p -> joint (all q)
                    [(c * 3 + p, c * 9 + p * 3 + q)
                     for c in range(nch) for p in range(3) for q in range(3)])
    edi = _ones_at((9, nch * 9),                                # D[p,q] broadcast over channels
                   [(p * 3 + q, c * 9 + p * 3 + q)
                    for c in range(nch) for p in range(3) for q in range(3)])
    sx1 = _ones_at((nch * 9, nch * 3),                          # sum over p -> lane q*8+i (m-major)
                   [(c * 9 + p * 3 + q, q * nch + c)
                    for c in range(nch) for p in range(3) for q in range(3)])
    edo = _ones_at((9, nch * 9),                                # D[q,p] broadcast over channels
                   [(q * 3 + p, c * 9 + p * 3 + q)
                    for c in range(nch) for p in range(3) for q in range(3)])
    so1 = _ones_at((nch * 9, nch * 3),                          # sum over p -> lane l*3+q
                   [(c * 9 + p * 3 + q, c * 3 + q)
                    for c in range(nch) for p in range(3) for q in range(3)])
    return e_r11, x_exp, s_big, erot, edi, sx1, edo, so1


E_R11, X_EXP, S_BIG, EROT, EDI, SX1, EDO, SO1 = _build_edge_constants()
P_EXP = _ones_at((HT, VT), [(c, SLAB_OFFSETS[c] + t)
                            for c in range(HT) for t in range(SLAB_WIDTHS[c])])          # head -> slab
E_GATE = _ones_at((HTYPE_DIMS, HTYPE_DIMS * 3),
                  [(d, d * 3 + m) for d in range(HTYPE_DIMS) for m in range(3)])         # gate -> m-expanded


# ----------------------------------------------------------------------------------------
# generic row-tiled pallas_call wrapper
# ----------------------------------------------------------------------------------------
def _call_rowwise(kernel, row_arrays, const_arrays, out_width, out_dtype, cap):
    n = row_arrays[0].shape[0]
    tm = _choose_tile(n, cap)
    padded = [_pad_rows(a, tm) for a in row_arrays]
    N = padded[0].shape[0]
    row_specs = [pl.BlockSpec((tm, a.shape[1]), lambda i: (i, 0)) for a in padded]
    const_specs = [pl.BlockSpec(a.shape, lambda i: (0, 0)) for a in const_arrays]
    out = pl.pallas_call(
        kernel,
        out_shape=jax.ShapeDtypeStruct((N, out_width), out_dtype),
        grid=(N // tm,),
        in_specs=row_specs + const_specs,
        out_specs=pl.BlockSpec((tm, out_width), lambda i: (i, 0)),
        compiler_params=pltpu.CompilerParams(dimension_semantics=("parallel",)),
    )(*padded, *const_arrays)
    return out[:n]


# ----------------------------------------------------------------------------------------
# Pallas kernel 1: generic row-tiled matmul (bf16 in, f32 accumulate/out) - node bundle
# ----------------------------------------------------------------------------------------
def _matmul_kernel(x_ref, w_ref, o_ref):
    o_ref[...] = jnp.dot(x_ref[...], w_ref[...], preferred_element_type=jnp.float32)


def pallas_matmul(x, w):
    return _call_rowwise(_matmul_kernel,
                         [x.astype(MXU_DTYPE)], [w.astype(MXU_DTYPE)],
                         w.shape[1], jnp.float32, cap=ROW_TILE_CAP)


# ----------------------------------------------------------------------------------------
# Pallas kernel 2: fused edge kernel
#   all four Radial MLPs + DTP R (x) x contraction + Wigner-D rotations + DTP to_out,
#   lane-dense via constant 0/1 expansion / summation matrices.
# ----------------------------------------------------------------------------------------
def _edge_kernel(feat_ref, x0_ref, x1_ref, d_ref,
                 w1_ref, b1_ref, g1_ref, avg_ref, w2_ref, b2_ref, g2_ref, w3_ref, b3_ref,
                 erot_ref, edi_ref, sx1_ref, xexp_ref, sbig_ref, edo_ref, so1_ref,
                 wo0_ref, wo1_ref, o_ref):
    f32 = jnp.float32
    avg = avg_ref[...]

    def seg_ln(h, gamma):                               # per-16-lane-block LayerNorm (beta == 0)
        mu = jnp.dot(h, avg, preferred_element_type=f32)
        var = jnp.dot(jnp.square(h - mu), avg, preferred_element_type=f32)
        return (h - mu) * jax.lax.rsqrt(var + 1e-5) * gamma

    # --- fused Radial MLPs (Lin-SiLU-LN-Lin-SiLU-LN-Lin, block-diag weights, 1024-lane output) ---
    h = feat_ref[...] * w1_ref[...] + b1_ref[...]       # edge_dim=None -> Din == 1 (broadcast)
    h = h * jax.nn.sigmoid(h)
    h = seg_ln(h, g1_ref[...])
    h = jnp.dot(h.astype(MXU_DTYPE), w2_ref[...], preferred_element_type=f32) + b2_ref[...]
    h = h * jax.nn.sigmoid(h)
    h = seg_ln(h, g2_ref[...])
    r = jnp.dot(h.astype(MXU_DTYPE), w3_ref[...], preferred_element_type=f32) + b3_ref[...]   # (tm, 1024)

    # --- rotate degree-1 inputs by D (per-edge 3x3), lane-dense (f32) ---
    x1 = x1_ref[...]                                    # (tm, 24) lane = i*3+p
    dm = d_ref[...]                                     # (tm, 9)  lane = p*3+q  (row-major D)
    prod_in = jnp.dot(x1, erot_ref[...], preferred_element_type=f32) * \
              jnp.dot(dm, edi_ref[...], preferred_element_type=f32)                 # (tm, 72)
    x1_rot = jnp.dot(prod_in, sx1_ref[...], preferred_element_type=f32)             # (tm, 24) lane = q*8+i

    # --- R (x) x contraction for all four (din,dout) blocks in one lane-dense product ---
    xcat = jnp.concatenate([x0_ref[...], x1_rot], axis=-1)                          # (tm, 56)
    xe = jnp.dot(xcat.astype(MXU_DTYPE), xexp_ref[...], preferred_element_type=f32)  # (tm, 1024)
    prod = r * xe
    c = jnp.dot(prod.astype(MXU_DTYPE), sbig_ref[...], preferred_element_type=f32)   # (tm, 64)
    out0 = c[:, :OUT0_CH]                               # (tm, 40)
    out1 = c[:, OUT0_CH:]                               # (tm, 24) lane = l*3+p

    # --- rotate degree-1 outputs by D, then DTP to_out projection (both degrees) ---
    prod_out = jnp.dot(out1, erot_ref[...], preferred_element_type=f32) * \
               jnp.dot(dm, edo_ref[...], preferred_element_type=f32)                # (tm, 72)
    out1 = jnp.dot(prod_out, so1_ref[...], preferred_element_type=f32)              # (tm, 24) lane = l*3+q

    y0 = jnp.dot(out0.astype(MXU_DTYPE), wo0_ref[...], preferred_element_type=f32)  # (tm, 40)
    y1 = jnp.dot(out1.astype(MXU_DTYPE), wo1_ref[...], preferred_element_type=f32)  # (tm, 24)
    o_ref[...] = jnp.concatenate([y0, y1], axis=-1).astype(o_ref.dtype)


def _fused_radial_weights(radial):
    H = RADIAL_HIDDEN_DIM
    cat = lambda key: jnp.concatenate([radial[k][key].astype(jnp.float32) for k in RADIAL_ORDER], axis=1)
    w1, b1, g1 = cat('w1'), cat('b1'), cat('g1')
    b2, g2, b3 = cat('b2'), cat('g2'), cat('b3')
    w2 = _block_diag([radial[k]['w2'] for k in RADIAL_ORDER])
    w3 = _block_diag([radial[k]['w3'] for k in RADIAL_ORDER])
    # pre-expand the (1,1) block columns over m so the kernel's contraction is one lane-dense product
    w3 = jnp.concatenate([w3[:, :OFF_D], w3[:, OFF_D:] @ E_R11], axis=1)             # (64, 1024)
    b3 = jnp.concatenate([b3[:, :OFF_D], b3[:, OFF_D:] @ E_R11], axis=1)             # (1, 1024)
    avg = jnp.kron(jnp.eye(len(RADIAL_ORDER), dtype=jnp.float32),
                   jnp.ones((H, H), jnp.float32) / H)
    return w1, b1, g1, avg, w2, b2, g2, w3, b3


# ----------------------------------------------------------------------------------------
# Pallas kernel 3: Gate (sigmoid/SiLU) + value Linear fused (both degrees)
# ----------------------------------------------------------------------------------------
def _value_kernel(x_ref, eg_ref, wv_ref, o_ref):
    f32 = jnp.float32
    x = x_ref[...].astype(f32)                          # (tm, 48) = [gate(8) | type0(16) | deg1(24)]
    gate = jax.nn.sigmoid(x[:, :HTYPE_DIMS])
    t0 = x[:, HTYPE_DIMS:HTYPE_DIMS + TYPE0_DIM]
    t0 = t0 * jax.nn.sigmoid(t0)                        # SiLU
    g1 = x[:, HTYPE_DIMS + TYPE0_DIM:] * jnp.dot(gate, eg_ref[...], preferred_element_type=f32)
    vin = jnp.concatenate([t0, g1], axis=-1)            # (tm, 40)
    o_ref[...] = jnp.dot(vin.astype(MXU_DTYPE), wv_ref[...],
                         preferred_element_type=f32).astype(o_ref.dtype)


# ----------------------------------------------------------------------------------------
# Pallas kernel 4: attention over neighbors (linear-in-J logits, lane-dense accumulate),
#                  per-head output gates and the final to_out projection in the epilogue.
# ----------------------------------------------------------------------------------------
def _make_attend_kernel(J):
    def kernel(ai_ref, bias_ref, v_ref, g_ref, wl_ref, pexp_ref, wfin_ref, o_ref):
        f32 = jnp.float32
        ai = ai_ref[...]                                 # (tm, J*16) bf16
        bias = bias_ref[...].astype(f32)                 # (tm, J)    additive mask bias
        wl = wl_ref[...]                                 # (16, 4)    bf16, scale folded in
        # per-neighbor logits (linear in J)
        logits = []
        for j in range(J):
            a = ai[:, j * AT_TOT:(j + 1) * AT_TOT].astype(f32)
            a = jnp.where(a >= 0, a, ATTN_LEAKYRELU_SLOPE * a)          # LeakyReLU(0.1)
            l = jnp.dot(a.astype(MXU_DTYPE), wl, preferred_element_type=f32) + bias[:, j:j + 1]
            logits.append(l)                             # (tm, HT)
        mx = logits[0]
        for l in logits[1:]:
            mx = jnp.maximum(mx, l)
        # softmax over neighbors + unnormalized weighted sum of values
        pexp = pexp_ref[...]                             # (HT, VT) 0/1 head->slab expansion
        v = v_ref[...]                                   # (tm, J*VT) bf16
        tm = ai.shape[0]
        denom = jnp.zeros((tm, HT), f32)
        acc = jnp.zeros((tm, VT), f32)
        for j in range(J):
            e = jnp.exp(logits[j] - mx)                  # (tm, HT)
            denom = denom + e
            w_full = jnp.dot(e, pexp, preferred_element_type=f32)       # (tm, VT)
            acc = acc + w_full * v[:, j * VT:(j + 1) * VT].astype(f32)
        inv = pl.reciprocal(denom, approx=True)          # (tm, HT)
        scale = jnp.dot(inv, pexp, preferred_element_type=f32) * \
                jnp.dot(g_ref[...].astype(f32), pexp, preferred_element_type=f32)   # norm * head gates
        out = acc * scale                                # (tm, VT)
        # fused final to_out projection (both degrees, block-diag)
        o_ref[...] = jnp.dot(out.astype(MXU_DTYPE), wfin_ref[...], preferred_element_type=f32)
    return kernel


# ----------------------------------------------------------------------------------------
# plain-JAX glue mirroring the module structure
# ----------------------------------------------------------------------------------------
def norm_forward(features, transforms, eps=1e-12):
    out = {}
    for deg, t in features.items():
        dim = t.shape[-2]
        l2 = jnp.sqrt(jnp.sum(jnp.square(t), axis=-1, keepdims=True))
        rms = jnp.sqrt(jnp.sum(jnp.square(l2), axis=-2, keepdims=True)) * dim ** (-0.5)
        out[deg] = t / jnp.maximum(rms, eps) * transforms[deg]
    return out


def mlp_attention_forward(params, features, edge_info, rel_dist, basis, D, mask=None):
    # TODO(synk): non-empty spherical-harmonic `basis` DTP branch not implemented (basis == {} here).
    neighbor_indices, neighbor_mask, _ = edge_info
    b, n, k = neighbor_indices.shape
    J = k + 1                       # attend_self=True adds an always-valid "self" neighbor slot
    T = b * n
    R2 = b * n * k
    R3 = b * n * J
    dtp_p = params['dtp']
    f32 = jnp.float32

    feats = norm_forward(features, params['prenorm'])
    f0 = feats[0].reshape(T, FIBER[0])             # (b,n,32,1) -> (T, 32)
    f1 = feats[1].reshape(T, FIBER[1] * 3)         # (b,n,8,3)  -> (T, 24)   (m folded into lanes)

    # ---- 1) fused node bundle: to_xi / to_xj / self_interact (both degrees) + head-gate linear ----
    d0, i0 = FIBER[0], INTERMEDIATE_FIBER[0]
    d1m, i1m = FIBER[1] * 3, INTERMEDIATE_FIBER[1] * 3
    w_deg0 = jnp.concatenate(
        [dtp_p['to_xi'][0], dtp_p['to_xj'][0], dtp_p['self_interact'][0], params['gate_w']], axis=1)
    w_deg1 = jnp.concatenate(
        [_expand_weight_m(dtp_p['to_xi'][1], 3),
         _expand_weight_m(dtp_p['to_xj'][1], 3),
         _expand_weight_m(dtp_p['self_interact'][1], 3)], axis=1)
    w_node = _block_diag([w_deg0, w_deg1])                                   # (56, 180)
    y = pallas_matmul(jnp.concatenate([f0, f1], axis=-1), w_node)

    o = 0
    xi0 = y[:, o:o + d0]; o += d0
    xj0 = y[:, o:o + d0]; o += d0
    self0 = y[:, o:o + i0]; o += i0
    gate_lin = y[:, o:o + HT]; o += HT
    xi1 = y[:, o:o + d1m]; o += d1m
    xj1 = y[:, o:o + d1m]; o += d1m
    self1 = y[:, o:o + i1m]
    head_gates = jax.nn.sigmoid(gate_lin + params['gate_b'][None, :])        # (T, 4)

    # ---- 2) neighbor gather (XLA) + fused edge kernel ----
    # TODO(synk): the neighbor gather could itself become a Pallas PrefetchScalarGridSpec kernel.
    idx_b = jnp.arange(b)[:, None, None]
    gj0 = xj0.reshape(b, n, d0)[idx_b, neighbor_indices]                     # (b,n,k,32)
    gj1 = xj1.reshape(b, n, d1m)[idx_b, neighbor_indices]                    # (b,n,k,24)
    x0_e = (gj0 + xi0.reshape(b, n, 1, d0)).reshape(R2, d0)
    x1_e = (gj1 + xi1.reshape(b, n, 1, d1m)).reshape(R2, d1m)
    d_e = D[1].reshape(R2, 9).astype(f32)
    feat_e = rel_dist.reshape(R2, rel_dist.shape[-1]).astype(f32)

    w1r, b1r, g1r, avgr, w2r, b2r, g2r, w3r, b3r = _fused_radial_weights(dtp_p['radial'])
    wo0 = dtp_p['to_out'][0].astype(MXU_DTYPE)
    wo1 = _expand_weight_m(dtp_p['to_out'][1], 3).astype(MXU_DTYPE)
    edge_consts = [w1r, b1r, g1r, avgr, w2r.astype(MXU_DTYPE), b2r, g2r,
                   w3r.astype(MXU_DTYPE), b3r,
                   EROT, EDI, SX1, X_EXP.astype(MXU_DTYPE), S_BIG.astype(MXU_DTYPE),
                   EDO, SO1, wo0, wo1]
    y2 = _call_rowwise(_edge_kernel, [feat_e, x0_e, x1_e, d_e], edge_consts,
                       CTR_OUT, MXU_DTYPE, cap=EDGE_ROW_TILE_CAP)            # (R2, 64) bf16

    nbr0 = y2[:, :i0].reshape(b, n, k, i0)
    nbr1 = y2[:, i0:].reshape(b, n, k, i1m)
    inter0 = jnp.concatenate([self0.astype(MXU_DTYPE).reshape(b, n, 1, i0), nbr0], axis=2)   # (b,n,J,40)
    inter1 = jnp.concatenate([self1.astype(MXU_DTYPE).reshape(b, n, 1, i1m), nbr1], axis=2)  # (b,n,J,24)

    # ---- 3) Gate + value Linear (fused kernel) ----
    vk_in = jnp.concatenate([inter0[..., AT_TOT:], inter1], axis=-1).reshape(R3, 48)
    w_val = _block_diag([params['value_linear'][0],
                         _expand_weight_m(params['value_linear'][1], 3)]).astype(MXU_DTYPE)  # (40,40)
    v_rows = _call_rowwise(_value_kernel, [vk_in.astype(MXU_DTYPE)], [E_GATE, w_val],
                           VT, MXU_DTYPE, cap=ROW_TILE_CAP)                  # (R3, 40) bf16

    # ---- 4) fused attention (+ head gates + final to_out) ----
    ai_flat = inter0[..., :AT_TOT].reshape(T, J * AT_TOT)                    # (T, J*16) bf16
    v_flat = v_rows.reshape(T, J * VT)                                       # (T, J*40) bf16
    nmask = jnp.pad(neighbor_mask, ((0, 0), (0, 0), (1, 0)), constant_values=True)
    bias = jnp.where(nmask, 0.0, NEG_BIAS).astype(MXU_DTYPE).reshape(T, J)   # additive mask bias
    w01 = _block_diag([params['attn_logit_w'][0] * SCALES[0],
                       params['attn_logit_w'][1] * SCALES[1]]).astype(MXU_DTYPE)            # (16, 4)
    w_final = _block_diag([params['to_out'][0],
                           _expand_weight_m(params['to_out'][1], 3)]).astype(MXU_DTYPE)     # (40, 56)
    att = _call_rowwise(_make_attend_kernel(J),
                        [ai_flat, bias, v_flat, head_gates.astype(MXU_DTYPE)],
                        [w01, P_EXP, w_final],
                        FIBER[0] + FIBER[1] * 3, jnp.float32, cap=ROW_TILE_CAP)             # (T, 56)

    out0 = att[:, :FIBER[0]].reshape(b, n, FIBER[0], 1)
    out1 = att[:, FIBER[0]:].reshape(b, n, FIBER[1], 3)
    return {0: out0, 1: out1}


# ----------------------------------------------------------------------------------------
# deterministic parameter init (shapes per MLPAttention.__init__ for the chosen config)
# ----------------------------------------------------------------------------------------
def init_params(key):
    keys = iter(jax.random.split(key, 128))

    def lin_w(din, dout):
        return jax.random.normal(next(keys), (din, dout), jnp.float32) / math.sqrt(din)

    def small(shape):
        return jax.random.normal(next(keys), shape, jnp.float32) * 0.1

    p = {}
    p['prenorm'] = {d: jnp.ones((dim, 1), jnp.float32) for d, dim in enumerate(FIBER)}

    dtp = {}
    dtp['to_xi'] = {d: lin_w(dim, dim) for d, dim in enumerate(FIBER)}
    dtp['to_xj'] = {d: lin_w(dim, dim) for d, dim in enumerate(FIBER)}
    radial = {}
    H = RADIAL_HIDDEN_DIM
    for dout, dim_out in enumerate(INTERMEDIATE_FIBER):
        split_dims = split_num_into_groups(dim_out, NUM_DEGREES)
        for din, (dim_in, nc_out) in enumerate(zip(FIBER, split_dims)):
            radial[(din, dout)] = dict(
                nc_in=dim_in, nc_out=nc_out,
                w1=lin_w(1, H), b1=small((1, H)), g1=jnp.ones((1, H), jnp.float32),
                w2=lin_w(H, H), b2=small((1, H)), g2=jnp.ones((1, H), jnp.float32),
                w3=lin_w(H, nc_out * dim_in), b3=small((1, nc_out * dim_in)))
    dtp['radial'] = radial
    dtp['self_interact'] = {d: lin_w(FIBER[d], INTERMEDIATE_FIBER[d]) for d in range(NUM_DEGREES)}
    dtp['to_out'] = {d: lin_w(INTERMEDIATE_FIBER[d], INTERMEDIATE_FIBER[d]) for d in range(NUM_DEGREES)}
    p['dtp'] = dtp

    p['attn_logit_w'] = [lin_w(a, h) for a, h in zip(ATTN_HIDDEN_DIMS, HEADS)]
    p['value_linear'] = {d: lin_w(VALUE_HIDDEN_FIBER[d], VALUE_HIDDEN_FIBER[d]) for d in range(NUM_DEGREES)}
    p['gate_w'] = lin_w(FIBER[0], HT)
    p['gate_b'] = small((HT,))
    # init_out_zero=False here so the demo produces a non-trivial output
    p['to_out'] = {d: lin_w(HIDDEN_FIBER[d], FIBER[d]) for d in range(NUM_DEGREES)}
    return p


# ----------------------------------------------------------------------------------------
if __name__ == "__main__":
    key = jax.random.PRNGKey(0)
    kp, kf0, kf1, ki, km, kd, kD = jax.random.split(key, 7)

    b, n, k = 2, 8, 4   # batch, nodes, neighbors

    params = init_params(kp)
    features = {
        0: jax.random.normal(kf0, (b, n, FIBER[0], 1), jnp.float32),
        1: jax.random.normal(kf1, (b, n, FIBER[1], 3), jnp.float32),
    }
    neighbor_indices = jax.random.randint(ki, (b, n, k), 0, n)
    neighbor_mask = jax.random.bernoulli(km, 0.8, (b, n, k))
    rel_dist = jax.random.uniform(kd, (b, n, k, 1), jnp.float32)
    D = {1: jax.random.normal(kD, (b, n, k, 3, 3), jnp.float32)}   # degree-1 rotation matrices
    basis = {}                                                     # empty -> simple DTP branch
    edge_info = (neighbor_indices, neighbor_mask, None)

    fwd = jax.jit(mlp_attention_forward)
    out = fwd(params, features, edge_info, rel_dist, basis, D)
    jax.block_until_ready(out[0])
    jax.block_until_ready(out[1])

    assert out[0].shape == (b, n, FIBER[0], 1), out[0].shape
    assert out[1].shape == (b, n, FIBER[1], 3), out[1].shape
    assert jnp.all(jnp.isfinite(out[0])) and jnp.all(jnp.isfinite(out[1]))

    print("KERNEL_OK")
</pallas_src>

<mosaic_0001>
module attributes {stable_mosaic.version = 11 : i64} {
  func.func @_matmul_kernel(%arg0: i32, %arg1: memref<16x56xbf16, #tpu.memory_space<vmem>>, %arg2: memref<56x180xbf16, #tpu.memory_space<vmem>>, %arg3: memref<16x180xf32, #tpu.memory_space<vmem>>) attributes {dimension_semantics = [#tpu.dimension_semantics<parallel>], iteration_bounds = array<i64: 1>, scalar_prefetch = 0 : i64, scratch_operands = 0 : i64, tpu.core_type = #tpu.core_type<tc>, window_params = [{transform_indices = @transform_0, window_bounds = array<i64: 16, 56>}, {pipeline_mode = #tpu.pipeline_mode<synchronous>, transform_indices = @transform_1, window_bounds = array<i64: 56, 180>}, {transform_indices = @transform_2, window_bounds = array<i64: 16, 180>}]} {
    %c0 = arith.constant 0 : index
    %c0_0 = arith.constant 0 : index
    %0 = vector.load %arg1[%c0, %c0_0] : memref<16x56xbf16, #tpu.memory_space<vmem>>, vector<16x56xbf16>
    %c0_1 = arith.constant 0 : index
    %c0_2 = arith.constant 0 : index
    %1 = vector.load %arg2[%c0_1, %c0_2] : memref<56x180xbf16, #tpu.memory_space<vmem>>, vector<56x180xbf16>
    %cst = arith.constant dense<0.000000e+00> : vector<16x180xf32>
    %2 = tpu.matmul %0, %1, %cst {dimension_numbers = #tpu.dot_dimension_numbers<[1], [0], [0], [1], [0, 0, 1, 1], [], []>} : vector<16x56xbf16>, vector<56x180xbf16>, vector<16x180xf32> -> vector<16x180xf32>
    %c0_3 = arith.constant 0 : index
    %c0_4 = arith.constant 0 : index
    %3 = vector.load %arg3[%c0_3, %c0_4] : memref<16x180xf32, #tpu.memory_space<vmem>>, vector<16x180xf32>
    tpu.vector_store %arg3[%c0_3, %c0_4], %2 {strides = array<i32>} : memref<16x180xf32, #tpu.memory_space<vmem>>, vector<16x180xf32>,
    return
  }
  func.func @transform_0(%arg0: i32) -> (i32, i32) {
    %c0_i32 = arith.constant 0 : i32
    %c0_i32_0 = arith.constant 0 : i32
    return %arg0, %c0_i32 : i32, i32
  }
  func.func @transform_1(%arg0: i32) -> (i32, i32) {
    %c0_i32 = arith.constant 0 : i32
    %c0_i32_0 = arith.constant 0 : i32
    %c0_i32_1 = arith.constant 0 : i32
    return %c0_i32, %c0_i32_0 : i32, i32
  }
  func.func @transform_2(%arg0: i32) -> (i32, i32) {
    %c0_i32 = arith.constant 0 : i32
    %c0_i32_0 = arith.constant 0 : i32
    return %arg0, %c0_i32 : i32, i32
  }
}

module attributes {stable_mosaic.version = 11 : i64} {
  func.func @_edge_kernel(%arg0: i32, %arg1: memref<32x1xf32, #tpu.memory_space<vmem>>, %arg2: memref<32x32xf32, #tpu.memory_space<vmem>>, %arg3: memref<32x24xf32, #tpu.memory_space<vmem>>, %arg4: memref<32x9xf32, #tpu.memory_space<vmem>>, %arg5: memref<1x64xf32, #tpu.memory_space<vmem>>, %arg6: memref<1x64xf32, #tpu.memory_space<vmem>>, %arg7: memref<1x64xf32, #tpu.memory_space<vmem>>, %arg8: memref<64x64xf32, #tpu.memory_space<vmem>>, %arg9: memref<64x64xbf16, #tpu.memory_space<vmem>>, %arg10: memref<1x64xf32, #tpu.memory_space<vmem>>, %arg11: memref<1x64xf32, #tpu.memory_space<vmem>>, %arg12: memref<64x1024xbf16, #tpu.memory_space<vmem>>, %arg13: memref<1x1024xf32, #tpu.memory_space<vmem>>, %arg14: memref<24x72xf32, #tpu.memory_space<vmem>>, %arg15: memref<9x72xf32, #tpu.memory_space<vmem>>, %arg16: memref<72x24xf32, #tpu.memory_space<vmem>>, %arg17: memref<56x1024xbf16, #tpu.memory_space<vmem>>, %arg18: memref<1024x64xbf16, #tpu.memory_space<vmem>>, %arg19: memref<9x72xf32, #tpu.memory_space<vmem>>, %arg20: memref<72x24xf32, #tpu.memory_space<vmem>>, %arg21: memref<40x40xbf16, #tpu.memory_space<vmem>>, %arg22: memref<24x24xbf16, #tpu.memory_space<vmem>>, %arg23: memref<32x64xbf16, #tpu.memory_space<vmem>>) attributes {dimension_semantics = [#tpu.dimension_semantics<parallel>], iteration_bounds = array<i64: 2>, scalar_prefetch = 0 : i64, scratch_operands = 0 : i64, tpu.core_type = #tpu.core_type<tc>, window_params = [{transform_indices = @transform_0, window_bounds = array<i64: 32, 1>}, {transform_indices = @transform_1, window_bounds = array<i64: 32, 32>}, {transform_indices = @transform_2, window_bounds = array<i64: 32, 24>}, {transform_indices = @transform_3, window_bounds = array<i64: 32, 9>}, {pipeline_mode = #tpu.pipeline_mode<synchronous>, transform_indices = @transform_4, window_bounds = array<i64: 1, 64>}, {pipeline_mode = #tpu.pipeline_mode<synchronous>, transform_indices = @transform_5, window_bounds = array<i64: 1, 64>}, {pipeline_mode = #tpu.pipeline_mode<synchronous>, transform_indices = @transform_6, window_bounds = array<i64: 1, 64>}, {pipeline_mode = #tpu.pipeline_mode<synchronous>, transform_indices = @transform_7, window_bounds = array<i64: 64, 64>}, {pipeline_mode = #tpu.pipeline_mode<synchronous>, transform_indices = @transform_8, window_bounds = array<i64: 64, 64>}, {pipeline_mode = #tpu.pipeline_mode<synchronous>, transform_indices = @transform_9, window_bounds = array<i64: 1, 64>}, {pipeline_mode = #tpu.pipeline_mode<synchronous>, transform_indices = @transform_10, window_bounds = array<i64: 1, 64>}, {pipeline_mode = #tpu.pipeline_mode<synchronous>, transform_indices = @transform_11, window_bounds = array<i64: 64, 1024>}, {pipeline_mode = #tpu.pipeline_mode<synchronous>, transform_indices = @transform_12, window_bounds = array<i64: 1, 1024>}, {pipeline_mode = #tpu.pipeline_mode<synchronous>, transform_indices = @transform_13, window_bounds = array<i64: 24, 72>}, {pipeline_mode = #tpu.pipeline_mode<synchronous>, transform_indices = @transform_14, window_bounds = array<i64: 9, 72>}, {pipeline_mode = #tpu.pipeline_mode<synchronous>, transform_indices = @transform_15, window_bounds = array<i64: 72, 24>}, {pipeline_mode = #tpu.pipeline_mode<synchronous>, transform_indices = @transform_16, window_bounds = array<i64: 56, 1024>}, {pipeline_mode = #tpu.pipeline_mode<synchronous>, transform_indices = @transform_17, window_bounds = array<i64: 1024, 64>}, {pipeline_mode = #tpu.pipeline_mode<synchronous>, transform_indices = @transform_18, window_bounds = array<i64: 9, 72>}, {pipeline_mode = #tpu.pipeline_mode<synchronous>, transform_indices = @transform_19, window_bounds = array<i64: 72, 24>}, {pipeline_mode = #tpu.pipeline_mode<synchronous>, transform_indices = @transform_20, window_bounds = array<i64: 40, 40>}, {pipeline_mode = #tpu.pipeline_mode<synchronous>, transform_indices = @transform_21, window_bounds = array<i64: 24, 24>}, {transform_indices = @transform_22, window_bounds = array<i64: 32, 64>}]} {
    %c0 = arith.constant 0 : index
    %c0_0 = arith.constant 0 : index
    %0 = vector.load %arg8[%c0, %c0_0] : memref<64x64xf32, #tpu.memory_space<vmem>>, vector<64x64xf32>
    %c0_1 = arith.constant 0 : index
    %c0_2 = arith.constant 0 : index
    %1 = vector.load %arg1[%c0_1, %c0_2] : memref<32x1xf32, #tpu.memory_space<vmem>>, vector<32x1xf32>
    %c0_3 = arith.constant 0 : index
    %c0_4 = arith.constant 0 : index
    %2 = vector.load %arg5[%c0_3, %c0_4] : memref<1x64xf32, #tpu.memory_space<vmem>>, vector<1x64xf32>
    %3 = vector.broadcast %1 : vector<32x1xf32> to vector<32x64xf32>
    %4 = vector.broadcast %2 : vector<1x64xf32> to vector<32x64xf32>
    %5 = arith.mulf %3, %4 : vector<32x64xf32>
    %c0_5 = arith.constant 0 : index
    %c0_6 = arith.constant 0 : index
    %6 = vector.load %arg6[%c0_5, %c0_6] : memref<1x64xf32, #tpu.memory_space<vmem>>, vector<1x64xf32>
    %7 = vector.broadcast %6 : vector<1x64xf32> to vector<32x64xf32>
    %8 = arith.addf %5, %7 : vector<32x64xf32>
    %9 = arith.negf %8 : vector<32x64xf32>
    %10 = math.exp %9 : vector<32x64xf32>
    %cst = arith.constant 1.000000e+00 : f32
    %11 = vector.broadcast %cst : f32 to vector<32x64xf32>
    %12 = arith.addf %11, %10 : vector<32x64xf32>
    %13 = arith.divf %11, %12 : vector<32x64xf32>
    %14 = arith.mulf %8, %13 : vector<32x64xf32>
    %c0_7 = arith.constant 0 : index
    %c0_8 = arith.constant 0 : index
    %15 = vector.load %arg7[%c0_7, %c0_8] : memref<1x64xf32, #tpu.memory_space<vmem>>, vector<1x64xf32>
    %cst_9 = arith.constant dense<0.000000e+00> : vector<32x64xf32>
    %16 = tpu.matmul %14, %0, %cst_9 {dimension_numbers = #tpu.dot_dimension_numbers<[1], [0], [0], [1], [0, 0, 1, 1], [], []>} : vector<32x64xf32>, vector<64x64xf32>, vector<32x64xf32> -> vector<32x64xf32>
    %17 = arith.subf %14, %16 : vector<32x64xf32>
    %18 = arith.mulf %17, %17 : vector<32x64xf32>
    %cst_10 = arith.constant dense<0.000000e+00> : vector<32x64xf32>
    %19 = tpu.matmul %18, %0, %cst_10 {dimension_numbers = #tpu.dot_dimension_numbers<[1], [0], [0], [1], [0, 0, 1, 1], [], []>} : vector<32x64xf32>, vector<64x64xf32>, vector<32x64xf32> -> vector<32x64xf32>
    %20 = arith.subf %14, %16 : vector<32x64xf32>
    %cst_11 = arith.constant 9.99999974E-6 : f32
    %21 = vector.broadcast %cst_11 : f32 to vector<32x64xf32>
    %22 = arith.addf %19, %21 : vector<32x64xf32>
    %23 = math.rsqrt %22 : vector<32x64xf32>
    %24 = arith.mulf %20, %23 : vector<32x64xf32>
    %25 = vector.broadcast %15 : vector<1x64xf32> to vector<32x64xf32>
    %26 = arith.mulf %24, %25 : vector<32x64xf32>
    %27 = arith.truncf %26 : vector<32x64xf32> to vector<32x64xbf16>
    %c0_12 = arith.constant 0 : index
    %c0_13 = arith.constant 0 : index
    %28 = vector.load %arg9[%c0_12, %c0_13] : memref<64x64xbf16, #tpu.memory_space<vmem>>, vector<64x64xbf16>
    %cst_14 = arith.constant dense<0.000000e+00> : vector<32x64xf32>
    %29 = tpu.matmul %27, %28, %cst_14 {dimension_numbers = #tpu.dot_dimension_numbers<[1], [0], [0], [1], [0, 0, 1, 1], [], []>} : vector<32x64xbf16>, vector<64x64xbf16>, vector<32x64xf32> -> vector<32x64xf32>
    %c0_15 = arith.constant 0 : index
    %c0_16 = arith.constant 0 : index
    %30 = vector.load %arg10[%c0_15, %c0_16] : memref<1x64xf32, #tpu.memory_space<vmem>>, vector<1x64xf32>
    %31 = vector.broadcast %30 : vector<1x64xf32> to vector<32x64xf32>
    %32 = arith.addf %29, %31 : vector<32x64xf32>
    %33 = arith.negf %32 : vector<32x64xf32>
    %34 = math.exp %33 : vector<32x64xf32>
    %cst_17 = arith.constant 1.000000e+00 : f32
    %35 = vector.broadcast %cst_17 : f32 to vector<32x64xf32>
    %36 = arith.addf %35, %34 : vector<32x64xf32>
    %37 = arith.divf %35, %36 : vector<32x64xf32>
    %38 = arith.mulf %32, %37 : vector<32x64xf32>
    %c0_18 = arith.constant 0 : index
    %c0_19 = arith.constant 0 : index
    %39 = vector.load %arg11[%c0_18, %c0_19] : memref<1x64xf32, #tpu.memory_space<vmem>>, vector<1x64xf32>
    %cst_20 = arith.constant dense<0.000000e+00> : vector<32x64xf32>
    %40 = tpu.matmul %38, %0, %cst_20 {dimension_numbers = #tpu.dot_dimension_numbers<[1], [0], [0], [1], [0, 0, 1, 1], [], []>} : vector<32x64xf32>, vector<64x64xf32>, vector<32x64xf32> -> vector<32x64xf32>
    %41 = arith.subf %38, %40 : vector<32x64xf32>
    %42 = arith.mulf %41, %41 : vector<32x64xf32>
    %cst_21 = arith.constant dense<0.000000e+00> : vector<32x64xf32>
    %43 = tpu.matmul %42, %0, %cst_21 {dimension_numbers = #tpu.dot_dimension_numbers<[1], [0], [0], [1], [0, 0, 1, 1], [], []>} : vector<32x64xf32>, vector<64x64xf32>, vector<32x64xf32> -> vector<32x64xf32>
    %44 = arith.subf %38, %40 : vector<32x64xf32>
    %cst_22 = arith.constant 9.99999974E-6 : f32
    %45 = vector.broadcast %cst_22 : f32 to vector<32x64xf32>
    %46 = arith.addf %43, %45 : vector<32x64xf32>
    %47 = math.rsqrt %46 : vector<32x64xf32>
    %48 = arith.mulf %44, %47 : vector<32x64xf32>
    %49 = vector.broadcast %39 : vector<1x64xf32> to vector<32x64xf32>
    %50 = arith.mulf %48, %49 : vector<32x64xf32>
    %51 = arith.truncf %50 : vector<32x64xf32> to vector<32x64xbf16>
    %c0_23 = arith.constant 0 : index
    %c0_24 = arith.constant 0 : index
    %52 = vector.load %arg12[%c0_23, %c0_24] : memref<64x1024xbf16, #tpu.memory_space<vmem>>, vector<64x1024xbf16>
    %cst_25 = arith.constant dense<0.000000e+00> : vector<32x1024xf32>
    %53 = tpu.matmul %51, %52, %cst_25 {dimension_numbers = #tpu.dot_dimension_numbers<[1], [0], [0], [1], [0, 0, 1, 1], [], []>} : vector<32x64xbf16>, vector<64x1024xbf16>, vector<32x1024xf32> -> vector<32x1024xf32>
    %c0_26 = arith.constant 0 : index
    %c0_27 = arith.constant 0 : index
    %54 = vector.load %arg13[%c0_26, %c0_27] : memref<1x1024xf32, #tpu.memory_space<vmem>>, vector<1x1024xf32>
    %55 = vector.broadcast %54 : vector<1x1024xf32> to vector<32x1024xf32>
    %56 = arith.addf %53, %55 : vector<32x1024xf32>
    %c0_28 = arith.constant 0 : index
    %c0_29 = arith.constant 0 : index
    %57 = vector.load %arg3[%c0_28, %c0_29] : memref<32x24xf32, #tpu.memory_space<vmem>>, vector<32x24xf32>
    %c0_30 = arith.constant 0 : index
    %c0_31 = arith.constant 0 : index
    %58 = vector.load %arg4[%c0_30, %c0_31] : memref<32x9xf32, #tpu.memory_space<vmem>>, vector<32x9xf32>
    %c0_32 = arith.constant 0 : index
    %c0_33 = arith.constant 0 : index
    %59 = vector.load %arg14[%c0_32, %c0_33] : memref<24x72xf32, #tpu.memory_space<vmem>>, vector<24x72xf32>
    %cst_34 = arith.constant dense<0.000000e+00> : vector<32x72xf32>
    %60 = tpu.matmul %57, %59, %cst_34 {dimension_numbers = #tpu.dot_dimension_numbers<[1], [0], [0], [1], [0, 0, 1, 1], [], []>} : vector<32x24xf32>, vector<24x72xf32>, vector<32x72xf32> -> vector<32x72xf32>
    %c0_35 = arith.constant 0 : index
    %c0_36 = arith.constant 0 : index
    %61 = vector.load %arg15[%c0_35, %c0_36] : memref<9x72xf32, #tpu.memory_space<vmem>>, vector<9x72xf32>
    %cst_37 = arith.constant dense<0.000000e+00> : vector<32x72xf32>
    %62 = tpu.matmul %58, %61, %cst_37 {dimension_numbers = #tpu.dot_dimension_numbers<[1], [0], [0], [1], [0, 0, 1, 1], [], []>} : vector<32x9xf32>, vector<9x72xf32>, vector<32x72xf32> -> vector<32x72xf32>
    %63 = arith.mulf %60, %62 : vector<32x72xf32>
    %c0_38 = arith.constant 0 : index
    %c0_39 = arith.constant 0 : index
    %64 = vector.load %arg16[%c0_38, %c0_39] : memref<72x24xf32, #tpu.memory_space<vmem>>, vector<72x24xf32>
    %cst_40 = arith.constant dense<0.000000e+00> : vector<32x24xf32>
    %65 = tpu.matmul %63, %64, %cst_40 {dimension_numbers = #tpu.dot_dimension_numbers<[1], [0], [0], [1], [0, 0, 1, 1], [], []>} : vector<32x72xf32>, vector<72x24xf32>, vector<32x24xf32> -> vector<32x24xf32>
    %c0_41 = arith.constant 0 : index
    %c0_42 = arith.constant 0 : index
    %66 = vector.load %arg2[%c0_41, %c0_42] : memref<32x32xf32, #tpu.memory_space<vmem>>, vector<32x32xf32>
    %67 = tpu.concatenate %66, %65 in 1 : vector<32x32xf32>, vector<32x24xf32> -> vector<32x56xf32>
    %68 = arith.truncf %67 : vector<32x56xf32> to vector<32x56xbf16>
    %c0_43 = arith.constant 0 : index
    %c0_44 = arith.constant 0 : index
    %69 = vector.load %arg17[%c0_43, %c0_44] : memref<56x1024xbf16, #tpu.memory_space<vmem>>, vector<56x1024xbf16>
    %cst_45 = arith.constant dense<0.000000e+00> : vector<32x1024xf32>
    %70 = tpu.matmul %68, %69, %cst_45 {dimension_numbers = #tpu.dot_dimension_numbers<[1], [0], [0], [1], [0, 0, 1, 1], [], []>} : vector<32x56xbf16>, vector<56x1024xbf16>, vector<32x1024xf32> -> vector<32x1024xf32>
    %71 = arith.mulf %56, %70 : vector<32x1024xf32>
    %72 = arith.truncf %71 : vector<32x1024xf32> to vector<32x1024xbf16>
    %c0_46 = arith.constant 0 : index
    %c0_47 = arith.constant 0 : index
    %73 = vector.load %arg18[%c0_46, %c0_47] : memref<1024x64xbf16, #tpu.memory_space<vmem>>, vector<1024x64xbf16>
    %cst_48 = arith.constant dense<0.000000e+00> : vector<32x64xf32>
    %74 = tpu.matmul %72, %73, %cst_48 {dimension_numbers = #tpu.dot_dimension_numbers<[1], [0], [0], [1], [0, 0, 1, 1], [], []>} : vector<32x1024xbf16>, vector<1024x64xbf16>, vector<32x64xf32> -> vector<32x64xf32>
    %75 = vector.extract_strided_slice %74 {offsets = [0, 0], sizes = [32, 40], strides = [1, 1]} : vector<32x64xf32> to vector<32x40xf32>
    %76 = vector.extract_strided_slice %74 {offsets = [0, 40], sizes = [32, 24], strides = [1, 1]} : vector<32x64xf32> to vector<32x24xf32>
    %c0_49 = arith.constant 0 : index
    %c0_50 = arith.constant 0 : index
    %77 = vector.load %arg14[%c0_49, %c0_50] : memref<24x72xf32, #tpu.memory_space<vmem>>, vector<24x72xf32>
    %cst_51 = arith.constant dense<0.000000e+00> : vector<32x72xf32>
    %78 = tpu.matmul %76, %77, %cst_51 {dimension_numbers = #tpu.dot_dimension_numbers<[1], [0], [0], [1], [0, 0, 1, 1], [], []>} : vector<32x24xf32>, vector<24x72xf32>, vector<32x72xf32> -> vector<32x72xf32>
    %c0_52 = arith.constant 0 : index
    %c0_53 = arith.constant 0 : index
    %79 = vector.load %arg19[%c0_52, %c0_53] : memref<9x72xf32, #tpu.memory_space<vmem>>, vector<9x72xf32>
    %cst_54 = arith.constant dense<0.000000e+00> : vector<32x72xf32>
    %80 = tpu.matmul %58, %79, %cst_54 {dimension_numbers = #tpu.dot_dimension_numbers<[1], [0], [0], [1], [0, 0, 1, 1], [], []>} : vector<32x9xf32>, vector<9x72xf32>, vector<32x72xf32> -> vector<32x72xf32>
    %81 = arith.mulf %78, %80 : vector<32x72xf32>
    %c0_55 = arith.constant 0 : index
    %c0_56 = arith.constant 0 : index
    %82 = vector.load %arg20[%c0_55, %c0_56] : memref<72x24xf32, #tpu.memory_space<vmem>>, vector<72x24xf32>
    %cst_57 = arith.constant dense<0.000000e+00> : vector<32x24xf32>
    %83 = tpu.matmul %81, %82, %cst_57 {dimension_numbers = #tpu.dot_dimension_numbers<[1], [0], [0], [1], [0, 0, 1, 1], [], []>} : vector<32x72xf32>, vector<72x24xf32>, vector<32x24xf32> -> vector<32x24xf32>
    %84 = arith.truncf %75 : vector<32x40xf32> to vector<32x40xbf16>
    %c0_58 = arith.constant 0 : index
    %c0_59 = arith.constant 0 : index
    %85 = vector.load %arg21[%c0_58, %c0_59] : memref<40x40xbf16, #tpu.memory_space<vmem>>, vector<40x40xbf16>
    %cst_60 = arith.constant dense<0.000000e+00> : vector<32x40xf32>
    %86 = tpu.matmul %84, %85, %cst_60 {dimension_numbers = #tpu.dot_dimension_numbers<[1], [0], [0], [1], [0, 0, 1, 1], [], []>} : vector<32x40xbf16>, vector<40x40xbf16>, vector<32x40xf32> -> vector<32x40xf32>
    %87 = arith.truncf %83 : vector<32x24xf32> to vector<32x24xbf16>
    %c0_61 = arith.constant 0 : index
    %c0_62 = arith.constant 0 : index
    %88 = vector.load %arg22[%c0_61, %c0_62] : memref<24x24xbf16, #tpu.memory_space<vmem>>, vector<24x24xbf16>
    %cst_63 = arith.constant dense<0.000000e+00> : vector<32x24xf32>
    %89 = tpu.matmul %87, %88, %cst_63 {dimension_numbers = #tpu.dot_dimension_numbers<[1], [0], [0], [1], [0, 0, 1, 1], [], []>} : vector<32x24xbf16>, vector<24x24xbf16>, vector<32x24xf32> -> vector<32x24xf32>
    %90 = tpu.concatenate %86, %89 in 1 : vector<32x40xf32>, vector<32x24xf32> -> vector<32x64xf32>
    %91 = arith.truncf %90 : vector<32x64xf32> to vector<32x64xbf16>
    %c0_64 = arith.constant 0 : index
    %c0_65 = arith.constant 0 : index
    %92 = vector.load %arg23[%c0_64, %c0_65] : memref<32x64xbf16, #tpu.memory_space<vmem>>, vector<32x64xbf16>
    tpu.vector_store %arg23[%c0_64, %c0_65], %91 {strides = array<i32>} : memref<32x64xbf16, #tpu.memory_space<vmem>>, vector<32x64xbf16>,
    return
  }
  func.func @transform_0(%arg0: i32) -> (i32, i32) {
    %c0_i32 = arith.constant 0 : i32
    %c0_i32_0 = arith.constant 0 : i32
    return %arg0, %c0_i32 : i32, i32
  }
  func.func @transform_1(%arg0: i32) -> (i32, i32) {
    %c0_i32 = arith.constant 0 : i32
    %c0_i32_0 = arith.constant 0 : i32
    return %arg0, %c0_i32 : i32, i32
  }
  func.func @transform_2(%arg0: i32) -> (i32, i32) {
    %c0_i32 = arith.constant 0 : i32
    %c0_i32_0 = arith.constant 0 : i32
    return %arg0, %c0_i32 : i32, i32
  }
  func.func @transform_3(%arg0: i32) -> (i32, i32) {
    %c0_i32 = arith.constant 0 : i32
    %c0_i32_0 = arith.constant 0 : i32
    return %arg0, %c0_i32 : i32, i32
  }
  func.func @transform_4(%arg0: i32) -> (i32, i32) {
    %c0_i32 = arith.constant 0 : i32
    %c0_i32_0 = arith.constant 0 : i32
    %c0_i32_1 = arith.constant 0 : i32
    return %c0_i32, %c0_i32_0 : i32, i32
  }
  func.func @transform_5(%arg0: i32) -> (i32, i32) {
    %c0_i32 = arith.constant 0 : i32
    %c0_i32_0 = arith.constant 0 : i32
    %c0_i32_1 = arith.constant 0 : i32
    return %c0_i32, %c0_i32_0 : i32, i32
  }
  func.func @transform_6(%arg0: i32) -> (i32, i32) {
    %c0_i32 = arith.constant 0 : i32
    %c0_i32_0 = arith.constant 0 : i32
    %c0_i32_1 = arith.constant 0 : i32
    return %c0_i32, %c0_i32_0 : i32, i32
  }
  func.func @transform_7(%arg0: i32) -> (i32, i32) {
    %c0_i32 = arith.constant 0 : i32
    %c0_i32_0 = arith.constant 0 : i32
    %c0_i32_1 = arith.constant 0 : i32
    return %c0_i32, %c0_i32_0 : i32, i32
  }
  func.func @transform_8(%arg0: i32) -> (i32, i32) {
    %c0_i32 = arith.constant 0 : i32
    %c0_i32_0 = arith.constant 0 : i32
    %c0_i32_1 = arith.constant 0 : i32
    return %c0_i32, %c0_i32_0 : i32, i32
  }
  func.func @transform_9(%arg0: i32) -> (i32, i32) {
    %c0_i32 = arith.constant 0 : i32
    %c0_i32_0 = arith.constant 0 : i32
    %c0_i32_1 = arith.constant 0 : i32
    return %c0_i32, %c0_i32_0 : i32, i32
  }
  func.func @transform_10(%arg0: i32) -> (i32, i32) {
    %c0_i32 = arith.constant 0 : i32
    %c0_i32_0 = arith.constant 0 : i32
    %c0_i32_1 = arith.constant 0 : i32
    return %c0_i32, %c0_i32_0 : i32, i32
  }
  func.func @transform_11(%arg0: i32) -> (i32, i32) {
    %c0_i32 = arith.constant 0 : i32
    %c0_i32_0 = arith.constant 0 : i32
    %c0_i32_1 = arith.constant 0 : i32
    return %c0_i32, %c0_i32_0 : i32, i32
  }
  func.func @transform_12(%arg0: i32) -> (i32, i32) {
    %c0_i32 = arith.constant 0 : i32
    %c0_i32_0 = arith.constant 0 : i32
    %c0_i32_1 = arith.constant 0 : i32
    return %c0_i32, %c0_i32_0 : i32, i32
  }
  func.func @transform_13(%arg0: i32) -> (i32, i32) {
    %c0_i32 = arith.constant 0 : i32
    %c0_i32_0 = arith.constant 0 : i32
    %c0_i32_1 = arith.constant 0 : i32
    return %c0_i32, %c0_i32_0 : i32, i32
  }
  func.func @transform_14(%arg0: i32) -> (i32, i32) {
    %c0_i32 = arith.constant 0 : i32
    %c0_i32_0 = arith.constant 0 : i32
    %c0_i32_1 = arith.constant 0 : i32
    return %c0_i32, %c0_i32_0 : i32, i32
  }
  func.func @transform_15(%arg0: i32) -> (i32, i32) {
    %c0_i32 = arith.constant 0 : i32
    %c0_i32_0 = arith.constant 0 : i32
    %c0_i32_1 = arith.constant 0 : i32
    return %c0_i32, %c0_i32_0 : i32, i32
  }
  func.func @transform_16(%arg0: i32) -> (i32, i32) {
    %c0_i32 = arith.constant 0 : i32
    %c0_i32_0 = arith.constant 0 : i32
    %c0_i32_1 = arith.constant 0 : i32
    return %c0_i32, %c0_i32_0 : i32, i32
  }
  func.func @transform_17(%arg0: i32) -> (i32, i32) {
    %c0_i32 = arith.constant 0 : i32
    %c0_i32_0 = arith.constant 0 : i32
    %c0_i32_1 = arith.constant 0 : i32
    return %c0_i32, %c0_i32_0 : i32, i32
  }
  func.func @transform_18(%arg0: i32) -> (i32, i32) {
    %c0_i32 = arith.constant 0 : i32
    %c0_i32_0 = arith.constant 0 : i32
    %c0_i32_1 = arith.constant 0 : i32
    return %c0_i32, %c0_i32_0 : i32, i32
  }
  func.func @transform_19(%arg0: i32) -> (i32, i32) {
    %c0_i32 = arith.constant 0 : i32
    %c0_i32_0 = arith.constant 0 : i32
    %c0_i32_1 = arith.constant 0 : i32
    return %c0_i32, %c0_i32_0 : i32, i32
  }
  func.func @transform_20(%arg0: i32) -> (i32, i32) {
    %c0_i32 = arith.constant 0 : i32
    %c0_i32_0 = arith.constant 0 : i32
    %c0_i32_1 = arith.constant 0 : i32
    return %c0_i32, %c0_i32_0 : i32, i32
  }
  func.func @transform_21(%arg0: i32) -> (i32, i32) {
    %c0_i32 = arith.constant 0 : i32
    %c0_i32_0 = arith.constant 0 : i32
    %c0_i32_1 = arith.constant 0 : i32
    return %c0_i32, %c0_i32_0 : i32, i32
  }
  func.func @transform_22(%arg0: i32) -> (i32, i32) {
    %c0_i32 = arith.constant 0 : i32
    %c0_i32_0 = arith.constant 0 : i32
    return %arg0, %c0_i32 : i32, i32
  }
}

module attributes {stable_mosaic.version = 11 : i64} {
  func.func @_value_kernel(%arg0: i32, %arg1: memref<48x48xbf16, #tpu.memory_space<vmem>>, %arg2: memref<8x24xf32, #tpu.memory_space<vmem>>, %arg3: memref<40x40xbf16, #tpu.memory_space<vmem>>, %arg4: memref<48x40xbf16, #tpu.memory_space<vmem>>) attributes {dimension_semantics = [#tpu.dimension_semantics<parallel>], iteration_bounds = array<i64: 2>, scalar_prefetch = 0 : i64, scratch_operands = 0 : i64, tpu.core_type = #tpu.core_type<tc>, window_params = [{transform_indices = @transform_0, window_bounds = array<i64: 48, 48>}, {pipeline_mode = #tpu.pipeline_mode<synchronous>, transform_indices = @transform_1, window_bounds = array<i64: 8, 24>}, {pipeline_mode = #tpu.pipeline_mode<synchronous>, transform_indices = @transform_2, window_bounds = array<i64: 40, 40>}, {transform_indices = @transform_3, window_bounds = array<i64: 48, 40>}]} {
    %c0 = arith.constant 0 : index
    %c0_0 = arith.constant 0 : index
    %0 = vector.load %arg1[%c0, %c0_0] : memref<48x48xbf16, #tpu.memory_space<vmem>>, vector<48x48xbf16>
    %1 = arith.extf %0 : vector<48x48xbf16> to vector<48x48xf32>
    %2 = vector.extract_strided_slice %1 {offsets = [0, 0], sizes = [48, 8], strides = [1, 1]} : vector<48x48xf32> to vector<48x8xf32>
    %3 = arith.negf %2 : vector<48x8xf32>
    %4 = math.exp %3 : vector<48x8xf32>
    %cst = arith.constant 1.000000e+00 : f32
    %5 = vector.broadcast %cst : f32 to vector<48x8xf32>
    %6 = arith.addf %5, %4 : vector<48x8xf32>
    %7 = arith.divf %5, %6 : vector<48x8xf32>
    %8 = vector.extract_strided_slice %1 {offsets = [0, 8], sizes = [48, 16], strides = [1, 1]} : vector<48x48xf32> to vector<48x16xf32>
    %9 = arith.negf %8 : vector<48x16xf32>
    %10 = math.exp %9 : vector<48x16xf32>
    %cst_1 = arith.constant 1.000000e+00 : f32
    %11 = vector.broadcast %cst_1 : f32 to vector<48x16xf32>
    %12 = arith.addf %11, %10 : vector<48x16xf32>
    %13 = arith.divf %11, %12 : vector<48x16xf32>
    %14 = arith.mulf %8, %13 : vector<48x16xf32>
    %15 = vector.extract_strided_slice %1 {offsets = [0, 24], sizes = [48, 24], strides = [1, 1]} : vector<48x48xf32> to vector<48x24xf32>
    %c0_2 = arith.constant 0 : index
    %c0_3 = arith.constant 0 : index
    %16 = vector.load %arg2[%c0_2, %c0_3] : memref<8x24xf32, #tpu.memory_space<vmem>>, vector<8x24xf32>
    %cst_4 = arith.constant dense<0.000000e+00> : vector<48x24xf32>
    %17 = tpu.matmul %7, %16, %cst_4 {dimension_numbers = #tpu.dot_dimension_numbers<[1], [0], [0], [1], [0, 0, 1, 1], [], []>} : vector<48x8xf32>, vector<8x24xf32>, vector<48x24xf32> -> vector<48x24xf32>
    %18 = arith.mulf %15, %17 : vector<48x24xf32>
    %19 = tpu.concatenate %14, %18 in 1 : vector<48x16xf32>, vector<48x24xf32> -> vector<48x40xf32>
    %20 = arith.truncf %19 : vector<48x40xf32> to vector<48x40xbf16>
    %c0_5 = arith.constant 0 : index
    %c0_6 = arith.constant 0 : index
    %21 = vector.load %arg3[%c0_5, %c0_6] : memref<40x40xbf16, #tpu.memory_space<vmem>>, vector<40x40xbf16>
    %cst_7 = arith.constant dense<0.000000e+00> : vector<48x40xf32>
    %22 = tpu.matmul %20, %21, %cst_7 {dimension_numbers = #tpu.dot_dimension_numbers<[1], [0], [0], [1], [0, 0, 1, 1], [], []>} : vector<48x40xbf16>, vector<40x40xbf16>, vector<48x40xf32> -> vector<48x40xf32>
    %23 = arith.truncf %22 : vector<48x40xf32> to vector<48x40xbf16>
    %c0_8 = arith.constant 0 : index
    %c0_9 = arith.constant 0 : index
    %24 = vector.load %arg4[%c0_8, %c0_9] : memref<48x40xbf16, #tpu.memory_space<vmem>>, vector<48x40xbf16>
    tpu.vector_store %arg4[%c0_8, %c0_9], %23 {strides = array<i32>} : memref<48x40xbf16, #tpu.memory_space<vmem>>, vector<48x40xbf16>,
    return
  }
  func.func @transform_0(%arg0: i32) -> (i32, i32) {
    %c0_i32 = arith.constant 0 : i32
    %c0_i32_0 = arith.constant 0 : i32
    return %arg0, %c0_i32 : i32, i32
  }
  func.func @transform_1(%arg0: i32) -> (i32, i32) {
    %c0_i32 = arith.constant 0 : i32
    %c0_i32_0 = arith.constant 0 : i32
    %c0_i32_1 = arith.constant 0 : i32
    return %c0_i32, %c0_i32_0 : i32, i32
  }
  func.func @transform_2(%arg0: i32) -> (i32, i32) {
    %c0_i32 = arith.constant 0 : i32
    %c0_i32_0 = arith.constant 0 : i32
    %c0_i32_1 = arith.constant 0 : i32
    return %c0_i32, %c0_i32_0 : i32, i32
  }
  func.func @transform_3(%arg0: i32) -> (i32, i32) {
    %c0_i32 = arith.constant 0 : i32
    %c0_i32_0 = arith.constant 0 : i32
    return %arg0, %c0_i32 : i32, i32
  }
}

module attributes {stable_mosaic.version = 11 : i64} {
  func.func @kernel(%arg0: i32, %arg1: memref<16x80xbf16, #tpu.memory_space<vmem>>, %arg2: memref<16x5xbf16, #tpu.memory_space<vmem>>, %arg3: memref<16x200xbf16, #tpu.memory_space<vmem>>, %arg4: memref<16x4xbf16, #tpu.memory_space<vmem>>, %arg5: memref<16x4xbf16, #tpu.memory_space<vmem>>, %arg6: memref<4x40xf32, #tpu.memory_space<vmem>>, %arg7: memref<40x56xbf16, #tpu.memory_space<vmem>>, %arg8: memref<16x56xf32, #tpu.memory_space<vmem>>) attributes {dimension_semantics = [#tpu.dimension_semantics<parallel>], iteration_bounds = array<i64: 1>, scalar_prefetch = 0 : i64, scratch_operands = 0 : i64, tpu.core_type = #tpu.core_type<tc>, window_params = [{transform_indices = @transform_0, window_bounds = array<i64: 16, 80>}, {transform_indices = @transform_1, window_bounds = array<i64: 16, 5>}, {transform_indices = @transform_2, window_bounds = array<i64: 16, 200>}, {transform_indices = @transform_3, window_bounds = array<i64: 16, 4>}, {pipeline_mode = #tpu.pipeline_mode<synchronous>, transform_indices = @transform_4, window_bounds = array<i64: 16, 4>}, {pipeline_mode = #tpu.pipeline_mode<synchronous>, transform_indices = @transform_5, window_bounds = array<i64: 4, 40>}, {pipeline_mode = #tpu.pipeline_mode<synchronous>, transform_indices = @transform_6, window_bounds = array<i64: 40, 56>}, {transform_indices = @transform_7, window_bounds = array<i64: 16, 56>}]} {
    %c0 = arith.constant 0 : index
    %c0_0 = arith.constant 0 : index
    %0 = vector.load %arg1[%c0, %c0_0] : memref<16x80xbf16, #tpu.memory_space<vmem>>, vector<16x80xbf16>
    %c0_1 = arith.constant 0 : index
    %c0_2 = arith.constant 0 : index
    %1 = vector.load %arg2[%c0_1, %c0_2] : memref<16x5xbf16, #tpu.memory_space<vmem>>, vector<16x5xbf16>
    %2 = arith.extf %1 : vector<16x5xbf16> to vector<16x5xf32>
    %c0_3 = arith.constant 0 : index
    %c0_4 = arith.constant 0 : index
    %3 = vector.load %arg5[%c0_3, %c0_4] : memref<16x4xbf16, #tpu.memory_space<vmem>>, vector<16x4xbf16>
    %4 = vector.extract_strided_slice %0 {offsets = [0, 0], sizes = [16, 16], strides = [1, 1]} : vector<16x80xbf16> to vector<16x16xbf16>
    %5 = arith.extf %4 : vector<16x16xbf16> to vector<16x16xf32>
    %cst = arith.constant 0.000000e+00 : f32
    %6 = vector.broadcast %cst : f32 to vector<16x16xf32>
    %7 = arith.cmpf oge, %5, %6 : vector<16x16xf32>
    %cst_5 = arith.constant 1.000000e-01 : f32
    %8 = vector.broadcast %cst_5 : f32 to vector<16x16xf32>
    %9 = arith.mulf %8, %5 : vector<16x16xf32>
    %10 = arith.select %7, %5, %9 : vector<16x16xi1>, vector<16x16xf32>
    %11 = arith.truncf %10 : vector<16x16xf32> to vector<16x16xbf16>
    %cst_6 = arith.constant dense<0.000000e+00> : vector<16x4xf32>
    %12 = tpu.matmul %11, %3, %cst_6 {dimension_numbers = #tpu.dot_dimension_numbers<[1], [0], [0], [1], [0, 0, 1, 1], [], []>} : vector<16x16xbf16>, vector<16x4xbf16>, vector<16x4xf32> -> vector<16x4xf32>
    %13 = vector.extract_strided_slice %2 {offsets = [0, 0], sizes = [16, 1], strides = [1, 1]} : vector<16x5xf32> to vector<16x1xf32>
    %14 = vector.broadcast %13 : vector<16x1xf32> to vector<16x4xf32>
    %15 = arith.addf %12, %14 : vector<16x4xf32>
    %16 = vector.extract_strided_slice %0 {offsets = [0, 16], sizes = [16, 16], strides = [1, 1]} : vector<16x80xbf16> to vector<16x16xbf16>
    %17 = arith.extf %16 : vector<16x16xbf16> to vector<16x16xf32>
    %cst_7 = arith.constant 0.000000e+00 : f32
    %18 = vector.broadcast %cst_7 : f32 to vector<16x16xf32>
    %19 = arith.cmpf oge, %17, %18 : vector<16x16xf32>
    %cst_8 = arith.constant 1.000000e-01 : f32
    %20 = vector.broadcast %cst_8 : f32 to vector<16x16xf32>
    %21 = arith.mulf %20, %17 : vector<16x16xf32>
    %22 = arith.select %19, %17, %21 : vector<16x16xi1>, vector<16x16xf32>
    %23 = arith.truncf %22 : vector<16x16xf32> to vector<16x16xbf16>
    %cst_9 = arith.constant dense<0.000000e+00> : vector<16x4xf32>
    %24 = tpu.matmul %23, %3, %cst_9 {dimension_numbers = #tpu.dot_dimension_numbers<[1], [0], [0], [1], [0, 0, 1, 1], [], []>} : vector<16x16xbf16>, vector<16x4xbf16>, vector<16x4xf32> -> vector<16x4xf32>
    %25 = vector.extract_strided_slice %2 {offsets = [0, 1], sizes = [16, 1], strides = [1, 1]} : vector<16x5xf32> to vector<16x1xf32>
    %26 = vector.broadcast %25 : vector<16x1xf32> to vector<16x4xf32>
    %27 = arith.addf %24, %26 : vector<16x4xf32>
    %28 = vector.extract_strided_slice %0 {offsets = [0, 32], sizes = [16, 16], strides = [1, 1]} : vector<16x80xbf16> to vector<16x16xbf16>
    %29 = arith.extf %28 : vector<16x16xbf16> to vector<16x16xf32>
    %cst_10 = arith.constant 0.000000e+00 : f32
    %30 = vector.broadcast %cst_10 : f32 to vector<16x16xf32>
    %31 = arith.cmpf oge, %29, %30 : vector<16x16xf32>
    %cst_11 = arith.constant 1.000000e-01 : f32
    %32 = vector.broadcast %cst_11 : f32 to vector<16x16xf32>
    %33 = arith.mulf %32, %29 : vector<16x16xf32>
    %34 = arith.select %31, %29, %33 : vector<16x16xi1>, vector<16x16xf32>
    %35 = arith.truncf %34 : vector<16x16xf32> to vector<16x16xbf16>
    %cst_12 = arith.constant dense<0.000000e+00> : vector<16x4xf32>
    %36 = tpu.matmul %35, %3, %cst_12 {dimension_numbers = #tpu.dot_dimension_numbers<[1], [0], [0], [1], [0, 0, 1, 1], [], []>} : vector<16x16xbf16>, vector<16x4xbf16>, vector<16x4xf32> -> vector<16x4xf32>
    %37 = vector.extract_strided_slice %2 {offsets = [0, 2], sizes = [16, 1], strides = [1, 1]} : vector<16x5xf32> to vector<16x1xf32>
    %38 = vector.broadcast %37 : vector<16x1xf32> to vector<16x4xf32>
    %39 = arith.addf %36, %38 : vector<16x4xf32>
    %40 = vector.extract_strided_slice %0 {offsets = [0, 48], sizes = [16, 16], strides = [1, 1]} : vector<16x80xbf16> to vector<16x16xbf16>
    %41 = arith.extf %40 : vector<16x16xbf16> to vector<16x16xf32>
    %cst_13 = arith.constant 0.000000e+00 : f32
    %42 = vector.broadcast %cst_13 : f32 to vector<16x16xf32>
    %43 = arith.cmpf oge, %41, %42 : vector<16x16xf32>
    %cst_14 = arith.constant 1.000000e-01 : f32
    %44 = vector.broadcast %cst_14 : f32 to vector<16x16xf32>
    %45 = arith.mulf %44, %41 : vector<16x16xf32>
    %46 = arith.select %43, %41, %45 : vector<16x16xi1>, vector<16x16xf32>
    %47 = arith.truncf %46 : vector<16x16xf32> to vector<16x16xbf16>
    %cst_15 = arith.constant dense<0.000000e+00> : vector<16x4xf32>
    %48 = tpu.matmul %47, %3, %cst_15 {dimension_numbers = #tpu.dot_dimension_numbers<[1], [0], [0], [1], [0, 0, 1, 1], [], []>} : vector<16x16xbf16>, vector<16x4xbf16>, vector<16x4xf32> -> vector<16x4xf32>
    %49 = vector.extract_strided_slice %2 {offsets = [0, 3], sizes = [16, 1], strides = [1, 1]} : vector<16x5xf32> to vector<16x1xf32>
    %50 = vector.broadcast %49 : vector<16x1xf32> to vector<16x4xf32>
    %51 = arith.addf %48, %50 : vector<16x4xf32>
    %52 = vector.extract_strided_slice %0 {offsets = [0, 64], sizes = [16, 16], strides = [1, 1]} : vector<16x80xbf16> to vector<16x16xbf16>
    %53 = arith.extf %52 : vector<16x16xbf16> to vector<16x16xf32>
    %cst_16 = arith.constant 0.000000e+00 : f32
    %54 = vector.broadcast %cst_16 : f32 to vector<16x16xf32>
    %55 = arith.cmpf oge, %53, %54 : vector<16x16xf32>
    %cst_17 = arith.constant 1.000000e-01 : f32
    %56 = vector.broadcast %cst_17 : f32 to vector<16x16xf32>
    %57 = arith.mulf %56, %53 : vector<16x16xf32>
    %58 = arith.select %55, %53, %57 : vector<16x16xi1>, vector<16x16xf32>
    %59 = arith.truncf %58 : vector<16x16xf32> to vector<16x16xbf16>
    %cst_18 = arith.constant dense<0.000000e+00> : vector<16x4xf32>
    %60 = tpu.matmul %59, %3, %cst_18 {dimension_numbers = #tpu.dot_dimension_numbers<[1], [0], [0], [1], [0, 0, 1, 1], [], []>} : vector<16x16xbf16>, vector<16x4xbf16>, vector<16x4xf32> -> vector<16x4xf32>
    %61 = vector.extract_strided_slice %2 {offsets = [0, 4], sizes = [16, 1], strides = [1, 1]} : vector<16x5xf32> to vector<16x1xf32>
    %62 = vector.broadcast %61 : vector<16x1xf32> to vector<16x4xf32>
    %63 = arith.addf %60, %62 : vector<16x4xf32>
    %64 = arith.maximumf %15, %27 : vector<16x4xf32>
    %65 = arith.maximumf %64, %39 : vector<16x4xf32>
    %66 = arith.maximumf %65, %51 : vector<16x4xf32>
    %67 = arith.maximumf %66, %63 : vector<16x4xf32>
    %c0_19 = arith.constant 0 : index
    %c0_20 = arith.constant 0 : index
    %68 = vector.load %arg6[%c0_19, %c0_20] : memref<4x40xf32, #tpu.memory_space<vmem>>, vector<4x40xf32>
    %c0_21 = arith.constant 0 : index
    %c0_22 = arith.constant 0 : index
    %69 = vector.load %arg3[%c0_21, %c0_22] : memref<16x200xbf16, #tpu.memory_space<vmem>>, vector<16x200xbf16>
    %cst_23 = arith.constant 0.000000e+00 : f32
    %70 = vector.broadcast %cst_23 : f32 to vector<16x4xf32>
    %cst_24 = arith.constant 0.000000e+00 : f32
    %71 = vector.broadcast %cst_24 : f32 to vector<16x40xf32>
    %72 = arith.subf %15, %67 : vector<16x4xf32>
    %73 = math.exp %72 : vector<16x4xf32>
    %74 = arith.addf %70, %73 : vector<16x4xf32>
    %cst_25 = arith.constant dense<0.000000e+00> : vector<16x40xf32>
    %75 = tpu.matmul %73, %68, %cst_25 {dimension_numbers = #tpu.dot_dimension_numbers<[1], [0], [0], [1], [0, 0, 1, 1], [], []>} : vector<16x4xf32>, vector<4x40xf32>, vector<16x40xf32> -> vector<16x40xf32>
    %76 = vector.extract_strided_slice %69 {offsets = [0, 0], sizes = [16, 40], strides = [1, 1]} : vector<16x200xbf16> to vector<16x40xbf16>
    %77 = arith.extf %76 : vector<16x40xbf16> to vector<16x40xf32>
    %78 = arith.mulf %75, %77 : vector<16x40xf32>
    %79 = arith.addf %71, %78 : vector<16x40xf32>
    %80 = arith.subf %27, %67 : vector<16x4xf32>
    %81 = math.exp %80 : vector<16x4xf32>
    %82 = arith.addf %74, %81 : vector<16x4xf32>
    %cst_26 = arith.constant dense<0.000000e+00> : vector<16x40xf32>
    %83 = tpu.matmul %81, %68, %cst_26 {dimension_numbers = #tpu.dot_dimension_numbers<[1], [0], [0], [1], [0, 0, 1, 1], [], []>} : vector<16x4xf32>, vector<4x40xf32>, vector<16x40xf32> -> vector<16x40xf32>
    %84 = vector.extract_strided_slice %69 {offsets = [0, 40], sizes = [16, 40], strides = [1, 1]} : vector<16x200xbf16> to vector<16x40xbf16>
    %85 = arith.extf %84 : vector<16x40xbf16> to vector<16x40xf32>
    %86 = arith.mulf %83, %85 : vector<16x40xf32>
    %87 = arith.addf %79, %86 : vector<16x40xf32>
    %88 = arith.subf %39, %67 : vector<16x4xf32>
    %89 = math.exp %88 : vector<16x4xf32>
    %90 = arith.addf %82, %89 : vector<16x4xf32>
    %cst_27 = arith.constant dense<0.000000e+00> : vector<16x40xf32>
    %91 = tpu.matmul %89, %68, %cst_27 {dimension_numbers = #tpu.dot_dimension_numbers<[1], [0], [0], [1], [0, 0, 1, 1], [], []>} : vector<16x4xf32>, vector<4x40xf32>, vector<16x40xf32> -> vector<16x40xf32>
    %92 = vector.extract_strided_slice %69 {offsets = [0, 80], sizes = [16, 40], strides = [1, 1]} : vector<16x200xbf16> to vector<16x40xbf16>
    %93 = arith.extf %92 : vector<16x40xbf16> to vector<16x40xf32>
    %94 = arith.mulf %91, %93 : vector<16x40xf32>
    %95 = arith.addf %87, %94 : vector<16x40xf32>
    %96 = arith.subf %51, %67 : vector<16x4xf32>
    %97 = math.exp %96 : vector<16x4xf32>
    %98 = arith.addf %90, %97 : vector<16x4xf32>
    %cst_28 = arith.constant dense<0.000000e+00> : vector<16x40xf32>
    %99 = tpu.matmul %97, %68, %cst_28 {dimension_numbers = #tpu.dot_dimension_numbers<[1], [0], [0], [1], [0, 0, 1, 1], [], []>} : vector<16x4xf32>, vector<4x40xf32>, vector<16x40xf32> -> vector<16x40xf32>
    %100 = vector.extract_strided_slice %69 {offsets = [0, 120], sizes = [16, 40], strides = [1, 1]} : vector<16x200xbf16> to vector<16x40xbf16>
    %101 = arith.extf %100 : vector<16x40xbf16> to vector<16x40xf32>
    %102 = arith.mulf %99, %101 : vector<16x40xf32>
    %103 = arith.addf %95, %102 : vector<16x40xf32>
    %104 = arith.subf %63, %67 : vector<16x4xf32>
    %105 = math.exp %104 : vector<16x4xf32>
    %106 = arith.addf %98, %105 : vector<16x4xf32>
    %cst_29 = arith.constant dense<0.000000e+00> : vector<16x40xf32>
    %107 = tpu.matmul %105, %68, %cst_29 {dimension_numbers = #tpu.dot_dimension_numbers<[1], [0], [0], [1], [0, 0, 1, 1], [], []>} : vector<16x4xf32>, vector<4x40xf32>, vector<16x40xf32> -> vector<16x40xf32>
    %108 = vector.extract_strided_slice %69 {offsets = [0, 160], sizes = [16, 40], strides = [1, 1]} : vector<16x200xbf16> to vector<16x40xbf16>
    %109 = arith.extf %108 : vector<16x40xbf16> to vector<16x40xf32>
    %110 = arith.mulf %107, %109 : vector<16x40xf32>
    %111 = arith.addf %103, %110 : vector<16x40xf32>
    %112 = tpu.reciprocal %106 {approx = true} : vector<16x4xf32> -> vector<16x4xf32>
    %cst_30 = arith.constant dense<0.000000e+00> : vector<16x40xf32>
    %113 = tpu.matmul %112, %68, %cst_30 {dimension_numbers = #tpu.dot_dimension_numbers<[1], [0], [0], [1], [0, 0, 1, 1], [], []>} : vector<16x4xf32>, vector<4x40xf32>, vector<16x40xf32> -> vector<16x40xf32>
    %c0_31 = arith.constant 0 : index
    %c0_32 = arith.constant 0 : index
    %114 = vector.load %arg4[%c0_31, %c0_32] : memref<16x4xbf16, #tpu.memory_space<vmem>>, vector<16x4xbf16>
    %115 = arith.extf %114 : vector<16x4xbf16> to vector<16x4xf32>
    %cst_33 = arith.constant dense<0.000000e+00> : vector<16x40xf32>
    %116 = tpu.matmul %115, %68, %cst_33 {dimension_numbers = #tpu.dot_dimension_numbers<[1], [0], [0], [1], [0, 0, 1, 1], [], []>} : vector<16x4xf32>, vector<4x40xf32>, vector<16x40xf32> -> vector<16x40xf32>
    %117 = arith.mulf %113, %116 : vector<16x40xf32>
    %118 = arith.mulf %111, %117 : vector<16x40xf32>
    %119 = arith.truncf %118 : vector<16x40xf32> to vector<16x40xbf16>
    %c0_34 = arith.constant 0 : index
    %c0_35 = arith.constant 0 : index
    %120 = vector.load %arg7[%c0_34, %c0_35] : memref<40x56xbf16, #tpu.memory_space<vmem>>, vector<40x56xbf16>
    %cst_36 = arith.constant dense<0.000000e+00> : vector<16x56xf32>
    %121 = tpu.matmul %119, %120, %cst_36 {dimension_numbers = #tpu.dot_dimension_numbers<[1], [0], [0], [1], [0, 0, 1, 1], [], []>} : vector<16x40xbf16>, vector<40x56xbf16>, vector<16x56xf32> -> vector<16x56xf32>
    %c0_37 = arith.constant 0 : index
    %c0_38 = arith.constant 0 : index
    %122 = vector.load %arg8[%c0_37, %c0_38] : memref<16x56xf32, #tpu.memory_space<vmem>>, vector<16x56xf32>
    tpu.vector_store %arg8[%c0_37, %c0_38], %121 {strides = array<i32>} : memref<16x56xf32, #tpu.memory_space<vmem>>, vector<16x56xf32>,
    return
  }
  func.func @transform_0(%arg0: i32) -> (i32, i32) {
    %c0_i32 = arith.constant 0 : i32
    %c0_i32_0 = arith.constant 0 : i32
    return %arg0, %c0_i32 : i32, i32
  }
  func.func @transform_1(%arg0: i32) -> (i32, i32) {
    %c0_i32 = arith.constant 0 : i32
    %c0_i32_0 = arith.constant 0 : i32
    return %arg0, %c0_i32 : i32, i32
  }
  func.func @transform_2(%arg0: i32) -> (i32, i32) {
    %c0_i32 = arith.constant 0 : i32
    %c0_i32_0 = arith.constant 0 : i32
    return %arg0, %c0_i32 : i32, i32
  }
  func.func @transform_3(%arg0: i32) -> (i32, i32) {
    %c0_i32 = arith.constant 0 : i32
    %c0_i32_0 = arith.constant 0 : i32
    return %arg0, %c0_i32 : i32, i32
  }
  func.func @transform_4(%arg0: i32) -> (i32, i32) {
    %c0_i32 = arith.constant 0 : i32
    %c0_i32_0 = arith.constant 0 : i32
    %c0_i32_1 = arith.constant 0 : i32
    return %c0_i32, %c0_i32_0 : i32, i32
  }
  func.func @transform_5(%arg0: i32) -> (i32, i32) {
    %c0_i32 = arith.constant 0 : i32
    %c0_i32_0 = arith.constant 0 : i32
    %c0_i32_1 = arith.constant 0 : i32
    return %c0_i32, %c0_i32_0 : i32, i32
  }
  func.func @transform_6(%arg0: i32) -> (i32, i32) {
    %c0_i32 = arith.constant 0 : i32
    %c0_i32_0 = arith.constant 0 : i32
    %c0_i32_1 = arith.constant 0 : i32
    return %c0_i32, %c0_i32_0 : i32, i32
  }
  func.func @transform_7(%arg0: i32) -> (i32, i32) {
    %c0_i32 = arith.constant 0 : i32
    %c0_i32_0 = arith.constant 0 : i32
    return %arg0, %c0_i32 : i32, i32
  }
}

</mosaic_0001>

<bundles_post_ra>
// kernel: mlp_attention_forward.4
= control target key start
LH: loop header
LB: loop body
LE: loop exit
PB: predicated region body
PF: predicated region fallthrough
CT: control target
= control target key end

     0   :  { %vm65_vm0 = vcmask 1043456   ;;  %vm61_vm1 = vcmask 457728   ;;  %vm101_vm2 = vcmask 424960   ;;  %s215_s1 = inlined_call_operand.vmem [shape: bf16[56,180], index: 1, kind: input, shape index: {}]   ;;  %s216_s0 = inlined_call_operand.vmem [shape: bf16[16,56], index: 0, kind: input, shape index: {}]   ;;  %s217_s2 = inlined_call_operand.vmem [shape: f32[16,180], index: 2, kind: output, shape index: {}]  }
   0x1   :  { %v20_v0 = vld [vmem:[%s215_s1 + $0x30] sm:$0xff]  ;;  %v131_v3 = vld [vmem:[%s215_s1 + $0x20] sm:$0xf]  ;;  %v145_v6 = vld [vmem:[%s215_s1 + $0x24] sm:$0xf0] }
   0x2   :  { %v45_v1 = vunpack.c.l.b16 %v20_v0  ;;  %v46_v2 = vunpack.c.h.b16 %v20_v0  ;;  %v144_v7 = vld [vmem:[%s215_s1 + $0x24] sm:$0xf]  ;;  %v133_v8 = vld [vmem:[%s215_s1 + $0x28] sm:$0xf0]  ;;  %v132_v11 = vor.u32 %v145_v6, %v131_v3  ;;  %v123_v13 = vld [vmem:[%s215_s1 + $0x10] sm:$0xf] }
   0x3   :  { %v136_v12 = vor.u32 %v144_v7, %v133_v8  ;;  %v143_v14 = vld [vmem:[%s215_s1 + $0x14] sm:$0xf0]  ;;  %v142_v15 = vld [vmem:[%s215_s1 + $0x14] sm:$0xf]  ;;  %v125_v16 = vld [vmem:[%s215_s1 + $0x18] sm:$0xf0] }
   0x4   :  { %v53_v4 = vpack.c.b16 %v45_v1, %v45_v1  ;;  %v54_v5 = vpack.c.b16 %v46_v2, %v46_v2  ;;  %v124_v17 = vor.u32 %v143_v14, %v123_v13  ;;  %v128_v18 = vor.u32 %v142_v15, %v125_v16  ;;  %v115_v19 = vld [vmem:[%s215_s1] sm:$0xf]  ;;  %v141_v20 = vld [vmem:[%s215_s1 + $0x4] sm:$0xf0]  ;;  %v140_v21 = vld [vmem:[%s215_s1 + $0x4] sm:$0xf] }
   0x5   :  { %v117_v22 = vld [vmem:[%s215_s1 + $0x8] sm:$0xf0]  ;;  %v116_v23 = vor.u32 %v141_v20, %v115_v19  ;;  %v139_v25 = vld [vmem:[%s216_s0] sm:$0xff] }
   0x6   :  { %v67_v9 = vsel %vm65_vm0, %v53_v4, 0  ;;  %v70_v10 = vsel %vm65_vm0, %v54_v5, 0  ;;  %v120_v24 = vor.u32 %v140_v21, %v117_v22 }
   0x7   :  { %76 = vmatpush.bf16.msra.mxu0 %v67_v9  ;;  %90 = vmatpush.bf16.msra.mxu1 %v70_v10 }
   0xb   :  { %77 = vmatpush.bf16.msra.mxu0 %v132_v11  ;;  %91 = vmatpush.bf16.msra.mxu1 %v136_v12 }
   0xf   :  { %78 = vmatpush.bf16.msra.mxu0 %v124_v17  ;;  %92 = vmatpush.bf16.msra.mxu1 %v128_v18 }
  0x13   :  { %79 = vmatpush.bf16.msra.mxu0 %v116_v23  ;;  %93 = vmatpush.bf16.msra.mxu1 %v120_v24 }
  0x16   :  { %137 = vmatmul.msk.bf16.vlgmr.msra.gmra.mxu0 %vm61_vm1, %v139_v25  ;;  %138 = vmatmul.msk.bf16.vlgmr.msra.gmra.mxu1 %vm61_vm1, %v139_v25 }
  0x93   :  { %v81_v26 = vpop.f32.mrf.mxu0  ;;  %v95_v27 = vpop.f32.mrf.mxu1 }
  0x94   :  { %100 = vst [vmem:[%s217_s2] sm:$0xff] %v81_v26 }
  0x95   :  { %102 = vst.msk [vmem:[%s217_s2 + $0x8] sm:$0xff] %vm101_vm2, %v95_v27 }
  0x9b   :  { %v83_v28 = vpop.f32.mrf.mxu0  ;;  %v97_v29 = vpop.f32.mrf.mxu1 }
  0x9c   :  { %103 = vst [vmem:[%s217_s2 + $0x10] sm:$0xff] %v83_v28 }
  0x9d   :  { %104 = vst.msk [vmem:[%s217_s2 + $0x18] sm:$0xff] %vm101_vm2, %v97_v29 }

// kernel: mlp_attention_forward.6
= control target key start
LH: loop header
LB: loop body
LE: loop exit
PB: predicated region body
PF: predicated region fallthrough
CT: control target
= control target key end

     0   :  { %s726_s12 = smov 0   ;;  %s894_s0 = inlined_call_operand.vmem [shape: bf16[96,48], index: 0, kind: input, shape index: {}]   ;;  %s895_s1 = inlined_call_operand.vmem [shape: f32[8,24], index: 1, kind: input, shape index: {}]   ;;  %s896_s2 = inlined_call_operand.vmem [shape: bf16[40,40], index: 2, kind: input, shape index: {}]   ;;  %s897_s3 = inlined_call_operand.vmem [shape: bf16[96,40], index: 3, kind: output, shape index: {}]  }
   0x1 LB: > { %s577_s13 = sadd.s32 4294967295, %s702_s12   ;;  %p581_p0 = scmp.ge.s32.totalorder %s702_s12, 1  ;;  %s702_s12 = sphi %s726_s12, %s13_s12  }
   0x2   : > { %p138_p1 = scmp.lt.s32.totalorder %s702_s12, 3 }
   0x4   : > { %p139_p2 = pnand %p581_p0, %p138_p1 }
   0x5   : > { %s162_s16 = smul.u32 (!%p139_p2), 6, %s577_s13  ;;  %s704_s21 = smov (!%p139_p2), 24  }
   0x6   : > { %142 = sbr.rel (%p139_p2) target bundleno = 568 (0x238), region = 32  ;;  %s705_s22 = smov (!%p139_p2), 120  }
   0x7   : > { %p163_p3 = scmp.lt.s32.totalorder (!%p139_p2), %s162_s16, 11 }
   0xb   : > { %v307_v0 = vld [vmem:[%s895_s1] sm:$0xff]  ;;  %s911_s16 = smov (!%p163_p3, %s162_s16), 11  ;;  %vm308_vm1 = vcmask 64512  }
   0xc   : > { %342 = vmatpush.msra.mxu0 %v307_v0  ;;  %625 = vmatpush.msra.mxu3 %v307_v0  ;;  %s582_s17 = sshll.u32 %s911_s16, 2 }
   0xd   : > { %s166_s20 = scalar_lea.vmem %s894_s0, %s582_s17  ;;  %s172_s4 = scalar_lea.vmem %s897_s3, %s582_s17 }
   0xe   : > { %v612_v1 = vld [vmem:[%s166_s20] sm:$0xff]   ;;  %v624_v2 = vld [vmem:[%s166_s20 + $0x10] sm:$0xff]   ;;  %v623_v3 = vld [vmem:[%s166_s20 + $0x8] sm:$0xff]  }
   0xf   : > { %v745_v4 = vunpack.c.l.bf16 %v612_v1  ;;  %v747_v5 = vunpack.c.l.bf16 %v624_v2  ;;  %v749_v6 = vunpack.c.h.bf16 %v612_v1  ;;  %v751_v7 = vunpack.c.h.bf16 %v624_v2 }
  0x10   : > { %v753_v8 = vunpack.c.l.bf16 %v623_v3  ;;  %v758_v12 = vunpack.c.h.bf16 %v623_v3 }
  0x11   : > { %v584_v9 = vmul.f32 -1.442695, %v745_v4  ;;  %v588_v10 = vmul.f32 -1.442695, %v747_v5  ;;  %v585_v11 = vmul.f32 -1.442695, %v749_v6 }
  0x12   : > { %v589_v13 = vmul.f32 -1.442695, %v751_v7  ;;  %v586_v14 = vmul.f32 -1.442695, %v753_v8  ;;  %v587_v15 = vmul.f32 -1.442695, %v758_v12 }
  0x13   : > { %672 = vpow2.f32 %v584_v9 }
  0x14   : > { %674 = vpow2.f32 %v588_v10 }
  0x15   : > { %676 = vpow2.f32 %v585_v11 }
  0x16   : > { %678 = vpow2.f32 %v589_v13 }
  0x17   : > { %680 = vpow2.f32 %v586_v14 }
  0x18   : > { %682 = vpow2.f32 %v587_v15 }
  0x19   : > { %v673_v16 = vpop.eup %672 }
  0x1a   : > { %v675_v17 = vpop.eup %674  ;;  %v205_v18 = vadd.f32 1.0, %v673_v16 }
  0x1b   : > { %v677_v19 = vpop.eup %676  ;;  %v209_v20 = vadd.f32 1.0, %v675_v17 }
  0x1c   : > { %v679_v21 = vpop.eup %678  ;;  %684 = vrcp.f32 %v205_v18  ;;  %v763_v23 = vadd.f32 1.0, %v677_v19  ;;  %v220_v27 = vand.u32 2147483647, %v205_v18  ;;  %v222_v28 = vand.u32 2147483648, %v205_v18 }
  0x1d   : > { %v681_v22 = vpop.eup %680  ;;  %686 = vrcp.f32 %v209_v20  ;;  %v765_v24 = vadd.f32 1.0, %v679_v21  ;;  %v280_v30 = vand.u32 2147483647, %v209_v20  ;;  %v282_v34 = vand.u32 2147483648, %v209_v20 }
  0x1e   : > { %v683_v25 = vpop.eup %682  ;;  %v767_v26 = vadd.f32 1.0, %v681_v22  ;;  %688 = vrcp.f32 %v763_v23  ;;  %vm216_vm0 = vweird.f32 %v205_v18  ;;  %vm276_vm2 = vweird.f32 %v209_v20 }
  0x1f   : > { %690 = vrcp.f32 %v765_v24  ;;  %v772_v31 = vadd.f32 1.0, %v683_v25  ;;  %vm774_vm4 = vcmp.eq.f32.partialorder %v220_v27, 8.507059e+37  ;;  %v223_v38 = vor.u32 1.1754944e-38, %v222_v28 }
  0x20   : > { %692 = vrcp.f32 %v767_v26  ;;  %vm778_vm6 = vcmp.eq.f32.partialorder %v280_v30, 8.507059e+37  ;;  %v283_v44 = vor.u32 1.1754944e-38, %v282_v34  ;;  %vm231_vm7 = vweird.f32 %v763_v23 }
  0x21   : > { %694 = vrcp.f32 %v772_v31  ;;  %v235_v49 = vand.u32 2147483647, %v763_v23  ;;  %v237_v50 = vand.u32 2147483648, %v763_v23  ;;  %vm291_vm11 = vweird.f32 %v765_v24 }
  0x22   : > { %v685_v29 = vpop.eup %684  ;;  %v297_v60 = vand.u32 2147483648, %v765_v24  ;;  %v295_v3 = vand.u32 2147483647, %v765_v24  ;;  %v252_v21 = vand.u32 2147483648, %v767_v26  ;;  %v265_v34 = vand.u32 2147483647, %v772_v31 }
  0x23   : > { %v687_v32 = vpop.eup %686  ;;  %v212_v33 = vmul.f32 %v685_v29, %v205_v18  ;;  %vm217_vm3 = vweird.f32 %v685_v29  ;;  %vm236_vm15 = vcmp.eq.f32.partialorder %v235_v49, 8.507059e+37  ;;  %v238_v13 = vor.u32 1.1754944e-38, %v237_v50 }
  0x24   : > { %v272_v35 = vmul.f32 %v687_v32, %v209_v20  ;;  %v689_v39 = vpop.eup %688  ;;  %vm277_vm5 = vweird.f32 %v687_v32  ;;  %vm786_vm8 = vmor %vm216_vm0, %vm217_vm3  ;;  %v298_v16 = vor.u32 1.1754944e-38, %v297_v60  ;;  %vm296_vm0 = vcmp.eq.f32.partialorder %v295_v3, 8.507059e+37 }
  0x25   : > { %v213_v36 = vsub.f32 1.0, %v212_v33  ;;  %v691_v42 = vpop.eup %690  ;;  %v227_v45 = vmul.f32 %v689_v39, %v763_v23  ;;  %vm795_vm9 = vmor %vm276_vm2, %vm277_vm5  ;;  %vm232_vm10 = vweird.f32 %v689_v39  ;;  %vm246_vm2 = vweird.f32 %v767_v26 }
  0x26   : > { %v273_v40 = vsub.f32 1.0, %v272_v35  ;;  %v693_v46 = vpop.eup %692  ;;  %v287_v51 = vmul.f32 %v691_v42, %v765_v24  ;;  %vm292_vm12 = vweird.f32 %v691_v42  ;;  %vm812_vm13 = vmor %vm231_vm7, %vm232_vm10  ;;  %v250_v24 = vand.u32 2147483647, %v767_v26 }
  0x27   : > { %v214_v43 = vmul.f32 %v685_v29, %v213_v36  ;;  %v228_v54 = vsub.f32 1.0, %v227_v45  ;;  %v242_v55 = vmul.f32 %v693_v46, %v767_v26  ;;  %v695_v62 = vpop.eup %694  ;;  %vm823_vm14 = vmor %vm291_vm11, %vm292_vm12  ;;  %vm247_vm3 = vweird.f32 %v693_v46 }
  0x28   : > { %v274_v48 = vmul.f32 %v687_v32, %v273_v40  ;;  %v288_v57 = vsub.f32 1.0, %v287_v51  ;;  %v257_v18 = vmul.f32 %v695_v62, %v772_v31  ;;  %v253_v27 = vor.u32 1.1754944e-38, %v252_v21  ;;  %v454_v51 = vld [vmem:[%s896_s2 + $0x10] sm:$0xf] }
  0x29   : > { %v215_v52 = vadd.f32 %v685_v29, %v214_v43  ;;  %v229_v59 = vmul.f32 %v689_v39, %v228_v54  ;;  %v243_v61 = vsub.f32 1.0, %v242_v55  ;;  %vm251_vm5 = vcmp.eq.f32.partialorder %v250_v24, 8.507059e+37 }
  0x2a   : > { %v275_v56 = vadd.f32 %v687_v32, %v274_v48  ;;  %v289_v2 = vmul.f32 %v691_v42, %v288_v57  ;;  %v258_v25 = vsub.f32 1.0, %v257_v18  ;;  %vm262_vm7 = vweird.f32 %v695_v62 }
  0x2b   : > { %v219_v58 = vsel %vm786_vm8, %v685_v29, %v215_v52  ;;  %v230_v10 = vadd.f32 %v689_v39, %v229_v59  ;;  %v244_v17 = vmul.f32 %v693_v46, %v243_v61  ;;  %v464_v52 = vunpack.c.l.b16 %v454_v51 }
  0x2c   : > { %v806_v63 = vsel %vm774_vm4, %v223_v38, %v219_v58  ;;  %v279_v0 = vsel %vm795_vm9, %v687_v32, %v275_v56  ;;  %v290_v14 = vadd.f32 %v691_v42, %v289_v2  ;;  %vm248_vm4 = vmor %vm246_vm2, %vm247_vm3  ;;  %v259_v29 = vmul.f32 %v695_v62, %v258_v25  ;;  %v610_v56 = vld [vmem:[%s896_s2 + $0x8] sm:$0xff] }
  0x2d   : > { %590 = vmatmul.msk.f32.vlgmr.msra.gmra.mxu0 %vm308_vm1, %v806_v63  ;;  %v284_v9 = vsel %vm778_vm6, %v283_v44, %v279_v0  ;;  %v234_v15 = vsel %vm812_vm13, %v689_v39, %v230_v10  ;;  %v245_v23 = vadd.f32 %v693_v46, %v244_v17  ;;  %vm261_vm6 = vweird.f32 %v772_v31  ;;  %v609_v10 = vld [vmem:[%s896_s2] sm:$0xff] }
  0x2e   : > { %594 = vmatmul.msk.f32.vlgmr.msra.gmra.mxu3 %vm308_vm1, %v284_v9  ;;  %v294_v19 = vsel %vm823_vm14, %v691_v42, %v290_v14  ;;  %v239_v20 = vsel %vm236_vm15, %v238_v13, %v234_v15  ;;  %v267_v32 = vand.u32 2147483648, %v772_v31  ;;  %v260_v33 = vadd.f32 %v695_v62, %v259_v29  ;;  %vm263_vm8 = vmor %vm261_vm6, %vm262_vm7 }
  0x2f   : > { %v299_v22 = vsel %vm296_vm0, %v298_v16, %v294_v19  ;;  %v249_v28 = vsel %vm248_vm4, %v693_v46, %v245_v23  ;;  %vm266_vm9 = vcmp.eq.f32.partialorder %v265_v34, 8.507059e+37  ;;  %v305_v42 = vmul.f32 %v747_v5, %v284_v9 }
  0x30   : > { %v254_v30 = vsel %vm251_vm5, %v253_v27, %v249_v28  ;;  %v268_v26 = vor.u32 1.1754944e-38, %v267_v32  ;;  %v264_v35 = vsel %vm263_vm8, %v695_v62, %v260_v33  ;;  %v306_v43 = vmul.f32 %v751_v7, %v299_v22 }
  0x31   : > { %v303_v44 = vmul.f32 %v753_v8, %v254_v30  ;;  %v301_v48 = vmul.f32 %v745_v4, %v806_v63  ;;  %v302_v49 = vmul.f32 %v749_v6, %v239_v20  ;;  %v467_v54 = vpack.c.b16 %v464_v52, %v464_v52 }
  0x32   : > { %v269_v36 = vsel %vm266_vm9, %v268_v26, %v264_v35  ;;  %v647_v46 = vpack.i.bf16 %v306_v43, %v305_v42  ;;  %vm440_vm10 = vcmask 130048   ;;  %vm470_vm11 = vcmask 326656  }
  0x33   : > { %v304_v45 = vmul.f32 %v758_v12, %v269_v36  ;;  %v662_v50 = vpack.i.bf16 %v302_v49, %v301_v48  ;;  %vm514_vm12 = vcmask 322560  }
  0x35   : > { %591 = vmatmul.msk.f32.gmra.mxu0 %vm308_vm1, %v239_v20  ;;  %v642_v47 = vpack.i.bf16 %v304_v45, %v303_v44 }
  0x36   : > { %595 = vmatmul.msk.f32.gmra.mxu3 %vm308_vm1, %v299_v22 }
  0x3d   : > { %592 = vmatmul.msk.f32.gmra.mxu0 %vm308_vm1, %v254_v30 }
  0x45   : > { %593 = vmatmul.msk.f32.gmra.mxu0 %vm308_vm1, %v269_v36  ;;  %vm480_vm1 = vcmask 1043456  }
  0x46   : > { %v482_v55 = vsel %vm480_vm1, %v467_v54, 0 }
  0x47   : > { %626 = vmatpush.bf16.msra.mxu2 %v482_v55  ;;  %489 = vmatpush.bf16.msra.mxu1 %v482_v55 }
  0x48   : > { %627 = vmatpush.bf16.msrb.mxu3 %v482_v55 }
  0x4b   : > { %628 = vmatpush.bf16.msra.mxu2 %v610_v56  ;;  %490 = vmatpush.bf16.msra.mxu1 %v610_v56 }
  0x4c   : > { %629 = vmatpush.bf16.msrb.mxu3 %v610_v56 }
  0x4f   : > { %630 = vmatpush.bf16.msra.mxu2 %v609_v10  ;;  %491 = vmatpush.bf16.msra.mxu1 %v609_v10 }
  0x50   : > { %631 = vmatpush.bf16.msrb.mxu3 %v609_v10 }
  0xaa   : > { %v344_v37 = vpop.f32.mrf.mxu0 }
  0xab   : > { %368 = vrot.lane.b32.xlu2 %v344_v37, %s704_s21 }
  0xb1   : > { %v356_v38 = vpop.f32.mrf.mxu3 }
  0xb2   : > { %376 = vrot.lane.b32.xlu1 %v356_v38, %s704_s21  ;;  %v347_v39 = vpop.f32.mrf.mxu0 }
  0xb3   : > { %370 = vrot.lane.b32.xlu2 %v347_v39, %s704_s21 }
  0xb9   : > { %v359_v40 = vpop.f32.mrf.mxu3 }
  0xba   : > { %378 = vrot.lane.b32.xlu1 %v359_v40, %s704_s21  ;;  %v350_v41 = vpop.f32.mrf.mxu0 }
  0xbb   : > { %372 = vrot.lane.b32.xlu0 %v350_v41, %s704_s21 }
  0xc2   : > { %v353_v31 = vpop.f32.mrf.mxu0  ;;  %648 = vrot.lane.b32.xlu1 %v647_v46, %s705_s22 }
  0xc3   : > { %374 = vrot.lane.b32.xlu0 %v353_v31, %s704_s21 }
  0xca   : > { %663 = vrot.lane.b32.xlu1 %v662_v50, %s705_s22 }
  0xcb   : > { %643 = vrot.lane.b32.xlu0 %v642_v47, %s705_s22 }
 0x105   : > { %v369_v61 = vpop.permute.xlu2 %368 }
 0x106   : > { %v386_v9 = vmul.f32 %v745_v4, %v369_v61 }
 0x10d   : > { %v371_v3 = vpop.permute.xlu2 %370 }
 0x124   : > { %v377_v53 = vpop.permute.xlu1 %376 }
 0x125   : > { %v390_v58 = vmul.f32 %v747_v5, %v377_v53  ;;  %v387_v5 = vmul.f32 %v749_v6, %v371_v3 }
 0x12c   : > { %v379_v57 = vpop.permute.xlu1 %378 }
 0x12d   : > { %v391_v59 = vmul.f32 %v751_v7, %v379_v57  ;;  %v373_v60 = vpop.permute.xlu0 %372  ;;  %v667_v7 = vpack.i.bf16 %v387_v5, %v386_v9 }
 0x12e   : > { %v388_v63 = vmul.f32 %v753_v8, %v373_v60 }
 0x12f   : > { %v657_v62 = vpack.i.bf16 %v391_v59, %v390_v58 }
 0x131   : > { %658 = vrot.lane.b32.xlu0 %v657_v62, %s705_s22 }
 0x134   : > { %v649_v8 = vpop.permute.xlu1 %648 }
 0x135   : > { %v375_v0 = vpop.permute.xlu0 %374  ;;  %v651_v29 = vunpack.i.h.bf16 %v649_v8  ;;  %v650_v30 = vunpack.i.l.bf16 %v649_v8 }
 0x136   : > { %v389_v1 = vmul.f32 %v758_v12, %v375_v0 }
 0x138   : > { %v652_v2 = vpack.i.bf16 %v389_v1, %v388_v63 }
 0x13a   : > { %653 = vrot.lane.b32.xlu2 %v652_v2, %s705_s22 }
 0x13c   : > { %v664_v18 = vpop.permute.xlu1 %663 }
 0x13d   : > { %v644_v12 = vpop.permute.xlu0 %643  ;;  %v666_v19 = vunpack.i.h.bf16 %v664_v18  ;;  %v665_v20 = vunpack.i.l.bf16 %v664_v18 }
 0x13e   : > { %v646_v11 = vunpack.i.h.bf16 %v644_v12  ;;  %v645_v13 = vunpack.i.l.bf16 %v644_v12 }
 0x142   : > { %668 = vrot.lane.b32.xlu2 %v667_v7, %s705_s22 }
 0x194   : > { %v654_v14 = vpop.permute.xlu2 %653 }
 0x195   : > { %v656_v15 = vunpack.i.h.bf16 %v654_v14  ;;  %v655_v4 = vunpack.i.l.bf16 %v654_v14 }
 0x197   : > { %v443_v6 = vsel %vm440_vm10, %v645_v13, %v655_v4  ;;  %v444_v16 = vsel %vm440_vm10, %v646_v11, %v656_v15 }
 0x198   : > { %v448_v17 = vpack.c.bf16 %v444_v16, %v443_v6 }
 0x19a   : > { %605 = vmatmul.msk.bf16.vlgmr.msra.gmra.mxu2 %vm470_vm11, %v448_v17 }
 0x19c   : > { %v669_v21 = vpop.permute.xlu2 %668 }
 0x19d   : > { %v671_v22 = vunpack.i.h.bf16 %v669_v21  ;;  %v670_v23 = vunpack.i.l.bf16 %v669_v21 }
 0x19f   : > { %v441_v24 = vsel %vm440_vm10, %v665_v20, %v670_v23  ;;  %v442_v25 = vsel %vm440_vm10, %v666_v19, %v671_v22 }
 0x1a0   : > { %v447_v27 = vpack.c.bf16 %v442_v25, %v441_v24 }
 0x1a2   : > { %604 = vmatmul.msk.bf16.vlgmr.msra.gmra.mxu1 %vm470_vm11, %v447_v27 }
 0x1a3   : > { %v659_v28 = vpop.permute.xlu0 %658 }
 0x1a4   : > { %v661_v32 = vunpack.i.h.bf16 %v659_v28  ;;  %v660_v33 = vunpack.i.l.bf16 %v659_v28 }
 0x1a6   : > { %v446_v34 = vsel %vm440_vm10, %v651_v29, %v661_v32  ;;  %v445_v26 = vsel %vm440_vm10, %v650_v30, %v660_v33 }
 0x1a7   : > { %v449_v35 = vpack.c.bf16 %v446_v34, %v445_v26 }
 0x1a9   : > { %606 = vmatmul.msk.bf16.vlgmr.msrb.gmra.mxu3 %vm470_vm11, %v449_v35 }
 0x21d   : > { %v498_v36 = vpop.f32.mrf.mxu2 }
 0x21e   : > { %v510_v37 = vpack.c.bf16 %v498_v36, %v498_v36 }
 0x21f   : > { %v493_v38 = vpop.f32.mrf.mxu1 }
 0x220   : > { %517 = vst.msk [vmem:[%s172_s4 + $0x8] sm:$0xf] %vm514_vm12, %v510_v37  ;;  %v508_v39 = vpack.c.bf16 %v493_v38, %v493_v38 }
 0x222   : > { %515 = vst.msk [vmem:[%s172_s4] sm:$0xf] %vm514_vm12, %v508_v39 }
 0x225   : > { %v500_v40 = vpop.f32.mrf.mxu2 }
 0x226   : > { %v511_v41 = vpack.c.bf16 %v500_v40, %v500_v40 }
 0x227   : > { %v495_v31 = vpop.f32.mrf.mxu1 }
 0x228   : > { %518 = vst.msk [vmem:[%s172_s4 + $0xc] sm:$0xf] %vm514_vm12, %v511_v41  ;;  %v509_v42 = vpack.c.bf16 %v495_v31, %v495_v31 }
 0x22a   : > { %516 = vst.msk [vmem:[%s172_s4 + $0x4] sm:$0xf] %vm514_vm12, %v509_v42 }
 0x22c   : > { %v503_v43 = vpop.f32.mrf.mxu3 }
 0x22d   : > { %v512_v44 = vpack.c.bf16 %v503_v43, %v503_v43 }
 0x22f   : > { %519 = vst.msk [vmem:[%s172_s4 + $0x10] sm:$0xf] %vm514_vm12, %v512_v44 }
 0x234   : > { %v505_v45 = vpop.f32.mrf.mxu3 }
 0x235   : > { %v513_v46 = vpack.c.bf16 %v505_v45, %v505_v45 }
 0x237   : > { %520 = vst.msk [vmem:[%s172_s4 + $0x14] sm:$0xf] %vm514_vm12, %v513_v46 }
 0x238 PF: > { %s13_s12 = sadd.s32 1, %s702_s12  }
 0x239   : > { %p10_p4 = scmp.ge.s32.totalorder %s13_s12, 4  }
 0x23b   :  { %12 = sbr.rel (!%p10_p4) target bundleno = 1 (0x1), region = 62 }

// kernel: mlp_attention_forward.5
= control target key start
LH: loop header
LB: loop body
LE: loop exit
PB: predicated region body
PF: predicated region fallthrough
CT: control target
= control target key end

     0   :  { %s5312_s0 = inlined_call_operand.vmem [shape: f32[64,1], index: 0, kind: input, shape index: {}]   ;;  %s5313_s1 = inlined_call_operand.vmem [shape: f32[64,32], index: 1, kind: input, shape index: {}]   ;;  %s5314_s2 = inlined_call_operand.vmem [shape: f32[64,24], index: 2, kind: input, shape index: {}]   ;;  %s5315_s3 = inlined_call_operand.vmem [shape: f32[64,9], index: 3, kind: input, shape index: {}]   ;;  %s5316_s4 = inlined_call_operand.vmem [shape: f32[1,64], index: 4, kind: input, shape index: {}]   ;;  %s5317_s5 = inlined_call_operand.vmem [shape: f32[1,64], index: 5, kind: input, shape index: {}]   ;;  %s5318_s6 = inlined_call_operand.vmem [shape: f32[1,64], index: 6, kind: input, shape index: {}]   ;;  %s5319_s7 = inlined_call_operand.vmem [shape: f32[64,64], index: 7, kind: input, shape index: {}]   ;;  %s5320_s8 = inlined_call_operand.vmem [shape: bf16[64,64], index: 8, kind: input, shape index: {}]   ;;  %s5321_s9 = inlined_call_operand.vmem [shape: f32[1,64], index: 9, kind: input, shape index: {}]   ;;  %s5322_s10 = inlined_call_operand.vmem [shape: f32[1,64], index: 10, kind: input, shape index: {}]   ;;  %s5323_s11 = inlined_call_operand.vmem [shape: bf16[64,1024], index: 11, kind: input, shape index: {}]   ;;  %s5324_s12 = inlined_call_operand.vmem [shape: f32[1,1024], index: 12, kind: input, shape index: {}]   ;;  %s5325_s13 = inlined_call_operand.vmem [shape: f32[24,72], index: 13, kind: input, shape index: {}]   ;;  %s5326_s14 = inlined_call_operand.vmem [shape: f32[9,72], index: 14, kind: input, shape index: {}]   ;;  %s5327_s15 = inlined_call_operand.vmem [shape: f32[72,24], index: 15, kind: input, shape index: {}]   ;;  %s5328_s16 = inlined_call_operand.vmem [shape: bf16[56,1024], index: 16, kind: input, shape index: {}]   ;;  %s5329_s17 = inlined_call_operand.vmem [shape: bf16[1024,64], index: 17, kind: input, shape index: {}]   ;;  %s5330_s18 = inlined_call_operand.vmem [shape: f32[9,72], index: 18, kind: input, shape index: {}]   ;;  %s5331_s19 = inlined_call_operand.vmem [shape: f32[72,24], index: 19, kind: input, shape index: {}]   ;;  %s5332_s20 = inlined_call_operand.vmem [shape: bf16[40,40], index: 20, kind: input, shape index: {}]   ;;  %s5333_s21 = inlined_call_operand.vmem [shape: bf16[24,24], index: 21, kind: input, shape index: {}]   ;;  %s5334_s22 = inlined_call_operand.vmem [shape: bf16[64,64], index: 22, kind: output, shape index: {}]  }
   0x1   :  { %5335 = sst [smem:[#allocation2_spill]] %s5312_s0 }
   0x2   :  { %5336 = sst [smem:[#allocation3_spill]] %s5313_s1 }
   0x3   :  { %5337 = sst [smem:[#allocation4_spill]] %s5314_s2 }
   0x4   :  { %5338 = sst [smem:[#allocation5_spill]] %s5315_s3  ;;  %s4244_s3 = smov 0  }
   0x5   :  { %5339 = sst [smem:[#allocation6_spill]] %s5316_s4 }
   0x6   :  { %5340 = sst [smem:[#allocation7_spill]] %s5317_s5 }
   0x7   :  { %5341 = sst [smem:[#allocation8_spill]] %s5318_s6 }
   0x8   :  { %5342 = sst [smem:[#allocation9_spill]] %s5319_s7 }
   0x9   :  { %5343 = sst [smem:[#allocation10_spill]] %s5320_s8 }
   0xa LB: > { %s3278_s28 = sadd.s32 4294967295, %s4123_s3   ;;  %p3282_p0 = scmp.ge.s32.totalorder %s4123_s3, 1  ;;  %s4123_s3 = sphi %s4244_s3, %s32_s3  }
   0xb   : > { %p646_p1 = scmp.lt.s32.totalorder %s4123_s3, 3 }
   0xd   : > { %p647_p2 = pnand %p3282_p0, %p646_p1 }
   0xe   : > { %s3283_s29 = sshll.u32 (!%p647_p2), %s3278_s28, 2  ;;  %s5344_s23 = sld [smem:[#allocation2_spill]] (!%p647_p2) }
   0xf   : > { %650 = sbr.rel (%p647_p2) target bundleno = 2318 (0x90e), region = 108  ;;  %p724_p3 = scmp.lt.s32.totalorder (!%p647_p2), %s3283_s29, 7 }
  0x10   : > { %s5345_s7 = sld [smem:[#allocation9_spill]] (!%p647_p2)  ;;  %s4126_s28 = smov (!%p647_p2), 32  }
  0x11   : > { %s5346_s5 = sld [smem:[#allocation6_spill]] (!%p647_p2)  ;;  %s4128_s26 = smov (!%p647_p2), 40  }
  0x12   : > { %s5347_s2 = sld [smem:[#allocation7_spill]] (!%p647_p2) }
  0x13   : > { %s5348_s8 = sld [smem:[#allocation10_spill]] (!%p647_p2) }
  0x14   : > { %v4125_v0 = vmov 0   ;;  %s5356_s29 = smov (!%p724_p3, %s3283_s29), 7  ;;  %vm883_vm8 = vcmask 523264   ;;  %s5349_s4 = sld [smem:[#allocation8_spill]] }
  0x15   : > { %4039 = vset.pattern.permute.xlu1 %v4125_v0  ;;  %4038 = vset.pattern.permute.xlu0 %v4125_v0  ;;  %s4255_s30 = sshll.u32 %s5356_s29, 3  ;;  %s5352_s0 = sld [smem:[#allocation5_spill]] }
  0x16   : > { %s727_s1 = scalar_lea.vmem %s5344_s23, %s4255_s30  ;;  %v761_v5 = vld [vmem:[%s5345_s7 + $0x38] sm:$0xff]  ;;  %v760_v6 = vld [vmem:[%s5345_s7 + $0x30] sm:$0xff]  ;;  %v759_v7 = vld [vmem:[%s5345_s7 + $0x28] sm:$0xff]  ;;  %s5353_s24 = sld [smem:[#allocation4_spill]] }
  0x17   : > { %v764_v1 = vld [vmem:[%s727_s1 + $0x10] sm:$0xff]  ;;  %v762_v2 = vld [vmem:[%s727_s1] sm:$0xff]  ;;  %v765_v3 = vld [vmem:[%s727_s1 + $0x18] sm:$0xff]  ;;  %904 = vmatpush.msra.mxu0 %v761_v5  ;;  %4018 = vmatpush.msra.mxu1 %v761_v5  ;;  %s5354_s27 = sld [smem:[#allocation3_spill]] }
  0x18   : > { %779 = vperm.xlu1 %4039, %v764_v1   ;;  %769 = vperm.xlu0 %4038, %v762_v2   ;;  %v763_v4 = vld [vmem:[%s727_s1 + $0x8] sm:$0xff]  ;;  %v758_v8 = vld [vmem:[%s5345_s7 + $0x20] sm:$0xff]  ;;  %v757_v9 = vld [vmem:[%s5345_s7 + $0x18] sm:$0xff] }
  0x19   : > { %1189 = vmatpush.msra.mxu3 %v761_v5  ;;  %905 = vmatpush.msra.mxu0 %v760_v6  ;;  %v4060_v10 = vld [vmem:[%s5346_s5] ss:$0 sm:$0xff]  ;;  %v756_v11 = vld [vmem:[%s5345_s7 + $0x10] sm:$0xff]  ;;  %v755_v15 = vld [vmem:[%s5345_s7 + $0x8] sm:$0xff] }
  0x1a   : > { %4019 = vmatpush.msra.mxu1 %v760_v6  ;;  %v4061_v12 = vld [vmem:[%s5347_s2] ss:$0 sm:$0xff]  ;;  %s3292_s2 = sshll.u32 %s5356_s29, 2 }
  0x1b   : > { %1190 = vmatpush.msra.mxu3 %v760_v6  ;;  %906 = vmatpush.msra.mxu0 %v759_v7  ;;  %v754_v18 = vld [vmem:[%s5345_s7] sm:$0xff]  ;;  %s4673_s23 = scalar_lea.vmem %s5352_s0, %s4255_s30 }
  0x1c   : > { %4020 = vmatpush.msra.mxu1 %v759_v7  ;;  %s739_s6 = scalar_lea.vmem %s5353_s24, %s4255_s30 }
  0x1d   : > { %1191 = vmatpush.msra.mxu3 %v759_v7  ;;  %907 = vmatpush.msra.mxu0 %v758_v8 }
  0x1e   : > { %4021 = vmatpush.msra.mxu1 %v758_v8 }
  0x1f   : > { %1192 = vmatpush.msra.mxu3 %v758_v8  ;;  %908 = vmatpush.msra.mxu0 %v757_v9 }
  0x20   : > { %784 = vperm.xlu1 %4039, %v765_v3   ;;  %774 = vperm.xlu0 %4038, %v763_v4  }
  0x21   : > { %4022 = vmatpush.msra.mxu1 %v757_v9  ;;  %1193 = vmatpush.msra.mxu3 %v757_v9 }
  0x22   : > { %909 = vmatpush.msra.mxu0 %v756_v11 }
  0x23   : > { %4023 = vmatpush.msra.mxu1 %v756_v11  ;;  %1194 = vmatpush.msra.mxu3 %v756_v11 }
  0x24   : > { %910 = vmatpush.msra.mxu0 %v755_v15 }
  0x25   : > { %4024 = vmatpush.msra.mxu1 %v755_v15  ;;  %1195 = vmatpush.msra.mxu3 %v755_v15 }
  0x26   : > { %911 = vmatpush.msra.mxu0 %v754_v18 }
  0x27   : > { %4025 = vmatpush.msra.mxu1 %v754_v18  ;;  %1196 = vmatpush.msra.mxu3 %v754_v18 }
  0x28   : > { %1238 = vmatpush.msrb.mxu0 %v761_v5 }
  0x29   : > { %953 = vmatpush.msrb.mxu1 %v761_v5 }
  0x2a   : > { %1239 = vmatpush.msrb.mxu0 %v760_v6 }
  0x2b   : > { %954 = vmatpush.msrb.mxu1 %v760_v6 }
  0x2c   : > { %1240 = vmatpush.msrb.mxu0 %v759_v7 }
  0x2d   : > { %955 = vmatpush.msrb.mxu1 %v759_v7 }
  0x2e   : > { %1241 = vmatpush.msrb.mxu0 %v758_v8 }
  0x2f   : > { %956 = vmatpush.msrb.mxu1 %v758_v8 }
  0x30   : > { %1242 = vmatpush.msrb.mxu0 %v757_v9 }
  0x31   : > { %957 = vmatpush.msrb.mxu1 %v757_v9 }
  0x32   : > { %1243 = vmatpush.msrb.mxu0 %v756_v11 }
  0x33   : > { %958 = vmatpush.msrb.mxu1 %v756_v11 }
  0x34   : > { %1244 = vmatpush.msrb.mxu0 %v755_v15 }
  0x35   : > { %959 = vmatpush.msrb.mxu1 %v755_v15 }
  0x36   : > { %1245 = vmatpush.msrb.mxu0 %v754_v18 }
  0x37   : > { %960 = vmatpush.msrb.mxu1 %v754_v18 }
  0x8a   : > { %v780_v13 = vpop.permute.xlu1 %779  ;;  %v770_v14 = vpop.permute.xlu0 %769 }
  0x8b   : > { %v792_v16 = vmul.f32 %v4060_v10, %v780_v13  ;;  %v790_v17 = vmul.f32 %v4060_v10, %v770_v14 }
  0x8d   : > { %v4291_v19 = vadd.f32 %v4061_v12, %v792_v16  ;;  %v4293_v20 = vadd.f32 %v4061_v12, %v790_v17 }
  0x8f   : > { %v3295_v21 = vmul.f32 -1.442695, %v4291_v19  ;;  %v3293_v22 = vmul.f32 -1.442695, %v4293_v20 }
  0x91   : > { %4065 = vpow2.f32 %v3295_v21 }
  0x92   : > { %4067 = vpow2.f32 %v3293_v22  ;;  %v785_v23 = vpop.permute.xlu1 %784  ;;  %v775_v24 = vpop.permute.xlu0 %774 }
  0x93   : > { %v793_v25 = vmul.f32 %v4060_v10, %v785_v23  ;;  %v791_v26 = vmul.f32 %v4060_v10, %v775_v24 }
  0x95   : > { %v4297_v27 = vadd.f32 %v4061_v12, %v793_v25  ;;  %v4299_v28 = vadd.f32 %v4061_v12, %v791_v26 }
  0x97   : > { %v4066_v29 = vpop.eup %4065  ;;  %v3296_v30 = vmul.f32 -1.442695, %v4297_v27  ;;  %v3294_v33 = vmul.f32 -1.442695, %v4299_v28 }
  0x98   : > { %v4068_v31 = vpop.eup %4067  ;;  %v816_v32 = vadd.f32 1.0, %v4066_v29 }
  0x99   : > { %v814_v34 = vadd.f32 1.0, %v4068_v31  ;;  %4069 = vpow2.f32 %v3296_v30  ;;  %v3894_v31 = vld [vmem:[%s5348_s8 + $0x18] sm:$0xff] }
  0x9a   : > { %4071 = vrcp.f32 %v816_v32  ;;  %vm853_vm0 = vweird.f32 %v816_v32  ;;  %v859_v42 = vand.u32 2147483648, %v816_v32  ;;  %v857_v45 = vand.u32 2147483647, %v816_v32  ;;  %1073 = vmatpush.bf16.msra.mxu2 %v3894_v31 }
  0x9b   : > { %4073 = vrcp.f32 %v814_v34  ;;  %v829_v47 = vand.u32 2147483648, %v814_v34  ;;  %v827_v50 = vand.u32 2147483647, %v814_v34  ;;  %vm823_vm5 = vweird.f32 %v814_v34 }
  0x9c   : > { %4075 = vpow2.f32 %v3294_v33  ;;  %v860_v51 = vor.u32 1.1754944e-38, %v859_v42  ;;  %vm858_vm4 = vcmp.eq.f32.partialorder %v857_v45, 8.507059e+37  ;;  %v3892_v33 = vld [vmem:[%s5348_s8 + $0x8] sm:$0xff] }
  0x9d   : > { %v830_v55 = vor.u32 1.1754944e-38, %v829_v47  ;;  %vm828_vm7 = vcmp.eq.f32.partialorder %v827_v50, 8.507059e+37 }
  0x9f   : > { %v4070_v35 = vpop.eup %4069 }
  0xa0   : > { %v4072_v36 = vpop.eup %4071  ;;  %v817_v37 = vadd.f32 1.0, %v4070_v35 }
  0xa1   : > { %v4074_v38 = vpop.eup %4073  ;;  %v849_v39 = vmul.f32 %v4072_v36, %v816_v32  ;;  %vm854_vm1 = vweird.f32 %v4072_v36  ;;  %v3893_v32 = vld [vmem:[%s5348_s8 + $0x10] sm:$0xff] }
  0xa2   : > { %v4076_v40 = vpop.eup %4075  ;;  %4077 = vrcp.f32 %v817_v37  ;;  %v819_v41 = vmul.f32 %v4074_v38, %v814_v34  ;;  %vm824_vm2 = vweird.f32 %v4074_v38  ;;  %vm855_vm3 = vmor %vm853_vm0, %vm854_vm1  ;;  %v874_v2 = vand.u32 2147483648, %v817_v37  ;;  %1074 = vmatpush.bf16.msra.mxu2 %v3893_v32 }
  0xa3   : > { %v815_v43 = vadd.f32 1.0, %v4076_v40  ;;  %v850_v44 = vsub.f32 1.0, %v849_v39  ;;  %vm825_vm6 = vmor %vm823_vm5, %vm824_vm2  ;;  %vm868_vm9 = vweird.f32 %v817_v37  ;;  %v872_v4 = vand.u32 2147483647, %v817_v37 }
  0xa4   : > { %v820_v46 = vsub.f32 1.0, %v819_v41  ;;  %v875_v10 = vor.u32 1.1754944e-38, %v874_v2 }
  0xa5   : > { %4079 = vrcp.f32 %v815_v43  ;;  %v851_v48 = vmul.f32 %v4072_v36, %v850_v44  ;;  %v844_v6 = vand.u32 2147483648, %v815_v43  ;;  %v842_v9 = vand.u32 2147483647, %v815_v43 }
  0xa6   : > { %v821_v49 = vmul.f32 %v4074_v38, %v820_v46  ;;  %vm873_vm13 = vcmp.eq.f32.partialorder %v872_v4, 8.507059e+37  ;;  %vm838_vm14 = vweird.f32 %v815_v43  ;;  %1075 = vmatpush.bf16.msra.mxu2 %v3892_v33 }
  0xa7   : > { %v852_v52 = vadd.f32 %v4072_v36, %v851_v48  ;;  %v845_v14 = vor.u32 1.1754944e-38, %v844_v6  ;;  %vm843_vm0 = vcmp.eq.f32.partialorder %v842_v9, 8.507059e+37 }
  0xa8   : > { %v4078_v53 = vpop.eup %4077  ;;  %v822_v54 = vadd.f32 %v4074_v38, %v821_v49 }
  0xa9   : > { %v856_v56 = vsel %vm855_vm3, %v4072_v36, %v852_v52  ;;  %v864_v57 = vmul.f32 %v4078_v53, %v817_v37  ;;  %vm869_vm10 = vweird.f32 %v4078_v53  ;;  %v3891_v36 = vld [vmem:[%s5348_s8] sm:$0xff]  ;;  %s4127_s8 = smov 88  }
  0xaa   : > { %v826_v58 = vsel %vm825_vm6, %v4074_v38, %v822_v54  ;;  %v861_v59 = vsel %vm858_vm4, %v860_v51, %v856_v56  ;;  %vm870_vm12 = vmor %vm868_vm9, %vm869_vm10  ;;  %1076 = vmatpush.bf16.msra.mxu2 %v3891_v36 }
  0xab   : > { %v4080_v60 = vpop.eup %4079  ;;  %v831_v61 = vsel %vm828_vm7, %v830_v55, %v826_v58  ;;  %v880_v62 = vmul.f32 %v861_v59, %v4291_v19  ;;  %v865_v63 = vsub.f32 1.0, %v864_v57  ;;  %v4062_v59 = vld [vmem:[%s5349_s4] ss:$0 sm:$0xff]  ;;  %s751_s4 = scalar_lea.vmem %s5334_s22, %s3292_s2 }
  0xac   : > { %v878_v0 = vmul.f32 %v831_v61, %v4293_v20  ;;  %v834_v1 = vmul.f32 %v4080_v60, %v815_v43  ;;  %vm839_vm11 = vweird.f32 %v4080_v60 }
  0xad   : > { %3299 = vmatmul.msk.f32.vlgmr.msra.gmra.mxu1 %vm883_vm8, %v880_v62  ;;  %v866_v3 = vmul.f32 %v4078_v53, %v865_v63  ;;  %vm840_vm15 = vmor %vm838_vm14, %vm839_vm11 }
  0xae   : > { %3297 = vmatmul.msk.f32.vlgmr.msra.gmra.mxu0 %vm883_vm8, %v878_v0  ;;  %v835_v5 = vsub.f32 1.0, %v834_v1 }
  0xaf   : > { %v867_v7 = vadd.f32 %v4078_v53, %v866_v3 }
  0xb0   : > { %v836_v8 = vmul.f32 %v4080_v60, %v835_v5 }
  0xb1   : > { %v871_v11 = vsel %vm870_vm12, %v4078_v53, %v867_v7 }
  0xb2   : > { %v837_v12 = vadd.f32 %v4080_v60, %v836_v8  ;;  %v876_v13 = vsel %vm873_vm13, %v875_v10, %v871_v11 }
  0xb3   : > { %v881_v15 = vmul.f32 %v876_v13, %v4297_v27 }
  0xb4   : > { %v841_v16 = vsel %vm840_vm15, %v4080_v60, %v837_v12 }
  0xb5   : > { %v846_v17 = vsel %vm843_vm0, %v845_v14, %v841_v16  ;;  %3300 = vmatmul.msk.f32.gmra.mxu1 %vm883_vm8, %v881_v15 }
  0xb6   : > { %v879_v18 = vmul.f32 %v846_v17, %v4299_v28 }
  0xb8   : > { %3298 = vmatmul.msk.f32.gmra.mxu0 %vm883_vm8, %v879_v18 }
 0x12a   : > { %v919_v24 = vpop.f32.mrf.mxu1 }
 0x12b   : > { %v913_v19 = vpop.f32.mrf.mxu0  ;;  %v4313_v26 = vsub.f32 %v880_v62, %v919_v24 }
 0x12c   : > { %v925_v20 = vsub.f32 %v878_v0, %v913_v19 }
 0x12d   : > { %v931_v27 = vmul.f32 %v4313_v26, %v4313_v26 }
 0x12e   : > { %v929_v21 = vmul.f32 %v925_v20, %v925_v20 }
 0x130   : > { %3301 = vmatmul.msk.f32.vlgmr.msrb.gmra.mxu1 %vm883_vm8, %v929_v21 }
 0x132   : > { %v922_v29 = vpop.f32.mrf.mxu1 }
 0x133   : > { %v4318_v28 = vsub.f32 %v881_v15, %v922_v29 }
 0x135   : > { %v916_v22 = vpop.f32.mrf.mxu0  ;;  %v932_v30 = vmul.f32 %v4318_v28, %v4318_v28 }
 0x136   : > { %v926_v23 = vsub.f32 %v879_v18, %v916_v22  ;;  %v4063_v18 = vld [vmem:[%s5321_s9] ss:$0 sm:$0xff] }
 0x138   : > { %v930_v25 = vmul.f32 %v926_v23, %v926_v23 }
 0x13a   : > { %3302 = vmatmul.msk.f32.gmra.mxu1 %vm883_vm8, %v930_v25 }
 0x142   : > { %3303 = vmatmul.msk.f32.gmra.mxu1 %vm883_vm8, %v931_v27 }
 0x14a   : > { %3304 = vmatmul.msk.f32.gmra.mxu1 %vm883_vm8, %v932_v30 }
 0x1ad   : > { %v962_v34 = vpop.f32.mrf.mxu1 }
 0x1ae   : > { %v963_v35 = vadd.f32 1e-05, %v962_v34 }
 0x1b0   : > { %4081 = vrsqrt.f32 %v963_v35  ;;  %vm980_vm2 = vweird.f32 %v963_v35 }
 0x1b6   : > { %v4082_v37 = vpop.eup %4081 }
 0x1b7   : > { %v975_v38 = vmul.f32 %v4082_v37, %v963_v35  ;;  %v965_v39 = vpop.f32.mrf.mxu1  ;;  %vm981_vm1 = vweird.f32 %v4082_v37 }
 0x1b8   : > { %v966_v40 = vadd.f32 1e-05, %v965_v39  ;;  %vm982_vm3 = vmor %vm980_vm2, %vm981_vm1 }
 0x1b9   : > { %v976_v41 = vmul.f32 %v4082_v37, %v975_v38 }
 0x1ba   : > { %4083 = vrsqrt.f32 %v966_v40  ;;  %vm990_vm5 = vweird.f32 %v966_v40 }
 0x1bb   : > { %v977_v42 = vmul.f32 0.5, %v976_v41 }
 0x1bd   : > { %v978_v43 = vsub.f32 1.5, %v977_v42 }
 0x1bf   : > { %v968_v44 = vpop.f32.mrf.mxu1  ;;  %v979_v48 = vmul.f32 %v4082_v37, %v978_v43 }
 0x1c0   : > { %v4084_v45 = vpop.eup %4083  ;;  %v969_v46 = vadd.f32 1e-05, %v968_v44 }
 0x1c1   : > { %v985_v47 = vmul.f32 %v4084_v45, %v966_v40  ;;  %v983_v51 = vsel %vm982_vm3, %v4082_v37, %v979_v48  ;;  %vm991_vm4 = vweird.f32 %v4084_v45 }
 0x1c2   : > { %4085 = vrsqrt.f32 %v969_v46  ;;  %vm992_vm6 = vmor %vm990_vm5, %vm991_vm4  ;;  %v1014_v58 = vmul.f32 %v983_v51, %v925_v20  ;;  %vm1000_vm9 = vweird.f32 %v969_v46 }
 0x1c3   : > { %v986_v49 = vmul.f32 %v4084_v45, %v985_v47 }
 0x1c4   : > { %v1021_v0 = vmul.f32 %v4062_v59, %v1014_v58 }
 0x1c5   : > { %v987_v50 = vmul.f32 0.5, %v986_v49 }
 0x1c7   : > { %v988_v52 = vsub.f32 1.5, %v987_v50  ;;  %v971_v53 = vpop.f32.mrf.mxu1 }
 0x1c8   : > { %v4086_v54 = vpop.eup %4085  ;;  %v972_v55 = vadd.f32 1e-05, %v971_v53 }
 0x1c9   : > { %v989_v56 = vmul.f32 %v4084_v45, %v988_v52  ;;  %v995_v57 = vmul.f32 %v4086_v54, %v969_v46  ;;  %vm1001_vm7 = vweird.f32 %v4086_v54 }
 0x1ca   : > { %4087 = vrsqrt.f32 %v972_v55  ;;  %vm1002_vm10 = vmor %vm1000_vm9, %vm1001_vm7  ;;  %vm1010_vm12 = vweird.f32 %v972_v55 }
 0x1cb   : > { %v996_v60 = vmul.f32 %v4086_v54, %v995_v57  ;;  %v993_v61 = vsel %vm992_vm6, %v4084_v45, %v989_v56 }
 0x1cc   : > { %v1015_v62 = vmul.f32 %v993_v61, %v926_v23 }
 0x1cd   : > { %v997_v63 = vmul.f32 0.5, %v996_v60 }
 0x1ce   : > { %v1022_v1 = vmul.f32 %v4062_v59, %v1015_v62 }
 0x1cf   : > { %v998_v2 = vsub.f32 1.5, %v997_v63 }
 0x1d0   : > { %v4088_v3 = vpop.eup %4087  ;;  %v1025_v4 = vpack.c.bf16 %v1022_v1, %v1021_v0 }
 0x1d1   : > { %v1005_v5 = vmul.f32 %v4088_v3, %v972_v55  ;;  %v999_v6 = vmul.f32 %v4086_v54, %v998_v2  ;;  %vm1011_vm11 = vweird.f32 %v4088_v3 }
 0x1d2   : > { %3321 = vmatmul.msk.bf16.vlgmr.msra.gmra.mxu2 %vm883_vm8, %v1025_v4  ;;  %vm1012_vm13 = vmor %vm1010_vm12, %vm1011_vm11 }
 0x1d3   : > { %v1006_v7 = vmul.f32 %v4088_v3, %v1005_v5  ;;  %v1003_v9 = vsel %vm1002_vm10, %v4086_v54, %v999_v6 }
 0x1d4   : > { %v1016_v12 = vmul.f32 %v1003_v9, %v4313_v26 }
 0x1d5   : > { %v1007_v8 = vmul.f32 0.5, %v1006_v7 }
 0x1d6   : > { %v1023_v15 = vmul.f32 %v4062_v59, %v1016_v12 }
 0x1d7   : > { %v1008_v10 = vsub.f32 1.5, %v1007_v8 }
 0x1d9   : > { %v1009_v11 = vmul.f32 %v4088_v3, %v1008_v10 }
 0x1db   : > { %v1013_v13 = vsel %vm1012_vm13, %v4088_v3, %v1009_v11 }
 0x1dc   : > { %v1017_v14 = vmul.f32 %v1013_v13, %v4318_v28 }
 0x1de   : > { %v1024_v16 = vmul.f32 %v4062_v59, %v1017_v14 }
 0x1e0   : > { %v1026_v17 = vpack.c.bf16 %v1024_v16, %v1023_v15 }
 0x1e2   : > { %3322 = vmatmul.msk.bf16.gmra.mxu2 %vm883_vm8, %v1026_v17 }
 0x255   : > { %v1078_v19 = vpop.f32.mrf.mxu2 }
 0x256   : > { %v1079_v20 = vadd.f32 %v4063_v18, %v1078_v19 }
 0x258   : > { %v3323_v21 = vmul.f32 -1.442695, %v1079_v20 }
 0x25a   : > { %4089 = vpow2.f32 %v3323_v21 }
 0x25d   : > { %v1080_v22 = vpop.f32.mrf.mxu2 }
 0x25e   : > { %v1081_v23 = vadd.f32 %v4063_v18, %v1080_v22 }
 0x260   : > { %v4090_v24 = vpop.eup %4089  ;;  %v3324_v25 = vmul.f32 -1.442695, %v1081_v23 }
 0x261   : > { %v1100_v26 = vadd.f32 1.0, %v4090_v24 }
 0x262   : > { %4091 = vpow2.f32 %v3324_v25 }
 0x263   : > { %4093 = vrcp.f32 %v1100_v26  ;;  %v1115_v35 = vand.u32 2147483648, %v1100_v26  ;;  %v1113_v38 = vand.u32 2147483647, %v1100_v26  ;;  %vm1109_vm15 = vweird.f32 %v1100_v26 }
 0x265   : > { %v1083_v27 = vpop.f32.mrf.mxu2  ;;  %v1116_v44 = vor.u32 1.1754944e-38, %v1115_v35  ;;  %vm1114_vm1 = vcmp.eq.f32.partialorder %v1113_v38, 8.507059e+37  ;;  %v3923_v35 = vld [vmem:[%s5323_s11 + $0xdc] sm:$0xf0] }
 0x266   : > { %v4345_v29 = vadd.f32 %v4063_v18, %v1083_v27 }
 0x268   : > { %v4092_v28 = vpop.eup %4091  ;;  %v3325_v30 = vmul.f32 -1.442695, %v4345_v29 }
 0x269   : > { %v4094_v31 = vpop.eup %4093  ;;  %v1101_v32 = vadd.f32 1.0, %v4092_v28 }
 0x26a   : > { %v1105_v33 = vmul.f32 %v4094_v31, %v1100_v26  ;;  %4095 = vpow2.f32 %v3325_v30  ;;  %vm1110_vm14 = vweird.f32 %v4094_v31 }
 0x26b   : > { %4097 = vrcp.f32 %v1101_v32  ;;  %vm1111_vm0 = vmor %vm1109_vm15, %vm1110_vm14  ;;  %v1130_v51 = vand.u32 2147483648, %v1101_v32  ;;  %v1128_v53 = vand.u32 2147483647, %v1101_v32  ;;  %vm1124_vm3 = vweird.f32 %v1101_v32 }
 0x26c   : > { %v1106_v34 = vsub.f32 1.0, %v1105_v33  ;;  %v3433_v33 = vld [vmem:[%s5323_s11 + $0xc0] sm:$0xf] }
 0x26d   : > { %v1085_v36 = vpop.f32.mrf.mxu2  ;;  %v1131_v57 = vor.u32 1.1754944e-38, %v1130_v51  ;;  %vm1129_vm5 = vcmp.eq.f32.partialorder %v1128_v53, 8.507059e+37  ;;  %v3434_v38 = vor.u32 %v3923_v35, %v3433_v33  ;;  %v3411_v53 = vld [vmem:[%s5323_s11 + $0xa8] sm:$0xf0]  ;;  %v3449_v35 = vld [vmem:[%s5323_s11 + $0xd0] sm:$0xf] }
 0x26e   : > { %v1107_v37 = vmul.f32 %v4094_v31, %v1106_v34  ;;  %v4348_v39 = vadd.f32 %v4063_v18, %v1085_v36  ;;  %v3441_v36 = vld [vmem:[%s5323_s11 + $0xc8] sm:$0xf] }
 0x26f   : > { %1532 = vmatpush.bf16.msra.mxu1 %v3434_v38 }
 0x270   : > { %v4096_v40 = vpop.eup %4095  ;;  %v1108_v41 = vadd.f32 %v4094_v31, %v1107_v37  ;;  %v3326_v42 = vmul.f32 -1.442695, %v4348_v39  ;;  %v3924_v37 = vld [vmem:[%s5323_s11 + $0xe4] sm:$0xf0] }
 0x271   : > { %v4098_v43 = vpop.eup %4097  ;;  %v1102_v45 = vadd.f32 1.0, %v4096_v40  ;;  %v3920_v40 = vld [vmem:[%s5323_s11 + $0xcc] sm:$0xf] }
 0x272   : > { %v1112_v46 = vsel %vm1111_vm0, %v4094_v31, %v1108_v41  ;;  %v1120_v47 = vmul.f32 %v4098_v43, %v1101_v32  ;;  %4099 = vpow2.f32 %v3326_v42  ;;  %vm1125_vm2 = vweird.f32 %v4098_v43  ;;  %v3919_v31 = vld [vmem:[%s5323_s11 + $0xc4] sm:$0xf]  ;;  %v3443_v41 = vld [vmem:[%s5323_s11 + $0xe8] sm:$0xf0] }
 0x273   : > { %v1117_v48 = vsel %vm1114_vm1, %v1116_v44, %v1112_v46  ;;  %4101 = vrcp.f32 %v1102_v45  ;;  %vm1126_vm4 = vmor %vm1124_vm3, %vm1125_vm2  ;;  %v1145_v0 = vand.u32 2147483648, %v1102_v45  ;;  %v1143_v2 = vand.u32 2147483647, %v1102_v45  ;;  %v3435_v32 = vld [vmem:[%s5323_s11 + $0xe0] sm:$0xf0] }
 0x274   : > { %v1164_v49 = vmul.f32 %v1117_v48, %v1079_v20  ;;  %v1121_v50 = vsub.f32 1.0, %v1120_v47  ;;  %vm1139_vm7 = vweird.f32 %v1102_v45  ;;  %v3438_v34 = vor.u32 %v3919_v31, %v3435_v32  ;;  %v3403_v44 = vld [vmem:[%s5323_s11 + $0xa0] sm:$0xf0]  ;;  %v3915_v47 = vld [vmem:[%s5323_s11 + $0x9c] sm:$0xf0] }
 0x275   : > { %v1146_v5 = vor.u32 1.1754944e-38, %v1145_v0  ;;  %vm1144_vm10 = vcmp.eq.f32.partialorder %v1143_v2, 8.507059e+37  ;;  %v3446_v42 = vor.u32 %v3920_v40, %v3443_v41  ;;  %v3409_v48 = vld [vmem:[%s5323_s11 + $0x88] sm:$0xf]  ;;  %v3904_v0 = vld [vmem:[%s5323_s11 + $0x4c] sm:$0xf] }
 0x276   : > { %v1122_v52 = vmul.f32 %v4098_v43, %v1121_v50  ;;  %3327 = vmatmul.msk.f32.vlgmr.msra.gmra.mxu3 %vm883_vm8, %v1164_v49  ;;  %1551 = vmatpush.bf16.msrb.mxu2 %v3438_v34  ;;  %v3921_v31 = vld [vmem:[%s5323_s11 + $0xd4] sm:$0xf]  ;;  %v3417_v40 = vld [vmem:[%s5323_s11 + $0x90] sm:$0xf] }
 0x277   : > { %1589 = vmatpush.bf16.msra.mxu0 %v3446_v42  ;;  %v3451_v32 = vld [vmem:[%s5323_s11 + $0xf0] sm:$0xf0] }
 0x278   : > { %v4100_v54 = vpop.eup %4099  ;;  %v1123_v55 = vadd.f32 %v4098_v43, %v1122_v52  ;;  %v3912_v52 = vld [vmem:[%s5323_s11 + $0x8c] sm:$0xf]  ;;  %v3454_v34 = vor.u32 %v3921_v31, %v3451_v32  ;;  %v3361_v31 = vld [vmem:[%s5323_s11 + $0x18] sm:$0xf] }
 0x279   : > { %v4102_v56 = vpop.eup %4101  ;;  %v1103_v58 = vadd.f32 1.0, %v4100_v54  ;;  %v3414_v54 = vor.u32 %v3912_v52, %v3411_v53 }
 0x27a   : > { %v1127_v59 = vsel %vm1126_vm4, %v4098_v43, %v1123_v55  ;;  %v1135_v60 = vmul.f32 %v4102_v56, %v1102_v45  ;;  %vm1140_vm6 = vweird.f32 %v4102_v56  ;;  %v3911_v43 = vld [vmem:[%s5323_s11 + $0x84] sm:$0xf]  ;;  %v3401_v45 = vld [vmem:[%s5323_s11 + $0x80] sm:$0xf] }
 0x27b   : > { %v1132_v61 = vsel %vm1129_vm5, %v1131_v57, %v1127_v59  ;;  %4103 = vrcp.f32 %v1103_v58  ;;  %vm1141_vm9 = vmor %vm1139_vm7, %vm1140_vm6  ;;  %v1160_v11 = vand.u32 2147483648, %v1103_v58  ;;  %v1158_v13 = vand.u32 2147483647, %v1103_v58  ;;  %v3903_v55 = vld [vmem:[%s5323_s11 + $0x44] sm:$0xf]  ;;  %1590 = vmatpush.bf16.msra.mxu0 %v3414_v54 }
 0x27c   : > { %v1165_v62 = vmul.f32 %v1132_v61, %v1081_v23  ;;  %v1136_v63 = vsub.f32 1.0, %v1135_v60  ;;  %vm1154_vm12 = vweird.f32 %v1103_v58  ;;  %v3406_v46 = vor.u32 %v3911_v43, %v3403_v44  ;;  %v3369_v57 = vld [vmem:[%s5323_s11 + $0x40] sm:$0xf]  ;;  %v3377_v60 = vld [vmem:[%s5323_s11 + $0x48] sm:$0xf] }
 0x27d   : > { %v1161_v15 = vor.u32 1.1754944e-38, %v1160_v11  ;;  %vm1159_vm14 = vcmp.eq.f32.partialorder %v1158_v13, 8.507059e+37  ;;  %v3402_v50 = vor.u32 %v3915_v47, %v3401_v45  ;;  %v3907_v59 = vld [vmem:[%s5323_s11 + $0x5c] sm:$0xf0]  ;;  %v3908_v61 = vld [vmem:[%s5323_s11 + $0x64] sm:$0xf0] }
 0x27e   : > { %v1137_v1 = vmul.f32 %v4102_v56, %v1136_v63  ;;  %3328 = vmatmul.msk.f32.gmra.mxu3 %vm883_vm8, %v1165_v62  ;;  %1552 = vmatpush.bf16.msrb.mxu2 %v3406_v46  ;;  %v3378_v63 = vor.u32 %v3908_v61, %v3377_v60  ;;  %v3896_v13 = vld [vmem:[%s5323_s11 + $0xc] sm:$0xf]  ;;  %v3917_v44 = vld [vmem:[%s5323_s11 + $0xac] sm:$0xf0]  ;;  %v3905_v45 = vld [vmem:[%s5323_s11 + $0x54] sm:$0xf] }
 0x27f   : > { %1533 = vmatpush.bf16.msra.mxu1 %v3402_v50  ;;  %v3387_v46 = vld [vmem:[%s5323_s11 + $0x70] sm:$0xf0]  ;;  %v3418_v47 = vor.u32 %v3917_v44, %v3417_v40  ;;  %v3922_v50 = vld [vmem:[%s5323_s11 + $0xdc] sm:$0xf]  ;;  %v1734_v44 = vld [vmem:[%s5326_s14 + $0x8] sm:$0x1] }
 0x280   : > { %v1138_v3 = vadd.f32 %v4102_v56, %v1137_v1  ;;  %v3379_v1 = vld [vmem:[%s5323_s11 + $0x68] sm:$0xf0]  ;;  %v3459_v54 = vld [vmem:[%s5323_s11 + $0xf8] sm:$0xf0]  ;;  %vm1748_vm6 = vcmask 1040384  }
 0x281   : > { %v4104_v4 = vpop.eup %4103  ;;  %v3382_v2 = vor.u32 %v3904_v0, %v3379_v1  ;;  %v3385_v1 = vld [vmem:[%s5323_s11 + $0x50] sm:$0xf] }
 0x282   : > { %v1142_v6 = vsel %vm1141_vm9, %v4102_v56, %v1138_v3  ;;  %v1150_v7 = vmul.f32 %v4104_v4, %v1103_v58  ;;  %vm1155_vm11 = vweird.f32 %v4104_v4  ;;  %v3371_v56 = vld [vmem:[%s5323_s11 + $0x60] sm:$0xf0] }
 0x283   : > { %v1147_v8 = vsel %vm1144_vm10, %v1146_v5, %v1142_v6  ;;  %vm1156_vm13 = vmor %vm1154_vm12, %vm1155_vm11  ;;  %v3374_v58 = vor.u32 %v3903_v55, %v3371_v56  ;;  %v3895_v3 = vld [vmem:[%s5323_s11 + $0x4] sm:$0xf]  ;;  %v3337_v5 = vld [vmem:[%s5323_s11] sm:$0xf]  ;;  %1591 = vmatpush.bf16.msra.mxu0 %v3382_v2  ;;  %v3462_v56 = vor.u32 %v3922_v50, %v3459_v54 }
 0x284   : > { %v1166_v9 = vmul.f32 %v1147_v8, %v4345_v29  ;;  %v1151_v10 = vsub.f32 1.0, %v1150_v7  ;;  %v3899_v7 = vld [vmem:[%s5323_s11 + $0x1c] sm:$0xf0]  ;;  %v3345_v8 = vld [vmem:[%s5323_s11 + $0x8] sm:$0xf] }
 0x285   : > { %1553 = vmatpush.bf16.msrb.mxu2 %v3374_v58  ;;  %v3338_v11 = vor.u32 %v3899_v7, %v3337_v5  ;;  %v3425_v55 = vld [vmem:[%s5323_s11 + $0x98] sm:$0xf]  ;;  %v3914_v58 = vld [vmem:[%s5323_s11 + $0x9c] sm:$0xf]  ;;  %v3909_v2 = vld [vmem:[%s5323_s11 + $0x6c] sm:$0xf0] }
 0x286   : > { %v1152_v12 = vmul.f32 %v4104_v4, %v1151_v10  ;;  %3329 = vmatmul.msk.f32.gmra.mxu3 %vm883_vm8, %v1166_v9  ;;  %v3386_v7 = vor.u32 %v3909_v2, %v3385_v1 }
 0x288   : > { %v1153_v14 = vadd.f32 %v4104_v4, %v1152_v12 }
 0x28a   : > { %v1157_v16 = vsel %vm1156_vm13, %v4104_v4, %v1153_v14  ;;  %v3339_v4 = vld [vmem:[%s5323_s11 + $0x20] sm:$0xf0]  ;;  %v3347_v14 = vld [vmem:[%s5323_s11 + $0x28] sm:$0xf0]  ;;  %vm1735_vm13 = vcmask 72704  }
 0x28b   : > { %v1162_v17 = vsel %vm1159_vm14, %v1161_v15, %v1157_v16  ;;  %v3342_v6 = vor.u32 %v3895_v3, %v3339_v4  ;;  %v3350_v16 = vor.u32 %v3896_v13, %v3347_v14  ;;  %v4565_v4 = vld [vmem:[%s5322_s10] ss:$0 sm:$0xff]  ;;  %v3910_v13 = vld [vmem:[%s5323_s11 + $0x74] sm:$0xf0]  ;;  %v3906_v14 = vld [vmem:[%s5323_s11 + $0x5c] sm:$0xf] }
 0x28c   : > { %v1167_v18 = vmul.f32 %v1162_v17, %v4348_v39  ;;  %v3442_v39 = vor.u32 %v3924_v37, %v3441_v36  ;;  %v3925_v36 = vld [vmem:[%s5323_s11 + $0xec] sm:$0xf0]  ;;  %v3913_v37 = vld [vmem:[%s5323_s11 + $0x94] sm:$0xf]  ;;  %vm1691_vm14 = vcmask 195584  }
 0x28d   : > { %1554 = vmatpush.bf16.msrb.mxu2 %v3342_v6  ;;  %1592 = vmatpush.bf16.msra.mxu0 %v3350_v16  ;;  %v3450_v38 = vor.u32 %v3925_v36, %v3449_v35 }
 0x28e   : > { %3330 = vmatmul.msk.f32.gmra.mxu3 %vm883_vm8, %v1167_v18 }
 0x28f   : > { %1570 = vmatpush.bf16.msrb.mxu3 %v3442_v39  ;;  %v3419_v39 = vld [vmem:[%s5323_s11 + $0xb0] sm:$0xf0] }
 0x290   : > { %v3422_v43 = vor.u32 %v3913_v37, %v3419_v39 }
 0x291   : > { %1627 = vmatpush.bf16.msra.mxu2 %v3454_v34 }
 0x295   : > { %1628 = vmatpush.bf16.msra.mxu2 %v3422_v43 }
 0x2f9   : > { %v1198_v19 = vpop.f32.mrf.mxu3 }
 0x2fa   : > { %v4357_v20 = vsub.f32 %v1164_v49, %v1198_v19  ;;  %v3916_v49 = vld [vmem:[%s5323_s11 + $0xa4] sm:$0xf0] }
 0x2fb   : > { %v3410_v51 = vor.u32 %v3916_v49, %v3409_v48  ;;  %v3457_v48 = vld [vmem:[%s5323_s11 + $0xd8] sm:$0xf] }
 0x2fc   : > { %v1214_v21 = vmul.f32 %v4357_v20, %v4357_v20  ;;  %v3926_v49 = vld [vmem:[%s5323_s11 + $0xf4] sm:$0xf0] }
 0x2fd   : > { %1571 = vmatpush.bf16.msrb.mxu3 %v3410_v51  ;;  %v3458_v53 = vor.u32 %v3926_v49, %v3457_v48 }
 0x2fe   : > { %3331 = vmatmul.msk.f32.vlgmr.msrb.gmra.mxu0 %vm883_vm8, %v1214_v21 }
 0x2ff   : > { %1665 = vmatpush.bf16.msrb.mxu0 %v3462_v56  ;;  %v1684_v56 = vld [vmem:[%s4673_s23] sm:$0xff] }
 0x301   : > { %v1201_v22 = vpop.f32.mrf.mxu3  ;;  %1572 = vmatpush.bf16.msrb.mxu3 %v3378_v63  ;;  %v3390_v63 = vor.u32 %v3905_v45, %v3387_v46  ;;  %v4631_v45 = vld [vmem:[%s5325_s13 + $0x10] sm:$0xff] }
 0x302   : > { %v4362_v23 = vsub.f32 %v1165_v62, %v1201_v22  ;;  %v3370_v62 = vor.u32 %v3907_v59, %v3369_v57  ;;  %v3918_v57 = vld [vmem:[%s5323_s11 + $0xb4] sm:$0xf0]  ;;  %v3427_v59 = vld [vmem:[%s5323_s11 + $0xb8] sm:$0xf0] }
 0x303   : > { %v3426_v0 = vor.u32 %v3918_v57, %v3425_v55  ;;  %v3430_v6 = vor.u32 %v3914_v58, %v3427_v59  ;;  %1629 = vmatpush.bf16.msra.mxu2 %v3390_v63  ;;  %v4657_v55 = vld [vmem:[%s5325_s13] sm:$0xff]  ;;  %v1685_v58 = vld [vmem:[%s4673_s23 + $0x8] sm:$0xff]  ;;  %v1683_v63 = vld [vmem:[%s739_s6 + $0x18] sm:$0xff] }
 0x304   : > { %v1215_v24 = vmul.f32 %v4362_v23, %v4362_v23  ;;  %1534 = vmatpush.bf16.msra.mxu1 %v3370_v62  ;;  %v1680_v57 = vld [vmem:[%s739_s6] sm:$0xff]  ;;  %v1681_v59 = vld [vmem:[%s739_s6 + $0x8] sm:$0xff] }
 0x305   : > { %1666 = vmatpush.bf16.msrb.mxu0 %v3430_v6 }
 0x306   : > { %3332 = vmatmul.msk.f32.gmra.mxu0 %vm883_vm8, %v1215_v24 }
 0x308   : > { %1535 = vmatpush.bf16.msra.mxu1 %v3338_v11 }
 0x309   : > { %v1204_v25 = vpop.f32.mrf.mxu3 }
 0x30a   : > { %v4367_v26 = vsub.f32 %v1166_v9, %v1204_v25  ;;  %v3900_v9 = vld [vmem:[%s5323_s11 + $0x24] sm:$0xf0] }
 0x30b   : > { %v3346_v12 = vor.u32 %v3900_v9, %v3345_v8  ;;  %v3897_v8 = vld [vmem:[%s5323_s11 + $0x14] sm:$0xf] }
 0x30c   : > { %v1216_v27 = vmul.f32 %v4367_v26, %v4367_v26  ;;  %1608 = vmatpush.bf16.msrb.mxu1 %v3450_v38  ;;  %v3355_v9 = vld [vmem:[%s5323_s11 + $0x30] sm:$0xf0] }
 0x30d   : > { %1573 = vmatpush.bf16.msrb.mxu3 %v3346_v12  ;;  %v3393_v12 = vld [vmem:[%s5323_s11 + $0x58] sm:$0xf]  ;;  %v3358_v16 = vor.u32 %v3897_v8, %v3355_v9  ;;  %v1790_v8 = vld [vmem:[%s5327_s15 + $0x28] sm:$0xff] }
 0x30e   : > { %3333 = vmatmul.msk.f32.gmra.mxu0 %vm883_vm8, %v1216_v27 }
 0x30f   : > { %1630 = vmatpush.bf16.msra.mxu2 %v3358_v16  ;;  %v1786_v16 = vld [vmem:[%s5327_s15 + $0x8] sm:$0xff] }
 0x310   : > { %1609 = vmatpush.bf16.msrb.mxu1 %v3418_v47 }
 0x311   : > { %v1207_v29 = vpop.f32.mrf.mxu3  ;;  %1646 = vmatpush.bf16.msra.mxu3 %v3458_v53 }
 0x312   : > { %v4372_v28 = vsub.f32 %v1167_v18, %v1207_v29 }
 0x314   : > { %v1217_v30 = vmul.f32 %v4372_v28, %v4372_v28  ;;  %1610 = vmatpush.bf16.msrb.mxu1 %v3386_v7  ;;  %v1791_v7 = vld [vmem:[%s5327_s15 + $0x30] sm:$0xff] }
 0x315   : > { %1647 = vmatpush.bf16.msra.mxu3 %v3426_v0 }
 0x316   : > { %3334 = vmatmul.msk.f32.gmra.mxu0 %vm883_vm8, %v1217_v30 }
 0x37b   : > { %v1247_v10 = vpop.f32.mrf.mxu0 }
 0x37c   : > { %v1248_v15 = vadd.f32 1e-05, %v1247_v10 }
 0x37e   : > { %4105 = vrsqrt.f32 %v1248_v15  ;;  %vm1265_vm0 = vweird.f32 %v1248_v15 }
 0x383   : > { %v1250_v17 = vpop.f32.mrf.mxu0 }
 0x384   : > { %v4473_v18 = vpop.eup %4105  ;;  %v4475_v19 = vadd.f32 1e-05, %v1250_v17  ;;  %v3395_v17 = vld [vmem:[%s5323_s11 + $0x78] sm:$0xf0] }
 0x385   : > { %v1260_v21 = vmul.f32 %v4473_v18, %v1248_v15  ;;  %vm1266_vm15 = vweird.f32 %v4473_v18 }
 0x386   : > { %4107 = vrsqrt.f32 %v4475_v19  ;;  %vm4531_vm1 = vmor %vm1265_vm0, %vm1266_vm15  ;;  %vm1275_vm3 = vweird.f32 %v4475_v19  ;;  %vm2038_vm15 = vcmask 1043456   ;;  %vm1856_vm0 = vcmask 261120  }
 0x387   : > { %v1261_v22 = vmul.f32 %v4473_v18, %v1260_v21 }
 0x389   : > { %v1262_v24 = vmul.f32 0.5, %v1261_v22  ;;  %v3901_v22 = vld [vmem:[%s5323_s11 + $0x2c] sm:$0xf0] }
 0x38b   : > { %v1263_v25 = vsub.f32 1.5, %v1262_v24  ;;  %v1253_v27 = vpop.f32.mrf.mxu0 }
 0x38c   : > { %v4480_v29 = vpop.eup %4107  ;;  %v4482_v30 = vadd.f32 1e-05, %v1253_v27 }
 0x38d   : > { %v1270_v33 = vmul.f32 %v4480_v29, %v4475_v19  ;;  %v1264_v41 = vmul.f32 %v4473_v18, %v1263_v25  ;;  %vm1276_vm2 = vweird.f32 %v4480_v29  ;;  %v3398_v25 = vor.u32 %v3906_v14, %v3395_v17 }
 0x38e   : > { %4109 = vrsqrt.f32 %v4482_v30  ;;  %vm1277_vm4 = vmor %vm1275_vm3, %vm1276_vm2  ;;  %vm1285_vm7 = vweird.f32 %v4482_v30  ;;  %vm3086_vm2 = vcmask 326656   ;;  %vm3181_vm3 = vcmask 519168  }
 0x38f   : > { %v1271_v42 = vmul.f32 %v4480_v29, %v1270_v33  ;;  %v1268_v60 = vsel %vm4531_vm1, %v4473_v18, %v1264_v41  ;;  %v3353_v18 = vld [vmem:[%s5323_s11 + $0x10] sm:$0xf]  ;;  %v3898_v33 = vld [vmem:[%s5323_s11 + $0x1c] sm:$0xf]  ;;  %1667 = vmatpush.bf16.msrb.mxu0 %v3398_v25  ;;  %vm2031_vm1 = vcmask 457728  }
 0x390   : > { %v1299_v15 = vmul.f32 %v1268_v60, %v4357_v20  ;;  %v3394_v20 = vor.u32 %v3910_v13, %v3393_v12  ;;  %v3354_v27 = vor.u32 %v3901_v22, %v3353_v18  ;;  %v1686_v60 = vld [vmem:[%s4673_s23 + $0x10] sm:$0xff]  ;;  %v1788_v12 = vld [vmem:[%s5327_s15 + $0x18] sm:$0xff]  ;;  %v1785_v18 = vld [vmem:[%s5327_s15] sm:$0xff] }
 0x391   : > { %v1272_v52 = vmul.f32 0.5, %v1271_v42 }
 0x392   : > { %v1306_v34 = vmul.f32 %v4565_v4, %v1299_v15  ;;  %1648 = vmatpush.bf16.msra.mxu3 %v3394_v20  ;;  %1611 = vmatpush.bf16.msrb.mxu1 %v3354_v27  ;;  %v1787_v15 = vld [vmem:[%s5327_s15 + $0x10] sm:$0xff] }
 0x393   : > { %v1273_v61 = vsub.f32 1.5, %v1272_v52  ;;  %v1256_v62 = vpop.f32.mrf.mxu0 }
 0x394   : > { %v4560_v3 = vpop.eup %4109  ;;  %v4567_v5 = vadd.f32 1e-05, %v1256_v62  ;;  %v1687_v62 = vld [vmem:[%s4673_s23 + $0x18] sm:$0xff] }
 0x395   : > { %v1274_v10 = vmul.f32 %v4480_v29, %v1273_v61  ;;  %v1280_v11 = vmul.f32 %v4560_v3, %v4482_v30  ;;  %vm1286_vm5 = vweird.f32 %v4560_v3  ;;  %v1682_v61 = vld [vmem:[%s739_s6 + $0x10] sm:$0xff] }
 0x396   : > { %4111 = vrsqrt.f32 %v4567_v5  ;;  %vm1287_vm9 = vmor %vm1285_vm7, %vm1286_vm5  ;;  %vm1295_vm11 = vweird.f32 %v4567_v5 }
 0x397   : > { %v1278_v19 = vsel %vm1277_vm4, %v4480_v29, %v1274_v10  ;;  %v1281_v21 = vmul.f32 %v4560_v3, %v1280_v11  ;;  %v3902_v29 = vld [vmem:[%s5323_s11 + $0x34] sm:$0xf0]  ;;  %v1789_v11 = vld [vmem:[%s5327_s15 + $0x20] sm:$0xff] }
 0x398   : > { %v1300_v24 = vmul.f32 %v1278_v19, %v4362_v23  ;;  %v3363_v23 = vld [vmem:[%s5323_s11 + $0x38] sm:$0xf0]  ;;  %v3362_v39 = vor.u32 %v3902_v29, %v3361_v31 }
 0x399   : > { %v1282_v32 = vmul.f32 0.5, %v1281_v21  ;;  %v3366_v40 = vor.u32 %v3898_v33, %v3363_v23 }
 0x39a   : > { %v1307_v35 = vmul.f32 %v4565_v4, %v1300_v24  ;;  %1649 = vmatpush.bf16.msra.mxu3 %v3362_v39 }
 0x39b   : > { %v1283_v36 = vsub.f32 1.5, %v1282_v32  ;;  %1668 = vmatpush.bf16.msrb.mxu0 %v3366_v40 }
 0x39c   : > { %v4112_v37 = vpop.eup %4111  ;;  %v1310_v38 = vpack.c.bf16 %v1307_v35, %v1306_v34 }
 0x39d   : > { %v1290_v41 = vmul.f32 %v4112_v37, %v4567_v5  ;;  %v1284_v42 = vmul.f32 %v4560_v3, %v1283_v36  ;;  %vm1296_vm10 = vweird.f32 %v4112_v37 }
 0x39e   : > { %3463 = vmatmul.msk.bf16.vlgmr.msra.gmra.mxu1 %vm883_vm8, %v1310_v38  ;;  %3465 = vmatmul.msk.bf16.vlgmr.msrb.gmra.mxu2 %vm883_vm8, %v1310_v38  ;;  %vm1297_vm12 = vmor %vm1295_vm11, %vm1296_vm10 }
 0x39f   : > { %v1291_v43 = vmul.f32 %v4112_v37, %v1290_v41  ;;  %3467 = vmatmul.msk.bf16.vlgmr.msrb.gmra.mxu3 %vm883_vm8, %v1310_v38  ;;  %3469 = vmatmul.msk.bf16.vlgmr.msra.gmra.mxu0 %vm883_vm8, %v1310_v38  ;;  %v1288_v47 = vsel %vm1287_vm9, %v4560_v3, %v1284_v42  ;;  %v1793_v3 = vld [vmem:[%s5327_s15 + $0x40] sm:$0xff] }
 0x3a0   : > { %3483 = vmatpush.msk.msrb.mxu2 %vm1748_vm6, %v1734_v44  ;;  %1717 = vmatpush.msra.mxu1 %v4631_v45  ;;  %v1301_v50 = vmul.f32 %v1288_v47, %v4367_v26  ;;  %v1733_v26 = vld [vmem:[%s5326_s14] sm:$0xff] }
 0x3a1   : > { %v1292_v46 = vmul.f32 0.5, %v1291_v43  ;;  %1814 = vmatpush.msrb.mxu3 %v1793_v3  ;;  %v3943_v3 = vld [vmem:[%s5328_s16 + $0x84] sm:$0xf] }
 0x3a2   : > { %v1308_v30 = vmul.f32 %v4565_v4, %v1301_v50  ;;  %1767 = vmatpush.msrb.mxu2 %v1733_v26  ;;  %v1887_v50 = vld [vmem:[%s5328_s16 + $0xc0] sm:$0xff]  ;;  %v3948_v26 = vld [vmem:[%s5328_s16 + $0xa4] sm:$0xf0] }
 0x3a3   : > { %v1293_v48 = vsub.f32 1.5, %v1292_v46 }
 0x3a5   : > { %v1294_v49 = vmul.f32 %v4112_v37, %v1293_v48 }
 0x3a7   : > { %v1298_v51 = vsel %vm1297_vm12, %v4112_v37, %v1294_v49  ;;  %v1888_v49 = vld [vmem:[%s5328_s16 + $0xc8] sm:$0xff] }
 0x3a8   : > { %v1302_v52 = vmul.f32 %v1298_v51, %v4372_v28  ;;  %v4652_v28 = vld [vmem:[%s5325_s13 + $0x8] sm:$0xff]  ;;  %v1969_v51 = vunpack.c.l.b16 %v1888_v49 }
 0x3a9   : > { %1718 = vmatpush.msra.mxu1 %v4652_v28 }
 0x3aa   : > { %v1309_v53 = vmul.f32 %v4565_v4, %v1302_v52  ;;  %v1792_v4 = vld [vmem:[%s5327_s15 + $0x38] sm:$0xff]  ;;  %v1970_v52 = vunpack.c.h.b16 %v1888_v49  ;;  %v3502_v49 = vld [vmem:[%s5328_s16 + $0x8] sm:$0xf] }
 0x3ab   : > { %1719 = vmatpush.msra.mxu1 %v4657_v55  ;;  %1815 = vmatpush.msrb.mxu3 %v1792_v4  ;;  %v3560_v4 = vld [vmem:[%s5328_s16 + $0xa0] sm:$0xf0] }
 0x3ac   : > { %v1311_v54 = vpack.c.bf16 %v1309_v53, %v1308_v30  ;;  %v1967_v30 = vunpack.c.l.b16 %v1887_v50  ;;  %v1968_v53 = vunpack.c.h.b16 %v1887_v50 }
 0x3ad   : > { %1816 = vmatpush.msrb.mxu3 %v1791_v7 }
 0x3ae   : > { %3464 = vmatmul.msk.bf16.gmra.mxu1 %vm883_vm8, %v1311_v54  ;;  %3466 = vmatmul.msk.bf16.gmra.mxu2 %vm883_vm8, %v1311_v54 }
 0x3af   : > { %3468 = vmatmul.msk.bf16.gmra.mxu3 %vm883_vm8, %v1311_v54  ;;  %3470 = vmatmul.msk.bf16.gmra.mxu0 %vm883_vm8, %v1311_v54 }
 0x3b0   : > { %1817 = vmatpush.msrb.mxu3 %v1790_v8 }
 0x3b2   : > { %1818 = vmatpush.msrb.mxu3 %v1789_v11 }
 0x3b4   : > { %1819 = vmatpush.msrb.mxu3 %v1788_v12 }
 0x3b6   : > { %1820 = vmatpush.msrb.mxu3 %v1787_v15 }
 0x3b8   : > { %1821 = vmatpush.msrb.mxu3 %v1786_v16 }
 0x3ba   : > { %1822 = vmatpush.msrb.mxu3 %v1785_v18 }
 0x3be   : > { %3471 = vmatmul.msk.bf16.vlgmr.msrb.gmra.mxu1 %vm883_vm8, %v1310_v38  ;;  %3473 = vmatmul.msk.bf16.vlgmr.msra.gmra.mxu2 %vm883_vm8, %v1310_v38 }
 0x3bf   : > { %3475 = vmatmul.msk.bf16.vlgmr.msra.gmra.mxu3 %vm883_vm8, %v1310_v38  ;;  %3477 = vmatmul.msk.bf16.vlgmr.msrb.gmra.mxu0 %vm883_vm8, %v1310_v38 }
 0x3ce   : > { %3472 = vmatmul.msk.bf16.gmra.mxu1 %vm883_vm8, %v1311_v54  ;;  %3474 = vmatmul.msk.bf16.gmra.mxu2 %vm883_vm8, %v1311_v54 }
 0x3cf   : > { %3476 = vmatmul.msk.bf16.gmra.mxu3 %vm883_vm8, %v1311_v54  ;;  %3478 = vmatmul.msk.bf16.gmra.mxu0 %vm883_vm8, %v1311_v54  ;;  %vm1794_vm8 = vcmask 588800   ;;  %v3566_v54 = vld [vmem:[%s5328_s16 + $0x88] sm:$0xf] }
 0x3d0   : > { %v3567_v16 = vor.u32 %v3948_v26, %v3566_v54 }
 0x3de   : > { %3484 = vmatmul.msk.f32.vlgmr.msrb.gmra.mxu2 %vm1735_vm13, %v1684_v56  ;;  %3479 = vmatmul.msk.f32.vlgmr.msra.gmra.mxu1 %vm1691_vm14, %v1680_v57  ;;  %v2001_v56 = vpack.c.b16 %v1969_v51, %v1969_v51  ;;  %v2002_v57 = vpack.c.b16 %v1970_v52, %v1970_v52  ;;  %v3932_v51 = vld [vmem:[%s5328_s16 + $0x24] sm:$0xf0] }
 0x3e0   : > { %v2046_v8 = vsel %vm2038_vm15, %v2001_v56, 0  ;;  %v2049_v11 = vsel %vm2038_vm15, %v2002_v57, 0  ;;  %v3503_v56 = vor.u32 %v3932_v51, %v3502_v49  ;;  %v3574_v51 = vld [vmem:[%s5328_s16 + $0x90] sm:$0xf] }
 0x3e1   : > { %2105 = vmatpush.bf16.msra.mxu2 %v2046_v8  ;;  %2124 = vmatpush.bf16.msra.mxu3 %v2049_v11  ;;  %v1890_v8 = vld [vmem:[%s5328_s16 + $0xd8] sm:$0xff]  ;;  %v1889_v11 = vld [vmem:[%s5328_s16 + $0xd0] sm:$0xff] }
 0x3e5   : > { %2106 = vmatpush.bf16.msra.mxu2 %v3567_v16  ;;  %v1971_v16 = vunpack.c.l.b16 %v1889_v11 }
 0x3e6   : > { %3485 = vmatmul.msk.f32.gmra.mxu2 %vm1735_vm13, %v1685_v58  ;;  %3480 = vmatmul.msk.f32.gmra.mxu1 %vm1691_vm14, %v1681_v59  ;;  %v1999_v58 = vpack.c.b16 %v1967_v30, %v1967_v30  ;;  %v2000_v59 = vpack.c.b16 %v1968_v53, %v1968_v53  ;;  %v3928_v30 = vld [vmem:[%s5328_s16 + $0xc] sm:$0xf] }
 0x3e7   : > { %v3504_v53 = vld [vmem:[%s5328_s16 + $0x28] sm:$0xf0] }
 0x3e8   : > { %v2040_v12 = vsel %vm2038_vm15, %v1999_v58, 0  ;;  %v2043_v15 = vsel %vm2038_vm15, %v2000_v59, 0  ;;  %v3507_v57 = vor.u32 %v3928_v30, %v3504_v53  ;;  %v3550_v30 = vld [vmem:[%s5328_s16 + $0x58] sm:$0xf] }
 0x3e9   : > { %2067 = vmatpush.bf16.msra.mxu0 %v2040_v12  ;;  %2086 = vmatpush.bf16.msrb.mxu1 %v2043_v15  ;;  %v1973_v12 = vunpack.c.l.b16 %v1890_v8  ;;  %v1974_v15 = vunpack.c.h.b16 %v1890_v8 }
 0x3ee   : > { %3486 = vmatmul.msk.f32.gmra.mxu2 %vm1735_vm13, %v1686_v60  ;;  %3481 = vmatmul.msk.f32.gmra.mxu1 %vm1691_vm14, %v1682_v61  ;;  %v3944_v60 = vld [vmem:[%s5328_s16 + $0x8c] sm:$0xf] }
 0x3ef   : > { %v3568_v61 = vld [vmem:[%s5328_s16 + $0xa8] sm:$0xf0] }
 0x3f0   : > { %v3571_v18 = vor.u32 %v3944_v60, %v3568_v61  ;;  %v3494_v61 = vld [vmem:[%s5328_s16] sm:$0xf] }
 0x3f2   : > { %2125 = vmatpush.bf16.msra.mxu3 %v3571_v18  ;;  %v1972_v18 = vunpack.c.h.b16 %v1889_v11  ;;  %v3937_v11 = vld [vmem:[%s5328_s16 + $0x54] sm:$0xf] }
 0x3f6   : > { %3487 = vmatmul.msk.f32.gmra.mxu2 %vm1735_vm13, %v1687_v62  ;;  %3482 = vmatmul.msk.f32.gmra.mxu1 %vm1691_vm14, %v1683_v63  ;;  %v3558_v62 = vld [vmem:[%s5328_s16 + $0x80] sm:$0xf] }
 0x3f7   : > { %v3947_v63 = vld [vmem:[%s5328_s16 + $0x9c] sm:$0xf0] }
 0x41b   : > { %v4691_v0 = vpop.f32.mrf.mxu1 }
 0x421   : > { %v4693_v1 = vpop.f32.mrf.mxu2 }
 0x422   : > { %v4754_v40 = vpop.f32.mrf.mxu3 }
 0x423   : > { %v4695_v2 = vpop.f32.mrf.mxu1 }
 0x429   : > { %v4703_v5 = vpop.f32.mrf.mxu2 }
 0x42a   : > { %v4756_v41 = vpop.f32.mrf.mxu3 }
 0x42b   : > { %v4705_v6 = vpop.f32.mrf.mxu1 }
 0x431   : > { %v4713_v9 = vpop.f32.mrf.mxu2 }
 0x432   : > { %v4758_v42 = vpop.f32.mrf.mxu3 }
 0x433   : > { %v4715_v10 = vpop.f32.mrf.mxu1 }
 0x439   : > { %v4723_v13 = vpop.f32.mrf.mxu2 }
 0x43a   : > { %v4760_v43 = vpop.f32.mrf.mxu3 }
 0x43b   : > { %v4725_v14 = vpop.f32.mrf.mxu1 }
 0x441   : > { %v4733_v17 = vpop.f32.mrf.mxu2 }
 0x442   : > { %v4762_v44 = vpop.f32.mrf.mxu3 }
 0x443   : > { %v4738_v19 = vpop.f32.mrf.mxu1 }
 0x449   : > { %v4740_v21 = vpop.f32.mrf.mxu2 }
 0x44a   : > { %v4764_v46 = vpop.f32.mrf.mxu3 }
 0x44b   : > { %v4742_v20 = vpop.f32.mrf.mxu1 }
 0x451   : > { %v4744_v22 = vpop.f32.mrf.mxu2 }
 0x452   : > { %v4766_v47 = vpop.f32.mrf.mxu3 }
 0x453   : > { %v4746_v24 = vpop.f32.mrf.mxu1 }
 0x459   : > { %v4748_v25 = vpop.f32.mrf.mxu2 }
 0x45a   : > { %v4768_v48 = vpop.f32.mrf.mxu3 }
 0x45b   : > { %v1721_v27 = vpop.f32.mrf.mxu1 }
 0x461   : > { %v1769_v31 = vpop.f32.mrf.mxu2 }
 0x462   : > { %v1781_v29 = vmul.f32 %v1769_v31, %v1721_v27  ;;  %v3534_v27 = vld [vmem:[%s5328_s16 + $0x48] sm:$0xf] }
 0x463   : > { %v1724_v32 = vpop.f32.mrf.mxu1  ;;  %v3940_v31 = vld [vmem:[%s5328_s16 + $0x64] sm:$0xf0] }
 0x464   : > { %3488 = vmatmul.msk.f32.vlgmr.msrb.gmra.mxu3 %vm1794_vm8, %v1781_v29  ;;  %v3559_v29 = vor.u32 %v3947_v63, %v3558_v62  ;;  %v3931_v62 = vld [vmem:[%s5328_s16 + $0x1c] sm:$0xf0]  ;;  %v3927_v63 = vld [vmem:[%s5328_s16 + $0x4] sm:$0xf] }
 0x466   : > { %2068 = vmatpush.bf16.msra.mxu0 %v3559_v29  ;;  %v2006_v29 = vpack.c.b16 %v1974_v15, %v1974_v15  ;;  %v3930_v15 = vld [vmem:[%s5328_s16 + $0x1c] sm:$0xf] }
 0x469   : > { %v1772_v33 = vpop.f32.mrf.mxu2 }
 0x46a   : > { %v1782_v23 = vmul.f32 %v1772_v33, %v1724_v32  ;;  %v3563_v32 = vor.u32 %v3943_v3, %v3560_v4  ;;  %v3936_v33 = vld [vmem:[%s5328_s16 + $0x4c] sm:$0xf]  ;;  %v3495_v3 = vor.u32 %v3931_v62, %v3494_v61  ;;  %v3496_v4 = vld [vmem:[%s5328_s16 + $0x20] sm:$0xf0]  ;;  %v3542_v61 = vld [vmem:[%s5328_s16 + $0x50] sm:$0xf] }
 0x46b   : > { %v1727_v34 = vpop.f32.mrf.mxu1 }
 0x46c   : > { %3489 = vmatmul.msk.f32.gmra.mxu3 %vm1794_vm8, %v1782_v23  ;;  %v3536_v23 = vld [vmem:[%s5328_s16 + $0x68] sm:$0xf0]  ;;  %2087 = vmatpush.bf16.msrb.mxu1 %v3563_v32  ;;  %v2003_v32 = vpack.c.b16 %v1971_v16, %v1971_v16 }
 0x471   : > { %v1775_v35 = vpop.f32.mrf.mxu2 }
 0x472   : > { %v1783_v36 = vmul.f32 %v1775_v35, %v1727_v34  ;;  %v3526_v34 = vld [vmem:[%s5328_s16 + $0x40] sm:$0xf] }
 0x473   : > { %v1730_v37 = vpop.f32.mrf.mxu1  ;;  %v3939_v35 = vld [vmem:[%s5328_s16 + $0x5c] sm:$0xf0] }
 0x474   : > { %3490 = vmatmul.msk.f32.gmra.mxu3 %vm1794_vm8, %v1783_v36  ;;  %v3935_v36 = vld [vmem:[%s5328_s16 + $0x44] sm:$0xf]  ;;  %v3527_v50 = vor.u32 %v3939_v35, %v3526_v34  ;;  %v3946_v34 = vld [vmem:[%s5328_s16 + $0x9c] sm:$0xf] }
 0x475   : > { %v3584_v35 = vld [vmem:[%s5328_s16 + $0xb8] sm:$0xf0] }
 0x476   : > { %2069 = vmatpush.bf16.msra.mxu0 %v3527_v50  ;;  %v3587_v50 = vor.u32 %v3946_v34, %v3584_v35 }
 0x479   : > { %v1778_v38 = vpop.f32.mrf.mxu2 }
 0x47a   : > { %v1784_v39 = vmul.f32 %v1778_v38, %v1730_v37  ;;  %v3528_v37 = vld [vmem:[%s5328_s16 + $0x60] sm:$0xf0]  ;;  %v3535_v38 = vor.u32 %v3940_v31, %v3534_v27  ;;  %2070 = vmatpush.bf16.msra.mxu0 %v3495_v3  ;;  %v3582_v27 = vld [vmem:[%s5328_s16 + $0x98] sm:$0xf]  ;;  %v2005_v31 = vpack.c.b16 %v1973_v12, %v1973_v12  ;;  %v3544_v12 = vld [vmem:[%s5328_s16 + $0x70] sm:$0xf0] }
 0x47b   : > { %v3531_v52 = vor.u32 %v3935_v36, %v3528_v37  ;;  %v2061_v37 = vsel %vm2038_vm15, %v2006_v29, 0  ;;  %v3518_v3 = vld [vmem:[%s5328_s16 + $0x18] sm:$0xf]  ;;  %v3547_v16 = vor.u32 %v3937_v11, %v3544_v12  ;;  %v3964_v11 = vld [vmem:[%s5329_s17 + $0x68] sm:$0xff] }
 0x47c   : > { %3491 = vmatmul.msk.f32.gmra.mxu3 %vm1794_vm8, %v1784_v39  ;;  %v3539_v39 = vor.u32 %v3936_v33, %v3536_v23  ;;  %2107 = vmatpush.bf16.msra.mxu2 %v3535_v38  ;;  %v3950_v33 = vld [vmem:[%s5328_s16 + $0xb4] sm:$0xf0]  ;;  %v2004_v23 = vpack.c.b16 %v1972_v18, %v1972_v18  ;;  %v2058_v36 = vsel %vm2038_vm15, %v2005_v31, 0  ;;  %v2052_v38 = vsel %vm2038_vm15, %v2003_v32, 0  ;;  %v3520_v18 = vld [vmem:[%s5328_s16 + $0x38] sm:$0xf0] }
 0x47d   : > { %2088 = vmatpush.bf16.msrb.mxu1 %v3531_v52  ;;  %v3583_v49 = vor.u32 %v3950_v33, %v3582_v27  ;;  %v3949_v52 = vld [vmem:[%s5328_s16 + $0xac] sm:$0xf0]  ;;  %v3523_v29 = vor.u32 %v3930_v15, %v3520_v18  ;;  %v3929_v32 = vld [vmem:[%s5328_s16 + $0x14] sm:$0xf]  ;;  %v3972_v12 = vld [vmem:[%s5329_s17 + $0xa8] sm:$0xff] }
 0x47e   : > { %2126 = vmatpush.bf16.msra.mxu3 %v3539_v39  ;;  %v2055_v39 = vsel %vm2038_vm15, %v2004_v23, 0  ;;  %2143 = vmatpush.bf16.msrb.mxu0 %v2052_v38  ;;  %v3575_v53 = vor.u32 %v3949_v52, %v3574_v51  ;;  %v3510_v27 = vld [vmem:[%s5328_s16 + $0x10] sm:$0xf]  ;;  %v3512_v33 = vld [vmem:[%s5328_s16 + $0x30] sm:$0xf0]  ;;  %v3980_v15 = vld [vmem:[%s5329_s17 + $0xe8] sm:$0xff] }
 0x47f   : > { %v3933_v31 = vld [vmem:[%s5328_s16 + $0x2c] sm:$0xf0]  ;;  %v3515_v34 = vor.u32 %v3929_v32, %v3512_v33  ;;  %v3963_v18 = vld [vmem:[%s5329_s17 + $0x60] sm:$0xff]  ;;  %v5005_v32 = vpop.f32.mrf.mxu0 }
 0x480   : > { %2108 = vmatpush.bf16.msra.mxu2 %v3503_v56  ;;  %v3576_v56 = vld [vmem:[%s5328_s16 + $0xb0] sm:$0xf0]  ;;  %v3511_v23 = vor.u32 %v3933_v31, %v3510_v27  ;;  %v3971_v27 = vld [vmem:[%s5329_s17 + $0xa0] sm:$0xff]  ;;  %v3954_v31 = vld [vmem:[%s5329_s17 + $0x18] sm:$0xff] }
 0x482   : > { %2127 = vmatpush.bf16.msra.mxu3 %v3507_v57  ;;  %2144 = vmatpush.bf16.msrb.mxu0 %v3575_v53 }
 0x484   : > { %2181 = vmatpush.bf16.msrb.mxu2 %v2058_v36 }
 0x486   : > { %2200 = vmatpush.bf16.msrb.mxu3 %v2061_v37 }
 0x487   : > { %v5011_v33 = vpop.f32.mrf.mxu0 }
 0x488   : > { %2182 = vmatpush.bf16.msrb.mxu2 %v3583_v49 }
 0x48a   : > { %2201 = vmatpush.bf16.msrb.mxu3 %v3587_v50 }
 0x4e7   : > { %v1824_v7 = vpop.f32.mrf.mxu3 }
 0x4ef   : > { %v1827_v54 = vpop.f32.mrf.mxu3 }
 0x4f0   : > { %v4040_v26 = vpack.i.bf16 %v1827_v54, %v1824_v7  ;;  %v3499_v7 = vor.u32 %v3927_v63, %v3496_v4  ;;  %v3942_v54 = vld [vmem:[%s5328_s16 + $0x74] sm:$0xf0]  ;;  %v3941_v63 = vld [vmem:[%s5328_s16 + $0x6c] sm:$0xf0] }
 0x4f1   : > { %v3551_v57 = vor.u32 %v3942_v54, %v3550_v30  ;;  %v3934_v4 = vld [vmem:[%s5328_s16 + $0x34] sm:$0xf0] }
 0x4f2   : > { %4041 = vrot.lane.b32.xlu2 %v4040_v26, %s4126_s28  ;;  %2089 = vmatpush.bf16.msrb.mxu1 %v3499_v7  ;;  %v3945_v26 = vld [vmem:[%s5328_s16 + $0x94] sm:$0xf]  ;;  %v3543_v7 = vor.u32 %v3941_v63, %v3542_v61  ;;  %v3519_v8 = vor.u32 %v3934_v4, %v3518_v3  ;;  %v3974_v61 = vld [vmem:[%s5329_s17 + $0xb8] sm:$0xff] }
 0x4f3   : > { %2183 = vmatpush.bf16.msrb.mxu2 %v3551_v57  ;;  %v3957_v63 = vld [vmem:[%s5329_s17 + $0x30] sm:$0xff] }
 0x4f4   : > { %2145 = vmatpush.bf16.msrb.mxu0 %v3543_v7  ;;  %v3965_v3 = vld [vmem:[%s5329_s17 + $0x70] sm:$0xff] }
 0x4f5   : > { %v3973_v4 = vld [vmem:[%s5329_s17 + $0xb0] sm:$0xff] }
 0x4f6   : > { %2162 = vmatpush.bf16.msra.mxu1 %v2055_v39  ;;  %v3981_v7 = vld [vmem:[%s5329_s17 + $0xf0] sm:$0xff] }
 0x4f7   : > { %v1830_v58 = vpop.f32.mrf.mxu3  ;;  %2184 = vmatpush.bf16.msrb.mxu2 %v3519_v8  ;;  %v3956_v8 = vld [vmem:[%s5329_s17 + $0x28] sm:$0xff] }
 0x4f8   : > { %2146 = vmatpush.bf16.msrb.mxu0 %v3511_v23  ;;  %v5013_v23 = vpop.f32.mrf.mxu0 }
 0x4ff   : > { %v1833_v59 = vpop.f32.mrf.mxu3 }
 0x500   : > { %v4045_v60 = vpack.i.bf16 %v1833_v59, %v1830_v58  ;;  %v3579_v58 = vor.u32 %v3945_v26, %v3576_v56  ;;  %v3938_v59 = vld [vmem:[%s5328_s16 + $0x5c] sm:$0xf] }
 0x502   : > { %4046 = vrot.lane.b32.xlu2 %v4045_v60, %s4126_s28  ;;  %v3552_v60 = vld [vmem:[%s5328_s16 + $0x78] sm:$0xf0]  ;;  %2163 = vmatpush.bf16.msra.mxu1 %v3579_v58  ;;  %s733_s28 = scalar_lea.vmem %s5354_s27, %s4255_s30 }
 0x503   : > { %v3555_v62 = vor.u32 %v3938_v59, %v3552_v60  ;;  %v1836_v35 = vld [vmem:[%s733_s28] sm:$0xff]  ;;  %v1837_v36 = vld [vmem:[%s733_s28 + $0x8] sm:$0xff]  ;;  %v1838_v52 = vld [vmem:[%s733_s28 + $0x10] sm:$0xff] }
 0x504   : > { %v1839_v30 = vld [vmem:[%s733_s28 + $0x18] sm:$0xff] }
 0x505   : > { %2202 = vmatpush.bf16.msrb.mxu3 %v3555_v62  ;;  %v3958_v59 = vld [vmem:[%s5329_s17 + $0x38] sm:$0xff] }
 0x506   : > { %2164 = vmatpush.bf16.msra.mxu1 %v3547_v16  ;;  %v3966_v60 = vld [vmem:[%s5329_s17 + $0x78] sm:$0xff]  ;;  %v3955_v16 = vld [vmem:[%s5329_s17 + $0x20] sm:$0xff] }
 0x507   : > { %v3982_v62 = vld [vmem:[%s5329_s17 + $0xf8] sm:$0xff] }
 0x509   : > { %2203 = vmatpush.bf16.msrb.mxu3 %v3523_v29  ;;  %v3962_v29 = vld [vmem:[%s5329_s17 + $0x58] sm:$0xff] }
 0x50a   : > { %2165 = vmatpush.bf16.msra.mxu1 %v3515_v34  ;;  %v5015_v34 = vpop.f32.mrf.mxu0 }
 0x54c   : > { %v4042_v37 = vpop.permute.xlu2 %4041 }
 0x54d   : > { %v4044_v38 = vunpack.i.h.bf16 %v4042_v37  ;;  %v4043_v39 = vunpack.i.l.bf16 %v4042_v37  ;;  %v3953_v37 = vld [vmem:[%s5329_s17 + $0x10] sm:$0xff] }
 0x54f   : > { %v1858_v49 = vsel %vm1856_vm0, %v1837_v36, %v4044_v38  ;;  %v1857_v50 = vsel %vm1856_vm0, %v1836_v35, %v4043_v39  ;;  %v5017_v35 = vpop.f32.mrf.mxu0  ;;  %v3979_v36 = vld [vmem:[%s5329_s17 + $0xe0] sm:$0xff]  ;;  %v3961_v38 = vld [vmem:[%s5329_s17 + $0x50] sm:$0xff]  ;;  %v3970_v39 = vld [vmem:[%s5329_s17 + $0x98] sm:$0xff] }
 0x550   : > { %v1861_v51 = vpack.c.bf16 %v1858_v49, %v1857_v50  ;;  %v3978_v49 = vld [vmem:[%s5329_s17 + $0xd8] sm:$0xff] }
 0x552   : > { %3588 = vmatmul.msk.bf16.vlgmr.msra.gmra.mxu0 %vm2031_vm1, %v1861_v51  ;;  %3590 = vmatmul.msk.bf16.vlgmr.msrb.gmra.mxu1 %vm2031_vm1, %v1861_v51 }
 0x553   : > { %3592 = vmatmul.msk.bf16.vlgmr.msra.gmra.mxu2 %vm2031_vm1, %v1861_v51  ;;  %3594 = vmatmul.msk.bf16.vlgmr.msra.gmra.mxu3 %vm2031_vm1, %v1861_v51 }
 0x554   : > { %2775 = vmatpush.bf16.msra.mxu0 %v3958_v59  ;;  %2794 = vmatpush.bf16.msrb.mxu1 %v3966_v60  ;;  %v3998_v59 = vld [vmem:[%s5329_s17 + $0x178] sm:$0xff] }
 0x555   : > { %2813 = vmatpush.bf16.msra.mxu2 %v3974_v61  ;;  %2832 = vmatpush.bf16.msra.mxu3 %v3982_v62  ;;  %v3967_v61 = vld [vmem:[%s5329_s17 + $0x80] sm:$0xff] }
 0x556   : > { %v3975_v62 = vld [vmem:[%s5329_s17 + $0xc0] sm:$0xff] }
 0x557   : > { %v5034_v50 = vpop.f32.mrf.mxu0 }
 0x558   : > { %2776 = vmatpush.bf16.msra.mxu0 %v3957_v63  ;;  %2795 = vmatpush.bf16.msrb.mxu1 %v3965_v3  ;;  %v3989_v63 = vld [vmem:[%s5329_s17 + $0x130] sm:$0xff] }
 0x559   : > { %2814 = vmatpush.bf16.msra.mxu2 %v3973_v4  ;;  %2833 = vmatpush.bf16.msra.mxu3 %v3981_v7  ;;  %v3997_v3 = vld [vmem:[%s5329_s17 + $0x170] sm:$0xff]  ;;  %v4006_v4 = vld [vmem:[%s5329_s17 + $0x1b8] sm:$0xff] }
 0x55a   : > { %v4014_v7 = vld [vmem:[%s5329_s17 + $0x1f8] sm:$0xff] }
 0x55c   : > { %v4047_v53 = vpop.permute.xlu2 %4046  ;;  %2777 = vmatpush.bf16.msra.mxu0 %v3956_v8  ;;  %2796 = vmatpush.bf16.msrb.mxu1 %v3964_v11  ;;  %v3988_v8 = vld [vmem:[%s5329_s17 + $0x128] sm:$0xff] }
 0x55d   : > { %v4049_v54 = vunpack.i.h.bf16 %v4047_v53  ;;  %v4048_v26 = vunpack.i.l.bf16 %v4047_v53  ;;  %2815 = vmatpush.bf16.msra.mxu2 %v3972_v12  ;;  %2834 = vmatpush.bf16.msra.mxu3 %v3980_v15  ;;  %v3977_v53 = vld [vmem:[%s5329_s17 + $0xd0] sm:$0xff]  ;;  %v3996_v11 = vld [vmem:[%s5329_s17 + $0x168] sm:$0xff] }
 0x55e   : > { %v4005_v12 = vld [vmem:[%s5329_s17 + $0x1b0] sm:$0xff] }
 0x55f   : > { %v1860_v56 = vsel %vm1856_vm0, %v1839_v30, %v4049_v54  ;;  %v1859_v57 = vsel %vm1856_vm0, %v1838_v52, %v4048_v26  ;;  %v3960_v52 = vld [vmem:[%s5329_s17 + $0x48] sm:$0xff]  ;;  %v3969_v30 = vld [vmem:[%s5329_s17 + $0x90] sm:$0xff]  ;;  %v3951_v54 = vld [vmem:[%s5329_s17] sm:$0xff]  ;;  %v5066_v60 = vpop.f32.mrf.mxu0 }
 0x560   : > { %v1862_v58 = vpack.c.bf16 %v1860_v56, %v1859_v57  ;;  %2778 = vmatpush.bf16.msra.mxu0 %v3955_v16  ;;  %2797 = vmatpush.bf16.msrb.mxu1 %v3963_v18  ;;  %v3959_v26 = vld [vmem:[%s5329_s17 + $0x40] sm:$0xff]  ;;  %v3968_v56 = vld [vmem:[%s5329_s17 + $0x88] sm:$0xff]  ;;  %v4013_v15 = vld [vmem:[%s5329_s17 + $0x1f0] sm:$0xff] }
 0x561   : > { %2816 = vmatpush.bf16.msra.mxu2 %v3971_v27  ;;  %2835 = vmatpush.bf16.msra.mxu3 %v3979_v36  ;;  %v3976_v57 = vld [vmem:[%s5329_s17 + $0xc8] sm:$0xff]  ;;  %v3987_v18 = vld [vmem:[%s5329_s17 + $0x120] sm:$0xff]  ;;  %v3986_v36 = vld [vmem:[%s5329_s17 + $0x118] sm:$0xff] }
 0x562   : > { %3589 = vmatmul.msk.bf16.gmra.mxu0 %vm2031_vm1, %v1862_v58  ;;  %3591 = vmatmul.msk.bf16.gmra.mxu1 %vm2031_vm1, %v1862_v58  ;;  %v3995_v27 = vld [vmem:[%s5329_s17 + $0x160] sm:$0xff] }
 0x563   : > { %3593 = vmatmul.msk.bf16.gmra.mxu2 %vm2031_vm1, %v1862_v58  ;;  %3595 = vmatmul.msk.bf16.gmra.mxu3 %vm2031_vm1, %v1862_v58 }
 0x564   : > { %2779 = vmatpush.bf16.msra.mxu0 %v3954_v31  ;;  %2798 = vmatpush.bf16.msrb.mxu1 %v3962_v29  ;;  %v4004_v31 = vld [vmem:[%s5329_s17 + $0x1a8] sm:$0xff] }
 0x565   : > { %2817 = vmatpush.bf16.msra.mxu2 %v3970_v39  ;;  %2836 = vmatpush.bf16.msra.mxu3 %v3978_v49  ;;  %v4012_v29 = vld [vmem:[%s5329_s17 + $0x1e8] sm:$0xff]  ;;  %v4003_v39 = vld [vmem:[%s5329_s17 + $0x1a0] sm:$0xff] }
 0x566   : > { %v4011_v49 = vld [vmem:[%s5329_s17 + $0x1e0] sm:$0xff] }
 0x567   : > { %v5098_v16 = vpop.f32.mrf.mxu0 }
 0x568   : > { %2780 = vmatpush.bf16.msra.mxu0 %v3953_v37  ;;  %2799 = vmatpush.bf16.msrb.mxu1 %v3961_v38  ;;  %v3994_v37 = vld [vmem:[%s5329_s17 + $0x158] sm:$0xff]  ;;  %v5121_v38 = vld [vmem:[%s5324_s12] sm:$0xff] }
 0x569   : > { %2818 = vmatpush.bf16.msra.mxu2 %v3969_v30  ;;  %2837 = vmatpush.bf16.msra.mxu3 %v3977_v53  ;;  %v3985_v30 = vld [vmem:[%s5329_s17 + $0x110] sm:$0xff] }
 0x56a   : > { %v3993_v53 = vld [vmem:[%s5329_s17 + $0x150] sm:$0xff] }
 0x56c   : > { %2800 = vmatpush.bf16.msrb.mxu1 %v3960_v52 }
 0x56d   : > { %2819 = vmatpush.bf16.msra.mxu2 %v3968_v56  ;;  %2838 = vmatpush.bf16.msra.mxu3 %v3976_v57  ;;  %v4002_v56 = vld [vmem:[%s5329_s17 + $0x198] sm:$0xff] }
 0x56e   : > { %v4010_v57 = vld [vmem:[%s5329_s17 + $0x1d8] sm:$0xff] }
 0x570   : > { %2801 = vmatpush.bf16.msrb.mxu1 %v3959_v26  ;;  %v5139_v26 = vperm.slane %v5121_v38, 1 }
 0x571   : > { %2820 = vmatpush.bf16.msra.mxu2 %v3967_v61  ;;  %2839 = vmatpush.bf16.msra.mxu3 %v3975_v62 }
 0x572   : > { %3596 = vmatmul.msk.bf16.vlgmr.msrb.gmra.mxu0 %vm2031_vm1, %v1861_v51  ;;  %3598 = vmatmul.msk.bf16.vlgmr.msra.gmra.mxu1 %vm2031_vm1, %v1861_v51  ;;  %v1557_v62 = vadd.f32 %v4693_v1, %v5139_v26 }
 0x573   : > { %3600 = vmatmul.msk.bf16.vlgmr.msrb.gmra.mxu2 %vm2031_vm1, %v1861_v51  ;;  %3602 = vmatmul.msk.bf16.vlgmr.msrb.gmra.mxu3 %vm2031_vm1, %v1861_v51  ;;  %v3952_v51 = vld [vmem:[%s5329_s17 + $0x8] sm:$0xff] }
 0x574   : > { %2781 = vmatpush.bf16.msra.mxu0 %v3952_v51  ;;  %2870 = vmatpush.bf16.msra.mxu1 %v3998_v59  ;;  %v3992_v59 = vld [vmem:[%s5329_s17 + $0x148] sm:$0xff] }
 0x575   : > { %2889 = vmatpush.bf16.msrb.mxu2 %v4006_v4  ;;  %2908 = vmatpush.bf16.msrb.mxu3 %v4014_v7 }
 0x578   : > { %2782 = vmatpush.bf16.msra.mxu0 %v3951_v54  ;;  %2871 = vmatpush.bf16.msra.mxu1 %v3997_v3  ;;  %v5136_v54 = vperm.slane %v5121_v38, 0  ;;  %v1559_v3 = vadd.f32 %v4703_v5, %v5139_v26 }
 0x579   : > { %2890 = vmatpush.bf16.msrb.mxu2 %v4005_v12  ;;  %2909 = vmatpush.bf16.msrb.mxu3 %v4013_v15 }
 0x57a   : > { %v1538_v61 = vadd.f32 %v4691_v0, %v5136_v54  ;;  %v4009_v0 = vld [vmem:[%s5329_s17 + $0x1d0] sm:$0xff] }
 0x57c   : > { %2872 = vmatpush.bf16.msra.mxu1 %v3996_v11 }
 0x57d   : > { %2891 = vmatpush.bf16.msrb.mxu2 %v4004_v31  ;;  %2910 = vmatpush.bf16.msrb.mxu3 %v4012_v29  ;;  %v3991_v31 = vld [vmem:[%s5329_s17 + $0x140] sm:$0xff]  ;;  %v1348_v29 = vperm.slane %v5121_v38, 2 }
 0x580   : > { %2873 = vmatpush.bf16.msra.mxu1 %v3995_v27  ;;  %v3983_v27 = vld [vmem:[%s5329_s17 + $0x100] sm:$0xff] }
 0x581   : > { %2892 = vmatpush.bf16.msrb.mxu2 %v4003_v39  ;;  %2911 = vmatpush.bf16.msrb.mxu3 %v4011_v49  ;;  %v4000_v39 = vld [vmem:[%s5329_s17 + $0x188] sm:$0xff] }
 0x582   : > { %3597 = vmatmul.msk.bf16.gmra.mxu0 %vm2031_vm1, %v1862_v58  ;;  %3599 = vmatmul.msk.bf16.gmra.mxu1 %vm2031_vm1, %v1862_v58  ;;  %v4008_v49 = vld [vmem:[%s5329_s17 + $0x1c8] sm:$0xff] }
 0x583   : > { %3601 = vmatmul.msk.bf16.gmra.mxu2 %vm2031_vm1, %v1862_v58  ;;  %3603 = vmatmul.msk.bf16.gmra.mxu3 %vm2031_vm1, %v1862_v58  ;;  %v3990_v58 = vld [vmem:[%s5329_s17 + $0x138] sm:$0xff] }
 0x584   : > { %2851 = vmatpush.bf16.msrb.mxu0 %v3990_v58  ;;  %2874 = vmatpush.bf16.msra.mxu1 %v3994_v37  ;;  %v3984_v58 = vld [vmem:[%s5329_s17 + $0x108] sm:$0xff] }
 0x585   : > { %2893 = vmatpush.bf16.msrb.mxu2 %v4002_v56  ;;  %2912 = vmatpush.bf16.msrb.mxu3 %v4010_v57 }
 0x588   : > { %2852 = vmatpush.bf16.msrb.mxu0 %v3989_v63  ;;  %2875 = vmatpush.bf16.msra.mxu1 %v3993_v53  ;;  %v1540_v63 = vadd.f32 %v4695_v2, %v5136_v54  ;;  %v1349_v2 = vperm.slane %v5121_v38, 3  ;;  %v1578_v53 = vadd.f32 %v4756_v41, %v1348_v29 }
 0x589   : > { %2913 = vmatpush.bf16.msrb.mxu3 %v4009_v0 }
 0x58c   : > { %2853 = vmatpush.bf16.msrb.mxu0 %v3988_v8  ;;  %2876 = vmatpush.bf16.msra.mxu1 %v3992_v59  ;;  %v4001_v8 = vld [vmem:[%s5329_s17 + $0x190] sm:$0xff] }
 0x58d   : > { %2894 = vmatpush.bf16.msrb.mxu2 %v4001_v8  ;;  %2914 = vmatpush.bf16.msrb.mxu3 %v4008_v49  ;;  %v1543_v8 = vadd.f32 %v4705_v6, %v5136_v54  ;;  %v1600_v6 = vadd.f32 %v5013_v23, %v1349_v2  ;;  %v1351_v23 = vperm.slane %v5121_v38, 5 }
 0x590   : > { %2854 = vmatpush.bf16.msrb.mxu0 %v3987_v18  ;;  %2877 = vmatpush.bf16.msra.mxu1 %v3991_v31 }
 0x591   : > { %2895 = vmatpush.bf16.msrb.mxu2 %v4000_v39 }
 0x594   : > { %2855 = vmatpush.bf16.msrb.mxu0 %v3986_v36 }
 0x598   : > { %2856 = vmatpush.bf16.msrb.mxu0 %v3985_v30  ;;  %v1597_v30 = vadd.f32 %v5011_v33, %v1349_v2 }
 0x59c   : > { %2857 = vmatpush.bf16.msrb.mxu0 %v3984_v58  ;;  %v3999_v58 = vld [vmem:[%s5329_s17 + $0x180] sm:$0xff] }
 0x59d   : > { %2896 = vmatpush.bf16.msrb.mxu2 %v3999_v58 }
 0x5a0   : > { %2858 = vmatpush.bf16.msrb.mxu0 %v3983_v27 }
 0x5cf   : > { %v2072_v51 = vpop.f32.mrf.mxu0  ;;  %v2091_v52 = vpop.f32.mrf.mxu1 }
 0x5d0   : > { %v2215_v11 = vmul.f32 %v2072_v51, %v1538_v61  ;;  %v2216_v15 = vmul.f32 %v2091_v52, %v1557_v62  ;;  %v1595_v51 = vadd.f32 %v5005_v32, %v1349_v2  ;;  %v1576_v52 = vadd.f32 %v4754_v40, %v1348_v29  ;;  %v4007_v32 = vld [vmem:[%s5329_s17 + $0x1c0] sm:$0xff] }
 0x5d1   : > { %2915 = vmatpush.bf16.msrb.mxu3 %v4007_v32 }
 0x5d6   : > { %v2110_v4 = vpop.f32.mrf.mxu2  ;;  %v2129_v7 = vpop.f32.mrf.mxu3 }
 0x5d7   : > { %v2074_v1 = vpop.f32.mrf.mxu0  ;;  %v2093_v12 = vpop.f32.mrf.mxu1  ;;  %v2217_v59 = vmul.f32 %v2110_v4, %v1576_v52  ;;  %v2218_v40 = vmul.f32 %v2129_v7, %v1595_v51  ;;  %v1545_v4 = vadd.f32 %v4715_v10, %v5136_v54  ;;  %v1602_v10 = vadd.f32 %v5015_v34, %v1349_v2 }
 0x5d8   : > { %v2223_v18 = vmul.f32 %v2074_v1, %v1540_v63  ;;  %v2224_v5 = vmul.f32 %v2093_v12, %v1559_v3  ;;  %v1635_v2 = vadd.f32 %v4740_v21, %v1351_v23 }
 0x5da   : > { %v2247_v36 = vpack.c.bf16 %v2223_v18, %v2215_v11  ;;  %v2248_v37 = vpack.c.bf16 %v2224_v5, %v2216_v15 }
 0x5dc   : > { %2783 = vmatmul.bf16.vlgmr.msra.gmra.mxu0 %v2247_v36  ;;  %2802 = vmatmul.bf16.vlgmr.msrb.gmra.mxu1 %v2248_v37 }
 0x5dd   : > { %2960 = vmatpush.msra.mxu0 %v4631_v45  ;;  %v1562_v45 = vadd.f32 %v4713_v9, %v5139_v26  ;;  %v1581_v9 = vadd.f32 %v4758_v42, %v1348_v29 }
 0x5de   : > { %v2112_v56 = vpop.f32.mrf.mxu2  ;;  %v2131_v57 = vpop.f32.mrf.mxu3 }
 0x5df   : > { %v2225_v61 = vmul.f32 %v2112_v56, %v1578_v53  ;;  %v2226_v33 = vmul.f32 %v2131_v57, %v1597_v30  ;;  %v2077_v62 = vpop.f32.mrf.mxu0  ;;  %v2096_v41 = vpop.f32.mrf.mxu1  ;;  %2961 = vmatpush.msra.mxu0 %v4652_v28  ;;  %v1564_v28 = vadd.f32 %v4723_v13, %v5139_v26  ;;  %v1583_v13 = vadd.f32 %v4760_v43, %v1348_v29 }
 0x5e0   : > { %v2231_v12 = vmul.f32 %v2077_v62, %v1543_v8  ;;  %v1350_v53 = vperm.slane %v5121_v38, 4  ;;  %v1633_v43 = vadd.f32 %v4733_v17, %v1351_v23  ;;  %v1352_v62 = vperm.slane %v5121_v38, 6 }
 0x5e1   : > { %v2249_v63 = vpack.c.bf16 %v2225_v61, %v2217_v59  ;;  %v2250_v3 = vpack.c.bf16 %v2226_v33, %v2218_v40  ;;  %2962 = vmatpush.msra.mxu0 %v4657_v55  ;;  %v2232_v55 = vmul.f32 %v2096_v41, %v1562_v45  ;;  %v1353_v33 = vperm.slane %v5121_v38, 7 }
 0x5e2   : > { %v1614_v42 = vadd.f32 %v4725_v14, %v1350_v53  ;;  %v1616_v34 = vadd.f32 %v4738_v19, %v1350_v53  ;;  %v1652_v19 = vadd.f32 %v4762_v44, %v1352_v62  ;;  %v1638_v44 = vadd.f32 %v4744_v22, %v1351_v23 }
 0x5e3   : > { %2821 = vmatmul.bf16.vlgmr.msra.gmra.mxu2 %v2249_v63  ;;  %2840 = vmatmul.bf16.vlgmr.msra.gmra.mxu3 %v2250_v3  ;;  %v1671_v17 = vadd.f32 %v5017_v35, %v1353_v33  ;;  %v1673_v21 = vadd.f32 %v5034_v50, %v1353_v33  ;;  %v1654_v63 = vadd.f32 %v4764_v46, %v1352_v62 }
 0x5e4   : > { %v1619_v35 = vadd.f32 %v4742_v20, %v1350_v53  ;;  %v1621_v50 = vadd.f32 %v4746_v24, %v1350_v53  ;;  %v1640_v46 = vadd.f32 %v4748_v25, %v1351_v23  ;;  %v1676_v20 = vadd.f32 %v5066_v60, %v1353_v33 }
 0x5e5   : > { %v1657_v22 = vadd.f32 %v4766_v47, %v1352_v62  ;;  %v1678_v24 = vadd.f32 %v5098_v16, %v1353_v33  ;;  %v1659_v25 = vadd.f32 %v4768_v48, %v1352_v62  ;;  %v3070_v47 = vld [vmem:[%s5332_s20 + $0x10] sm:$0xf] }
 0x5e6   : > { %v2115_v7 = vpop.f32.mrf.mxu2  ;;  %v2134_v0 = vpop.f32.mrf.mxu3  ;;  %v3080_v16 = vunpack.c.l.b16 %v3070_v47 }
 0x5e7   : > { %v2079_v11 = vpop.f32.mrf.mxu0  ;;  %v2098_v1 = vpop.f32.mrf.mxu1  ;;  %v2233_v31 = vmul.f32 %v2115_v7, %v1581_v9  ;;  %v2234_v36 = vmul.f32 %v2134_v0, %v1600_v6 }
 0x5e8   : > { %v2239_v15 = vmul.f32 %v2079_v11, %v1545_v4  ;;  %v2240_v18 = vmul.f32 %v2098_v1, %v1564_v28 }
 0x5ea   : > { %v2255_v5 = vpack.c.bf16 %v2239_v15, %v2231_v12  ;;  %v2256_v27 = vpack.c.bf16 %v2240_v18, %v2232_v55 }
 0x5ec   : > { %2788 = vmatmul.bf16.gmra.mxu0 %v2255_v5  ;;  %2807 = vmatmul.bf16.gmra.mxu1 %v2256_v27 }
 0x5ee   : > { %v2117_v54 = vpop.f32.mrf.mxu2  ;;  %v2136_v26 = vpop.f32.mrf.mxu3 }
 0x5ef   : > { %v2241_v37 = vmul.f32 %v2117_v54, %v1583_v13  ;;  %v2242_v39 = vmul.f32 %v2136_v26, %v1602_v10  ;;  %v2148_v49 = vpop.f32.mrf.mxu0  ;;  %v2167_v51 = vpop.f32.mrf.mxu1 }
 0x5f0   : > { %v2219_v32 = vmul.f32 %v2148_v49, %v1614_v42  ;;  %v2220_v59 = vmul.f32 %v2167_v51, %v1633_v43  ;;  %v3083_v42 = vpack.c.b16 %v3080_v16, %v3080_v16 }
 0x5f1   : > { %v2257_v52 = vpack.c.bf16 %v2241_v37, %v2233_v31  ;;  %v2258_v30 = vpack.c.bf16 %v2242_v39, %v2234_v36 }
 0x5f3   : > { %2826 = vmatmul.bf16.gmra.mxu2 %v2257_v52  ;;  %2845 = vmatmul.bf16.gmra.mxu3 %v2258_v30 }
 0x5f6   : > { %v2186_v29 = vpop.f32.mrf.mxu2  ;;  %v2205_v56 = vpop.f32.mrf.mxu3 }
 0x5f7   : > { %v2150_v57 = vpop.f32.mrf.mxu0  ;;  %v2169_v58 = vpop.f32.mrf.mxu1  ;;  %v2221_v45 = vmul.f32 %v2186_v29, %v1652_v19  ;;  %v2222_v4 = vmul.f32 %v2205_v56, %v1671_v17  ;;  %v4016_v29 = vld [vmem:[%s5332_s20 + $0x8] sm:$0xff] }
 0x5f8   : > { %v2227_v40 = vmul.f32 %v2150_v57, %v1616_v34  ;;  %v2228_v61 = vmul.f32 %v2169_v58, %v1635_v2  ;;  %v3094_v2 = vsel %vm2038_vm15, %v3083_v42, 0  ;;  %v4015_v58 = vld [vmem:[%s5332_s20] sm:$0xff]  ;;  %v4116_v42 = vld [vmem:[%s4673_s23 + $0x18] sm:$0xff] }
 0x5f9   : > { %3101 = vmatpush.bf16.msra.mxu3 %v3094_v2 }
 0x5fa   : > { %v2251_v41 = vpack.c.bf16 %v2227_v40, %v2219_v32  ;;  %v2252_v14 = vpack.c.bf16 %v2228_v61, %v2220_v59 }
 0x5fc   : > { %2859 = vmatmul.bf16.vlgmr.msrb.gmra.mxu0 %v2251_v41  ;;  %2878 = vmatmul.bf16.vlgmr.msra.gmra.mxu1 %v2252_v14 }
 0x5fd   : > { %3102 = vmatpush.bf16.msra.mxu3 %v4016_v29 }
 0x5fe   : > { %v2188_v3 = vpop.f32.mrf.mxu2  ;;  %v2207_v8 = vpop.f32.mrf.mxu3 }
 0x5ff   : > { %v2229_v28 = vmul.f32 %v2188_v3, %v1654_v63  ;;  %v2230_v7 = vmul.f32 %v2207_v8, %v1673_v21  ;;  %v2153_v0 = vpop.f32.mrf.mxu0  ;;  %v2172_v38 = vpop.f32.mrf.mxu1 }
 0x600   : > { %v2235_v5 = vmul.f32 %v2153_v0, %v1619_v35  ;;  %v2236_v27 = vmul.f32 %v2172_v38, %v1638_v44 }
 0x601   : > { %v2253_v11 = vpack.c.bf16 %v2229_v28, %v2221_v45  ;;  %v2254_v1 = vpack.c.bf16 %v2230_v7, %v2222_v4  ;;  %3103 = vmatpush.bf16.msra.mxu3 %v4015_v58  ;;  %v2977_v28 = vld [vmem:[%s5330_s18 + $0x8] sm:$0x1]  ;;  %v2976_v7 = vld [vmem:[%s5330_s18] sm:$0xff]  ;;  %v3020_v58 = vld [vmem:[%s5331_s19 + $0x30] sm:$0xff] }
 0x602   : > { %3864 = vmatpush.msk.msrb.mxu1 %vm1748_vm6, %v2977_v28 }
 0x603   : > { %2897 = vmatmul.bf16.vlgmr.msrb.gmra.mxu2 %v2253_v11  ;;  %2916 = vmatmul.bf16.vlgmr.msrb.gmra.mxu3 %v2254_v1 }
 0x604   : > { %2996 = vmatpush.msrb.mxu1 %v2976_v7 }
 0x606   : > { %v2191_v12 = vpop.f32.mrf.mxu2  ;;  %v2210_v55 = vpop.f32.mrf.mxu3 }
 0x607   : > { %v2155_v15 = vpop.f32.mrf.mxu0  ;;  %v2174_v18 = vpop.f32.mrf.mxu1  ;;  %v2237_v31 = vmul.f32 %v2191_v12, %v1657_v22  ;;  %v2238_v36 = vmul.f32 %v2210_v55, %v1676_v20  ;;  %v4113_v12 = vld [vmem:[%s4673_s23] sm:$0xff]  ;;  %v4114_v22 = vld [vmem:[%s4673_s23 + $0x8] sm:$0xff] }
 0x608   : > { %v2243_v6 = vmul.f32 %v2155_v15, %v1621_v50  ;;  %v2244_v9 = vmul.f32 %v2174_v18, %v1640_v46 }
 0x60a   : > { %v2259_v10 = vpack.c.bf16 %v2243_v6, %v2235_v5  ;;  %v2260_v13 = vpack.c.bf16 %v2244_v9, %v2236_v27 }
 0x60c   : > { %2864 = vmatmul.bf16.gmra.mxu0 %v2259_v10  ;;  %2883 = vmatmul.bf16.gmra.mxu1 %v2260_v13 }
 0x60e   : > { %v2193_v54 = vpop.f32.mrf.mxu2  ;;  %v2212_v26 = vpop.f32.mrf.mxu3 }
 0x60f   : > { %v2245_v37 = vmul.f32 %v2193_v54, %v1659_v25  ;;  %v2246_v39 = vmul.f32 %v2212_v26, %v1678_v24 }
 0x611   : > { %v2261_v49 = vpack.c.bf16 %v2245_v37, %v2237_v31  ;;  %v2262_v51 = vpack.c.bf16 %v2246_v39, %v2238_v36 }
 0x613   : > { %2902 = vmatmul.bf16.gmra.mxu2 %v2261_v49  ;;  %2921 = vmatmul.bf16.gmra.mxu3 %v2262_v51 }
 0x61c   : > { %3865 = vmatmul.msk.f32.vlgmr.msrb.gmra.mxu1 %vm1735_vm13, %v4113_v12 }
 0x624   : > { %3866 = vmatmul.msk.f32.gmra.mxu1 %vm1735_vm13, %v4114_v22 }
 0x659   : > { %v2784_v52 = vpop.f32.mrf.mxu0  ;;  %v2803_v30 = vpop.f32.mrf.mxu1 }
 0x65a   : > { %v2804_v33 = vadd.f32 %v2803_v30, %v2784_v52  ;;  %v4115_v30 = vld [vmem:[%s4673_s23 + $0x10] sm:$0xff] }
 0x65b   : > { %3867 = vmatmul.msk.f32.gmra.mxu1 %vm1735_vm13, %v4115_v30 }
 0x661   : > { %v2786_v53 = vpop.f32.mrf.mxu0  ;;  %v2805_v60 = vpop.f32.mrf.mxu1 }
 0x662   : > { %v2806_v63 = vadd.f32 %v2805_v60, %v2786_v53 }
 0x663   : > { %3868 = vmatmul.msk.f32.gmra.mxu1 %vm1735_vm13, %v4116_v42 }
 0x666   : > { %v2822_v48 = vpop.f32.mrf.mxu2  ;;  %v2841_v23 = vpop.f32.mrf.mxu3 }
 0x667   : > { %v2823_v41 = vadd.f32 %v2822_v48, %v2804_v33  ;;  %v3016_v33 = vld [vmem:[%s5331_s19 + $0x10] sm:$0xff] }
 0x669   : > { %v2789_v43 = vpop.f32.mrf.mxu0  ;;  %v2808_v34 = vpop.f32.mrf.mxu1  ;;  %v2842_v21 = vadd.f32 %v2841_v23, %v2823_v41  ;;  %v3014_v41 = vld [vmem:[%s5331_s19] sm:$0xff] }
 0x66a   : > { %v2809_v44 = vadd.f32 %v2808_v34, %v2789_v43 }
 0x66e   : > { %v2824_v56 = vpop.f32.mrf.mxu2  ;;  %v2843_v57 = vpop.f32.mrf.mxu3 }
 0x66f   : > { %v2825_v45 = vadd.f32 %v2824_v56, %v2806_v63  ;;  %v3022_v56 = vld [vmem:[%s5331_s19 + $0x40] sm:$0xff] }
 0x670   : > { %3042 = vmatpush.msra.mxu2 %v3022_v56 }
 0x671   : > { %v2791_v32 = vpop.f32.mrf.mxu0  ;;  %v2810_v59 = vpop.f32.mrf.mxu1  ;;  %v2844_v11 = vadd.f32 %v2843_v57, %v2825_v45  ;;  %v3021_v57 = vld [vmem:[%s5331_s19 + $0x38] sm:$0xff]  ;;  %v4017_v45 = vld [vmem:[%s5333_s21] sm:$0xff] }
 0x672   : > { %v2811_v10 = vadd.f32 %v2810_v59, %v2791_v32  ;;  %3043 = vmatpush.msra.mxu2 %v3021_v57  ;;  %v3019_v32 = vld [vmem:[%s5331_s19 + $0x28] sm:$0xff] }
 0x674   : > { %3044 = vmatpush.msra.mxu2 %v3020_v58 }
 0x676   : > { %v2827_v40 = vpop.f32.mrf.mxu2  ;;  %v2846_v61 = vpop.f32.mrf.mxu3  ;;  %3045 = vmatpush.msra.mxu2 %v3019_v32 }
 0x677   : > { %v2828_v55 = vadd.f32 %v2827_v40, %v2809_v44  ;;  %v3018_v40 = vld [vmem:[%s5331_s19 + $0x20] sm:$0xff] }
 0x678   : > { %3046 = vmatpush.msra.mxu2 %v3018_v40 }
 0x679   : > { %v2860_v62 = vpop.f32.mrf.mxu0  ;;  %v2879_v14 = vpop.f32.mrf.mxu1  ;;  %v2847_v6 = vadd.f32 %v2846_v61, %v2828_v55  ;;  %v3017_v61 = vld [vmem:[%s5331_s19 + $0x18] sm:$0xff] }
 0x67a   : > { %v2861_v3 = vadd.f32 %v2860_v62, %v2842_v21  ;;  %3047 = vmatpush.msra.mxu2 %v3017_v61  ;;  %v3015_v62 = vld [vmem:[%s5331_s19 + $0x8] sm:$0xff] }
 0x67c   : > { %v2880_v4 = vadd.f32 %v2879_v14, %v2861_v3  ;;  %3048 = vmatpush.msra.mxu2 %v3016_v33 }
 0x67e   : > { %v2829_v17 = vpop.f32.mrf.mxu2  ;;  %v2848_v19 = vpop.f32.mrf.mxu3  ;;  %3049 = vmatpush.msra.mxu2 %v3015_v62 }
 0x67f   : > { %v2830_v25 = vadd.f32 %v2829_v17, %v2811_v10  ;;  %v3119_v17 = vld [vmem:[%s5333_s21 + $0x8] sm:$0xf] }
 0x680   : > { %3050 = vmatpush.msra.mxu2 %v3014_v41 }
 0x681   : > { %v2862_v8 = vpop.f32.mrf.mxu0  ;;  %v2881_v35 = vpop.f32.mrf.mxu1  ;;  %v2849_v39 = vadd.f32 %v2848_v19, %v2830_v25  ;;  %v3125_v19 = vunpack.c.l.b16 %v3119_v17 }
 0x682   : > { %v2863_v50 = vadd.f32 %v2862_v8, %v2844_v11 }
 0x683   : > { %v3127_v21 = vpack.c.b16 %v3125_v19, %v3125_v19 }
 0x684   : > { %v2882_v18 = vadd.f32 %v2881_v35, %v2863_v50 }
 0x685   : > { %v3136_v3 = vsel %vm2038_vm15, %v3127_v21, 0 }
 0x686   : > { %v2898_v0 = vpop.f32.mrf.mxu2  ;;  %v2917_v38 = vpop.f32.mrf.mxu3  ;;  %3144 = vmatpush.bf16.msrb.mxu0 %v3136_v3 }
 0x687   : > { %v2899_v1 = vadd.f32 %v2898_v0, %v2880_v4 }
 0x689   : > { %v2918_v46 = vadd.f32 %v2917_v38, %v2899_v1  ;;  %v2865_v15 = vpop.f32.mrf.mxu0  ;;  %v2884_v24 = vpop.f32.mrf.mxu1 }
 0x68a   : > { %v2866_v13 = vadd.f32 %v2865_v15, %v2847_v6  ;;  %3145 = vmatpush.bf16.msrb.mxu0 %v4017_v45 }
 0x68b   : > { %2931 = vrot.lane.b32.xlu0 %v2918_v46, %s4127_s8 }
 0x68c   : > { %v2885_v26 = vadd.f32 %v2884_v24, %v2866_v13 }
 0x68e   : > { %v2900_v5 = vpop.f32.mrf.mxu2  ;;  %v2919_v27 = vpop.f32.mrf.mxu3 }
 0x68f   : > { %v2901_v9 = vadd.f32 %v2900_v5, %v2882_v18 }
 0x691   : > { %v2920_v20 = vadd.f32 %v2919_v27, %v2901_v9  ;;  %v2867_v31 = vpop.f32.mrf.mxu0  ;;  %v2886_v53 = vpop.f32.mrf.mxu1 }
 0x692   : > { %v2868_v51 = vadd.f32 %v2867_v31, %v2849_v39 }
 0x693   : > { %v3064_v54 = vpack.c.bf16 %v2920_v20, %v2918_v46  ;;  %2933 = vrot.lane.b32.xlu1 %v2920_v20, %s4127_s8 }
 0x694   : > { %v2887_v60 = vadd.f32 %v2886_v53, %v2868_v51 }
 0x695   : > { %3881 = vmatmul.msk.bf16.vlgmr.msra.gmra.mxu3 %vm3086_vm2, %v3064_v54 }
 0x696   : > { %v2903_v36 = vpop.f32.mrf.mxu2  ;;  %v2922_v37 = vpop.f32.mrf.mxu3 }
 0x697   : > { %v2904_v49 = vadd.f32 %v2903_v36, %v2885_v26 }
 0x699   : > { %v2923_v52 = vadd.f32 %v2922_v37, %v2904_v49  ;;  %v2998_v14 = vpop.f32.mrf.mxu1 }
 0x69b   : > { %2935 = vrot.lane.b32.xlu2 %v2923_v52, %s4127_s8 }
 0x69e   : > { %v2905_v47 = vpop.f32.mrf.mxu2  ;;  %v2924_v48 = vpop.f32.mrf.mxu3 }
 0x69f   : > { %v2906_v16 = vadd.f32 %v2905_v47, %v2887_v60 }
 0x6a1   : > { %v2925_v23 = vadd.f32 %v2924_v48, %v2906_v16  ;;  %v3001_v4 = vpop.f32.mrf.mxu1 }
 0x6a3   : > { %v3065_v43 = vpack.c.bf16 %v2925_v23, %v2923_v52  ;;  %2937 = vrot.lane.b32.xlu0 %v2925_v23, %s4127_s8 }
 0x6a5   : > { %3882 = vmatmul.msk.bf16.gmra.mxu3 %vm3086_vm2, %v3065_v43 }
 0x6d8   : > { %v3004_v0 = vpop.f32.mrf.mxu1 }
 0x6e0   : > { %v3007_v1 = vpop.f32.mrf.mxu1 }
 0x6f5   : > { %v2936_v29 = vpop.permute.xlu2 %2935 }
 0x6fd   : > { %v2932_v34 = vpop.permute.xlu0 %2931 }
 0x6fe   : > { %3860 = vmatmul.msk.f32.vlgmr.msra.gmra.mxu0 %vm1691_vm14, %v2932_v34 }
 0x705   : > { %v2934_v2 = vpop.permute.xlu1 %2933 }
 0x706   : > { %3861 = vmatmul.msk.f32.gmra.mxu0 %vm1691_vm14, %v2934_v2 }
 0x70e   : > { %3862 = vmatmul.msk.f32.gmra.mxu0 %vm1691_vm14, %v2936_v29 }
 0x715   : > { %v2938_v59 = vpop.permute.xlu0 %2937 }
 0x716   : > { %3863 = vmatmul.msk.f32.gmra.mxu0 %vm1691_vm14, %v2938_v59 }
 0x718   : > { %v3105_v20 = vpop.f32.mrf.mxu3 }
 0x720   : > { %v3107_v22 = vpop.f32.mrf.mxu3 }
 0x728   : > { %v3110_v24 = vpop.f32.mrf.mxu3 }
 0x730   : > { %v3112_v39 = vpop.f32.mrf.mxu3 }
 0x77b   : > { %v2964_v63 = vpop.f32.mrf.mxu0 }
 0x77c   : > { %v3010_v8 = vmul.f32 %v2998_v14, %v2964_v63 }
 0x77e   : > { %3869 = vmatmul.msk.f32.vlgmr.msra.gmra.mxu2 %vm1794_vm8, %v3010_v8 }
 0x783   : > { %v2967_v28 = vpop.f32.mrf.mxu0 }
 0x784   : > { %v3011_v7 = vmul.f32 %v3001_v4, %v2967_v28 }
 0x786   : > { %3870 = vmatmul.msk.f32.gmra.mxu2 %vm1794_vm8, %v3011_v7 }
 0x78b   : > { %v2970_v38 = vpop.f32.mrf.mxu0 }
 0x78c   : > { %v3012_v11 = vmul.f32 %v3004_v0, %v2970_v38 }
 0x78e   : > { %3871 = vmatmul.msk.f32.gmra.mxu2 %vm1794_vm8, %v3012_v11 }
 0x793   : > { %v2973_v35 = vpop.f32.mrf.mxu0 }
 0x794   : > { %v3013_v44 = vmul.f32 %v3007_v1, %v2973_v35 }
 0x796   : > { %3872 = vmatmul.msk.f32.gmra.mxu2 %vm1794_vm8, %v3013_v44 }
 0x801   : > { %v3052_v50 = vpop.f32.mrf.mxu2 }
 0x809   : > { %v3055_v46 = vpop.f32.mrf.mxu2 }
 0x80a   : > { %v3115_v12 = vpack.c.bf16 %v3055_v46, %v3052_v50 }
 0x80c   : > { %3887 = vmatmul.msk.bf16.vlgmr.msrb.gmra.mxu0 %vm1691_vm14, %v3115_v12 }
 0x811   : > { %v3058_v55 = vpop.f32.mrf.mxu2 }
 0x819   : > { %v3061_v15 = vpop.f32.mrf.mxu2 }
 0x81a   : > { %v3116_v18 = vpack.c.bf16 %v3061_v15, %v3058_v55 }
 0x81c   : > { %3888 = vmatmul.msk.bf16.gmra.mxu0 %vm1691_vm14, %v3116_v18 }
 0x889   : > { %v3147_v5 = vpop.f32.mrf.mxu0 }
 0x891   : > { %v3149_v27 = vpop.f32.mrf.mxu0 }
 0x892   : > { %v4050_v6 = vpack.i.bf16 %v3149_v27, %v3147_v5 }
 0x894   : > { %4051 = vrot.lane.b32.xlu1 %v4050_v6, %s4128_s26 }
 0x899   : > { %v3152_v9 = vpop.f32.mrf.mxu0 }
 0x8a1   : > { %v3154_v10 = vpop.f32.mrf.mxu0 }
 0x8a2   : > { %v4055_v13 = vpack.i.bf16 %v3154_v10, %v3152_v9 }
 0x8a4   : > { %4056 = vrot.lane.b32.xlu2 %v4055_v13, %s4128_s26 }
 0x8fe   : > { %v4057_v25 = vpop.permute.xlu2 %4056 }
 0x8ff   : > { %v4058_v54 = vunpack.i.l.bf16 %v4057_v25  ;;  %v4059_v26 = vunpack.i.h.bf16 %v4057_v25 }
 0x901   : > { %v3175_v49 = vsel %vm3086_vm2, %v3110_v24, %v4058_v54  ;;  %v3176_v30 = vsel %vm3086_vm2, %v3112_v39, %v4059_v26 }
 0x902   : > { %v3179_v47 = vpack.c.bf16 %v3175_v49, %v3175_v49  ;;  %v3180_v16 = vpack.c.bf16 %v3176_v30, %v3176_v30 }
 0x904   : > { %3184 = vst.msk [vmem:[%s751_s4 + $0x8] sm:$0xf] %vm3181_vm3, %v3179_v47 }
 0x905   : > { %3185 = vst.msk [vmem:[%s751_s4 + $0xc] sm:$0xf] %vm3181_vm3, %v3180_v16 }
 0x906   : > { %v4052_v31 = vpop.permute.xlu1 %4051 }
 0x907   : > { %v4054_v36 = vunpack.i.h.bf16 %v4052_v31  ;;  %v4053_v37 = vunpack.i.l.bf16 %v4052_v31 }
 0x909   : > { %v3174_v51 = vsel %vm3086_vm2, %v3107_v22, %v4054_v36  ;;  %v3173_v52 = vsel %vm3086_vm2, %v3105_v20, %v4053_v37 }
 0x90a   : > { %v3178_v53 = vpack.c.bf16 %v3174_v51, %v3174_v51  ;;  %v3177_v60 = vpack.c.bf16 %v3173_v52, %v3173_v52 }
 0x90c   : > { %3182 = vst.msk [vmem:[%s751_s4] sm:$0xf] %vm3181_vm3, %v3177_v60 }
 0x90d   : > { %3183 = vst.msk [vmem:[%s751_s4 + $0x4] sm:$0xf] %vm3181_vm3, %v3178_v53 }
 0x90e PF: > { %s32_s3 = sadd.s32 1, %s4123_s3  }
 0x90f   : > { %p29_p4 = scmp.ge.s32.totalorder %s32_s3, 4  }
 0x911   :  { %31 = sbr.rel (!%p29_p4) target bundleno = 10 (0xa), region = 147 }

// kernel: mlp_attention_forward.7
= control target key start
LH: loop header
LB: loop body
LE: loop exit
PB: predicated region body
PF: predicated region fallthrough
CT: control target
= control target key end

     0   :  { %vm60_vm2 = vcmask 130048   ;;  %s708_s28 = smov 96   ;;  %s710_s29 = smov 80   ;;  %v711_v10 = vmov 2   ;;  %v712_v13 = vmov 3   ;;  %v713_v14 = vmov 0   ;;  %s840_s0 = inlined_call_operand.vmem [shape: bf16[16,80], index: 0, kind: input, shape index: {}]   ;;  %s841_s4 = inlined_call_operand.vmem [shape: bf16[16,4], index: 4, kind: input, shape index: {}]   ;;  %s842_s1 = inlined_call_operand.vmem [shape: bf16[16,5], index: 1, kind: input, shape index: {}]   ;;  %s843_s5 = inlined_call_operand.vmem [shape: f32[4,40], index: 5, kind: input, shape index: {}]   ;;  %s844_s2 = inlined_call_operand.vmem [shape: bf16[16,200], index: 2, kind: input, shape index: {}]   ;;  %s845_s3 = inlined_call_operand.vmem [shape: bf16[16,4], index: 3, kind: input, shape index: {}]   ;;  %s846_s6 = inlined_call_operand.vmem [shape: bf16[40,56], index: 6, kind: input, shape index: {}]   ;;  %s847_s7 = inlined_call_operand.vmem [shape: f32[16,56], index: 7, kind: output, shape index: {}]  }
   0x1   :  { %v613_v0 = vld [vmem:[%s840_s0] sm:$0xff]   ;;  %s707_s0 = smov 112   ;;  %648 = vset.pattern.permute.xlu0 %v711_v10  ;;  %654 = vset.pattern.permute.xlu1 %v712_v13  ;;  %v714_v16 = vmov 4   ;;  %v715_v17 = vmov 1   ;;  %vm213_vm3 = vcmask 1043456   ;;  %v790_v26 = vld [vmem:[%s844_s2 + $0x8] sm:$0xff] }
   0x2   :  { %v609_v1 = vld [vmem:[%s841_s4] sm:$0xff]  ;;  %v614_v2 = vunpack.c.l.bf16 %v613_v0  ;;  %v615_v3 = vunpack.c.h.bf16 %v613_v0  ;;  %s709_s4 = smov 64   ;;  %636 = vset.pattern.permute.xlu2 %v713_v14  ;;  %v795_v28 = vunpack.c.l.bf16 %v790_v26  ;;  %s716_s13 = smov 48   ;;  %v380_v58 = vunpack.c.h.bf16 %v790_v26 }
   0x3   :  { %71 = vmatpush.bf16.msra.mxu0 %v609_v1  ;;  %99 = vmatpush.bf16.msra.mxu1 %v609_v1  ;;  %v617_v9 = vld [vmem:[%s842_s1] sm:$0xff]   ;;  %s718_s14 = smov 88   ;;  %vm206_vm4 = vcmask 31744   ;;  %vm391_vm5 = vcmask 64512   ;;  %vm542_vm6 = vcmask 326656   ;;  %vm563_vm7 = vcmask 457728  }
   0x4   :  { %vm37_vm0 = vcmp.ge.f32.partialorder %v614_v2, 0.0  ;;  %vm38_vm1 = vcmp.ge.f32.partialorder %v615_v3, 0.0  ;;  %v39_v4 = vmul.f32 0.1, %v614_v2  ;;  %v40_v5 = vmul.f32 0.1, %v615_v3  ;;  %126 = vmatpush.bf16.msra.mxu2 %v609_v1  ;;  %153 = vmatpush.bf16.msra.mxu3 %v609_v1 }
   0x5   :  { %v618_v11 = vunpack.c.l.bf16 %v617_v9  ;;  %v619_v12 = vunpack.c.h.bf16 %v617_v9  ;;  %v195_v22 = vld [vmem:[%s843_s5] sm:$0xf]  ;;  %v677_v62 = vpack.i.bf16 %v380_v58, %v795_v28 }
   0x6   :  { %v41_v6 = vsel %vm37_vm0, %v614_v2, %v39_v4  ;;  %v42_v7 = vsel %vm38_vm1, %v615_v3, %v40_v5  ;;  %v196_v25 = vld [vmem:[%s844_s2] sm:$0xff]  ;;  %s717_s2 = smov 8  }
   0x7   :  { %180 = vmatpush.bf16.msrb.mxu0 %v609_v1  ;;  %v43_v8 = vpack.c.bf16 %v42_v7, %v41_v6  ;;  %v649_v15 = vpack.i.bf16 %v619_v12, %v618_v11  ;;  %579 = vmatpush.msk.msrb.mxu1 %vm213_vm3, %v195_v22  ;;  %v792_v27 = vunpack.c.l.bf16 %v196_v25  ;;  %v379_v38 = vunpack.c.h.bf16 %v196_v25 }
   0x8   :  { %582 = vmatpush.msk.msrb.mxu2 %vm213_vm3, %v195_v22  ;;  %585 = vmatpush.msk.msrb.mxu3 %vm213_vm3, %v195_v22 }
   0x9   :  { %87 = vrot.lane.b32.xlu1 %v43_v8, %s707_s0  ;;  %114 = vrot.lane.b32.xlu0 %v43_v8, %s708_s28  ;;  %v667_v31 = vpack.i.bf16 %v795_v28, %v792_v27  ;;  %v672_v42 = vpack.i.bf16 %v379_v38, %v792_v27 }
   0xa   :  { %574 = vmatmul.msk.bf16.vlgmr.msra.gmra.mxu0 %vm60_vm2, %v43_v8  ;;  %638 = vperm.xlu2 %636, %v649_v15  }
   0xb   :  { %588 = vmatpush.msk.msra.mxu0 %vm213_vm3, %v195_v22 }
  0x11   :  { %168 = vrot.lane.b32.xlu1 %v43_v8, %s709_s4  ;;  %141 = vrot.lane.b32.xlu0 %v43_v8, %s710_s29 }
  0x12   :  { %642 = vset.pattern.permute.xlu2 %v715_v17 }
  0x13   :  { %644 = vperm.xlu2 %642, %v649_v15  }
  0x19   :  { %650 = vperm.xlu0 %648, %v649_v15   ;;  %656 = vperm.xlu1 %654, %v649_v15  }
  0x1b   :  { %660 = vset.pattern.permute.xlu2 %v714_v16 }
  0x1c   :  { %161 = vperm.xlu2 %660, %v618_v11  }
  0x21   :  { %661 = vset.pattern.permute.xlu1 %v714_v16  ;;  %682 = vset.pattern.permute.xlu0 %v714_v16 }
  0x22   :  { %165 = vperm.xlu1 %661, %v619_v12   ;;  %668 = vrot.lane.b32.xlu0 %v667_v31, %s716_s13 }
  0x24   :  { %663 = vrot.lane.b32.xlu2 %v667_v31, %s718_s14 }
  0x2a   :  { %439 = vrot.lane.b32.xlu1 %v196_v25, %s708_s28  ;;  %673 = vrot.lane.b32.xlu0 %v672_v42, %s717_s2 }
  0x2c   :  { %441 = vrot.lane.b32.xlu2 %v790_v26, %s708_s28  ;;  %v621_v26 = vld [vmem:[%s845_s3] sm:$0xff]  }
  0x32   :  { %678 = vrot.lane.b32.xlu1 %v677_v62, %s717_s2 }
  0x64   :  { %v639_v23 = vpop.permute.xlu2 %638 }
  0x65   :  { %v640_v34 = vunpack.i.l.bf16 %v639_v23  ;;  %v641_v50 = vunpack.i.h.bf16 %v639_v23 }
  0x6d   :  { %v645_v29 = vpop.permute.xlu2 %644 }
  0x6e   :  { %v646_v35 = vunpack.i.l.bf16 %v645_v29  ;;  %v647_v45 = vunpack.i.h.bf16 %v645_v29 }
  0x76   :  { %v162_v47 = vpop.permute.xlu2 %161 }
  0x7b   :  { %v88_v18 = vpop.permute.xlu1 %87  ;;  %v115_v19 = vpop.permute.xlu0 %114 }
  0x7c   :  { %575 = vmatmul.msk.bf16.vlgmr.msra.gmra.mxu1 %vm60_vm2, %v88_v18  ;;  %576 = vmatmul.msk.bf16.vlgmr.msra.gmra.mxu2 %vm60_vm2, %v115_v19 }
  0x7d   :  { %594 = vmatpush.msk.msra.mxu2 %vm213_vm3, %v195_v22  ;;  %591 = vmatpush.msk.msra.mxu1 %vm213_vm3, %v195_v22 }
  0x83   :  { %v169_v20 = vpop.permute.xlu1 %168  ;;  %v142_v21 = vpop.permute.xlu0 %141 }
  0x84   :  { %577 = vmatmul.msk.bf16.vlgmr.msra.gmra.mxu3 %vm60_vm2, %v142_v21  ;;  %578 = vmatmul.msk.bf16.vlgmr.msrb.gmra.mxu0 %vm60_vm2, %v169_v20 }
  0x85   :  { %597 = vmatpush.msk.msra.mxu3 %vm213_vm3, %v195_v22 }
  0x87   :  { %v73_v24 = vpop.f32.mrf.mxu0 }
  0x88   :  { %v74_v39 = vadd.f32 %v640_v34, %v73_v24 }
  0x8b   :  { %v651_v33 = vpop.permute.xlu0 %650  ;;  %v657_v41 = vpop.permute.xlu1 %656 }
  0x8c   :  { %v652_v37 = vunpack.i.l.bf16 %v651_v33  ;;  %v658_v44 = vunpack.i.l.bf16 %v657_v41  ;;  %v653_v56 = vunpack.i.h.bf16 %v651_v33  ;;  %v659_v1 = vunpack.i.h.bf16 %v657_v41 }
  0x8f   :  { %v75_v30 = vpop.f32.mrf.mxu0 }
  0x90   :  { %v76_v60 = vadd.f32 %v641_v50, %v75_v30  ;;  %v622_v50 = vunpack.c.l.bf16 %v621_v26 }
  0x94   :  { %v166_v6 = vpop.permute.xlu1 %165 }
  0xf9   :  { %v101_v32 = vpop.f32.mrf.mxu1 }
  0xfa   :  { %v102_v40 = vadd.f32 %v646_v35, %v101_v32 }
  0xfc   :  { %v187_v48 = vmax.f32 %v74_v39, %v102_v40 }
  0xff   :  { %v128_v36 = vpop.f32.mrf.mxu2 }
 0x100   :  { %v129_v43 = vadd.f32 %v652_v37, %v128_v36 }
 0x101   :  { %v182_v46 = vpop.f32.mrf.mxu0  ;;  %v103_v49 = vpop.f32.mrf.mxu1 }
 0x102   :  { %v189_v52 = vmax.f32 %v187_v48, %v129_v43  ;;  %v183_v55 = vadd.f32 %v182_v46, %v162_v47  ;;  %v104_v57 = vadd.f32 %v647_v45, %v103_v49 }
 0x104   :  { %v188_v0 = vmax.f32 %v76_v60, %v104_v57 }
 0x107   :  { %v155_v51 = vpop.f32.mrf.mxu3  ;;  %v130_v53 = vpop.f32.mrf.mxu2 }
 0x108   :  { %v156_v54 = vadd.f32 %v658_v44, %v155_v51  ;;  %v131_v61 = vadd.f32 %v653_v56, %v130_v53  ;;  %v623_v53 = vunpack.c.h.bf16 %v621_v26 }
 0x109   :  { %v184_v8 = vpop.f32.mrf.mxu0 }
 0x10a   :  { %v191_v59 = vmax.f32 %v189_v52, %v156_v54  ;;  %v190_v7 = vmax.f32 %v188_v0, %v131_v61  ;;  %v185_v16 = vadd.f32 %v184_v8, %v166_v6 }
 0x10c   :  { %v193_v63 = vmax.f32 %v191_v59, %v183_v55  ;;  %v611_v59 = vld [vmem:[%s846_s6 + $0x8] sm:$0xff] }
 0x10e   :  { %v198_v2 = vsub.f32 %v74_v39, %v193_v63  ;;  %v246_v3 = vsub.f32 %v102_v40, %v193_v63  ;;  %v295_v4 = vsub.f32 %v129_v43, %v193_v63  ;;  %v342_v5 = vsub.f32 %v156_v54, %v193_v63 }
 0x10f   :  { %v157_v9 = vpop.f32.mrf.mxu3  ;;  %v400_v15 = vsub.f32 %v183_v55, %v193_v63  ;;  %v526_v55 = vld [vmem:[%s846_s6 + $0x10] sm:$0xf] }
 0x110   :  { %v200_v10 = vmul.f32 1.442695, %v198_v2  ;;  %v248_v11 = vmul.f32 1.442695, %v246_v3  ;;  %v297_v12 = vmul.f32 1.442695, %v295_v4  ;;  %v158_v13 = vadd.f32 %v659_v1, %v157_v9  ;;  %v669_v1 = vpop.permute.xlu0 %668  ;;  %v440_v2 = vpop.permute.xlu1 %439 }
 0x111   :  { %v344_v14 = vmul.f32 1.442695, %v342_v5  ;;  %v402_v19 = vmul.f32 1.442695, %v400_v15  ;;  %v536_v56 = vunpack.c.l.b16 %v526_v55  ;;  %v664_v3 = vpop.permute.xlu2 %663  ;;  %v671_v15 = vunpack.i.h.bf16 %v669_v1 }
 0x112   :  { %683 = vpow2.f32 %v200_v10  ;;  %v192_v17 = vmax.f32 %v190_v7, %v158_v13  ;;  %v666_v5 = vunpack.i.h.bf16 %v664_v3  ;;  %v665_v6 = vunpack.i.l.bf16 %v664_v3 }
 0x113   :  { %685 = vpow2.f32 %v248_v11 }
 0x114   :  { %687 = vpow2.f32 %v297_v12  ;;  %v194_v18 = vmax.f32 %v192_v17, %v185_v16  ;;  %v670_v17 = vunpack.i.l.bf16 %v669_v1 }
 0x115   :  { %689 = vpow2.f32 %v344_v14 }
 0x116   :  { %v199_v20 = vsub.f32 %v76_v60, %v194_v18  ;;  %v247_v21 = vsub.f32 %v104_v57, %v194_v18  ;;  %v296_v22 = vsub.f32 %v131_v61, %v194_v18  ;;  %v343_v23 = vsub.f32 %v158_v13, %v194_v18  ;;  %v610_v61 = vld [vmem:[%s846_s6] sm:$0xff] }
 0x117   :  { %691 = vpow2.f32 %v402_v19  ;;  %v401_v34 = vsub.f32 %v185_v16, %v194_v18  ;;  %v539_v57 = vpack.c.b16 %v536_v56, %v536_v56  ;;  %v443_v16 = vrot.slane %v440_v2, 4 }
 0x118   :  { %v684_v24 = vpop.eup %683  ;;  %v202_v25 = vmul.f32 1.442695, %v199_v20  ;;  %v250_v29 = vmul.f32 1.442695, %v247_v21  ;;  %v299_v30 = vmul.f32 1.442695, %v296_v22  ;;  %v674_v11 = vpop.permute.xlu0 %673 }
 0x119   :  { %v686_v32 = vpop.eup %685  ;;  %v346_v33 = vmul.f32 1.442695, %v343_v23  ;;  %580 = vmatmul.msk.f32.vlgmr.msrb.gmra.mxu1 %vm206_vm4, %v684_v24  ;;  %v404_v38 = vmul.f32 1.442695, %v401_v34  ;;  %v547_v58 = vsel %vm213_vm3, %v539_v57, 0  ;;  %v442_v10 = vpop.permute.xlu2 %441  ;;  %v676_v21 = vunpack.i.h.bf16 %v674_v11 }
 0x11a   :  { %v688_v35 = vpop.eup %687  ;;  %v252_v36 = vadd.f32 %v686_v32, %v684_v24  ;;  %693 = vpow2.f32 %v202_v25  ;;  %583 = vmatmul.msk.f32.vlgmr.msrb.gmra.mxu2 %vm206_vm4, %v686_v32  ;;  %554 = vmatpush.bf16.msrb.mxu0 %v547_v58  ;;  %v679_v12 = vpop.permute.xlu1 %678  ;;  %v444_v20 = vrot.slane %v442_v10, 4  ;;  %v675_v22 = vunpack.i.l.bf16 %v674_v11 }
 0x11b   :  { %v690_v31 = vpop.eup %689  ;;  %695 = vpow2.f32 %v250_v29  ;;  %586 = vmatmul.msk.f32.vlgmr.msrb.gmra.mxu3 %vm206_vm4, %v688_v35  ;;  %v681_v23 = vunpack.i.h.bf16 %v679_v12  ;;  %v680_v24 = vunpack.i.l.bf16 %v679_v12 }
 0x11c   :  { %v301_v37 = vadd.f32 %v688_v35, %v252_v36  ;;  %697 = vpow2.f32 %v299_v30  ;;  %589 = vmatmul.msk.f32.vlgmr.msra.gmra.mxu0 %vm206_vm4, %v690_v31  ;;  %v448_v36 = vunpack.c.l.bf16 %v444_v20 }
 0x11d   :  { %699 = vpow2.f32 %v346_v33  ;;  %v692_v40 = vpop.eup %691  ;;  %v447_v33 = vunpack.c.l.bf16 %v443_v16 }
 0x11e   :  { %v348_v39 = vadd.f32 %v690_v31, %v301_v37  ;;  %701 = vpow2.f32 %v404_v38  ;;  %555 = vmatpush.bf16.msrb.mxu0 %v611_v59  ;;  %v392_v31 = vsel %vm391_vm5, %v675_v22, %v676_v21  ;;  %v393_v38 = vsel %vm391_vm5, %v680_v24, %v681_v23 }
 0x120   :  { %v694_v41 = vpop.eup %693  ;;  %v406_v42 = vadd.f32 %v692_v40, %v348_v39 }
 0x121   :  { %v696_v43 = vpop.eup %695  ;;  %581 = vmatmul.msk.f32.gmra.mxu1 %vm206_vm4, %v694_v41 }
 0x122   :  { %v698_v44 = vpop.eup %697  ;;  %703 = vrcp.f32 %v406_v42  ;;  %v253_v45 = vadd.f32 %v696_v43, %v694_v41  ;;  %584 = vmatmul.msk.f32.gmra.mxu2 %vm206_vm4, %v696_v43  ;;  %556 = vmatpush.bf16.msrb.mxu0 %v610_v61 }
 0x123   :  { %v700_v46 = vpop.eup %699  ;;  %587 = vmatmul.msk.f32.gmra.mxu3 %vm206_vm4, %v698_v44 }
 0x124   :  { %v302_v47 = vadd.f32 %v698_v44, %v253_v45  ;;  %590 = vmatmul.msk.f32.gmra.mxu0 %vm206_vm4, %v700_v46  ;;  %v702_v49 = vpop.eup %701 }
 0x126   :  { %v349_v48 = vadd.f32 %v700_v46, %v302_v47 }
 0x128   :  { %v704_v51 = vpop.eup %703  ;;  %v407_v52 = vadd.f32 %v702_v49, %v349_v48 }
 0x129   :  { %592 = vmatmul.msk.f32.vlgmr.msra.gmra.mxu1 %vm206_vm4, %v692_v40 }
 0x12a   :  { %705 = vrcp.f32 %v407_v52  ;;  %595 = vmatmul.msk.f32.vlgmr.msra.gmra.mxu2 %vm206_vm4, %v704_v51 }
 0x12b   :  { %598 = vmatmul.msk.f32.vlgmr.msra.gmra.mxu3 %vm206_vm4, %v622_v50 }
 0x130   :  { %v706_v54 = vpop.eup %705 }
 0x131   :  { %593 = vmatmul.msk.f32.gmra.mxu1 %vm206_vm4, %v702_v49 }
 0x132   :  { %596 = vmatmul.msk.f32.gmra.mxu2 %vm206_vm4, %v706_v54 }
 0x133   :  { %599 = vmatmul.msk.f32.gmra.mxu3 %vm206_vm4, %v623_v53 }
 0x196   :  { %v234_v60 = vpop.f32.mrf.mxu1 }
 0x197   :  { %v242_v18 = vmul.f32 %v792_v27, %v234_v60 }
 0x199   :  { %v373_v4 = vpop.f32.mrf.mxu0 }
 0x19a   :  { %v396_v40 = vmul.f32 %v392_v31, %v373_v4 }
 0x19d   :  { %v277_v62 = vpop.f32.mrf.mxu2 }
 0x19e   :  { %v326_v63 = vpop.f32.mrf.mxu3  ;;  %v237_v0 = vpop.f32.mrf.mxu1  ;;  %v291_v13 = vmul.f32 %v665_v6, %v277_v62 }
 0x19f   :  { %v243_v19 = vmul.f32 %v795_v28, %v237_v0  ;;  %v338_v34 = vmul.f32 %v670_v17, %v326_v63 }
 0x1a0   :  { %v293_v25 = vadd.f32 %v291_v13, %v242_v18 }
 0x1a1   :  { %v376_v37 = vpop.f32.mrf.mxu0 }
 0x1a2   :  { %v340_v39 = vadd.f32 %v338_v34, %v293_v25  ;;  %v397_v41 = vmul.f32 %v393_v38, %v376_v37 }
 0x1a4   :  { %v398_v44 = vadd.f32 %v396_v40, %v340_v39 }
 0x1a5   :  { %v280_v7 = vpop.f32.mrf.mxu2 }
 0x1a6   :  { %v329_v8 = vpop.f32.mrf.mxu3  ;;  %v431_v9 = vpop.f32.mrf.mxu1  ;;  %v292_v14 = vmul.f32 %v666_v5, %v280_v7 }
 0x1a7   :  { %v339_v35 = vmul.f32 %v671_v15, %v329_v8  ;;  %v449_v42 = vmul.f32 %v447_v33, %v431_v9 }
 0x1a8   :  { %v294_v29 = vadd.f32 %v292_v14, %v243_v19 }
 0x1a9   :  { %v451_v48 = vadd.f32 %v449_v42, %v398_v44 }
 0x1aa   :  { %v341_v28 = vadd.f32 %v339_v35, %v294_v29 }
 0x1ac   :  { %v399_v46 = vadd.f32 %v397_v41, %v341_v28 }
 0x1ad   :  { %v478_v30 = vpop.f32.mrf.mxu2 }
 0x1ae   :  { %v511_v32 = vpop.f32.mrf.mxu3  ;;  %v434_v27 = vpop.f32.mrf.mxu1 }
 0x1af   :  { %v450_v43 = vmul.f32 %v448_v36, %v434_v27  ;;  %v517_v45 = vmul.f32 %v511_v32, %v478_v30 }
 0x1b1   :  { %v452_v49 = vadd.f32 %v450_v43, %v399_v46  ;;  %v519_v51 = vmul.f32 %v517_v45, %v451_v48 }
 0x1b5   :  { %v481_v47 = vpop.f32.mrf.mxu2 }
 0x1b6   :  { %v514_v26 = vpop.f32.mrf.mxu3 }
 0x1b7   :  { %v518_v50 = vmul.f32 %v514_v26, %v481_v47 }
 0x1b9   :  { %v520_v52 = vmul.f32 %v518_v50, %v452_v49 }
 0x1bb   :  { %v521_v53 = vpack.c.bf16 %v520_v52, %v519_v51 }
 0x1bd   :  { %608 = vmatmul.msk.bf16.vlgmr.msrb.gmra.mxu0 %vm542_vm6, %v521_v53 }
 0x23a   :  { %v558_v54 = vpop.f32.mrf.mxu0 }
 0x23b   :  { %564 = vst.msk [vmem:[%s847_s7] sm:$0xff] %vm563_vm7, %v558_v54 }
 0x242   :  { %v560_v55 = vpop.f32.mrf.mxu0 }
 0x243   :  { %565 = vst.msk [vmem:[%s847_s7 + $0x8] sm:$0xff] %vm563_vm7, %v560_v55 }

</bundles_post_ra>
